<compile_context>
chip_gen: v6e
topology: v6e:2x2x1
jax: 0.10.0
libtpu: 0.0.40
codegen_flags: <defaults>
</compile_context>

<pallas_src>
import functools

import jax
import jax.numpy as jnp
from jax.experimental import pallas as pl
from jax.experimental.pallas import tpu as pltpu

# ---------------- model config (small, synthetic) ----------------
IMG = 16            # image height / width
PATCH = 8           # patch size -> 2x2 grid = 4 patches / image
CIN = 3             # input channels
WIDTH = 32          # ViT width ("vis_dim")
HEADS = 4
DH = WIDTH // HEADS
LAYERS = 2
MLP = 4 * WIDTH
OUT_DIM = 16        # CLIP projection dim
EPS = 1e-5

GRID = IMG // PATCH             # 2
P = GRID * GRID                 # 4 patches per image
T = P + 1                       # 5 tokens per image (cls + patches)
PATCH_DIM = CIN * PATCH * PATCH # 192
NEG_BIAS = -1e9                 # cross-image attention mask bias


# ---------------- in-kernel helpers ----------------
def _layernorm(x, g, b):
    mu = jnp.mean(x, axis=-1, keepdims=True)
    var = jnp.mean(jnp.square(x - mu), axis=-1, keepdims=True)
    return (x - mu) * jax.lax.rsqrt(var + EPS) * g + b


# ---------------- single fused ViT kernel ----------------
def _fused_vit_kernel(
    # inputs
    patches_ref, mask_ref, conv_w_ref, cls_ref, pos_ref,
    ln_pre_g_ref, ln_pre_b_ref,
    ln1_g_ref, ln1_b_ref, qkv_w_ref, qkv_b_ref, attn_w_ref, attn_b_ref,
    ln2_g_ref, ln2_b_ref, fc1_w_ref, fc1_b_ref, fc2_w_ref, fc2_b_ref,
    ln_post_g_ref, ln_post_b_ref, head_w_ref,
    # outputs
    pooled_ref, tokens_ref,
    # VMEM scratch
    pe_s, h_s, qkv_s, attn_s, cls_s,
    *, n_imgs):
    N = n_imgs
    scale = 1.0 / (DH ** 0.5)

    # --- patch embedding: conv1 (kernel=stride=patch, bias=False) as matmul ---
    pe_s[...] = jnp.dot(patches_ref[...], conv_w_ref[...],
                        preferred_element_type=jnp.float32)

    # --- assemble [cls ; patch tokens] + positional embedding, per image ---
    cls_row = cls_ref[...] + pos_ref[0:1, :]          # (1, W)
    pos_patch = pos_ref[1:T, :]                       # (P, W)
    for i in range(N):
        h_s[i * T:i * T + 1, :] = cls_row
        h_s[i * T + 1:(i + 1) * T, :] = pe_s[i * P:(i + 1) * P, :] + pos_patch

    # --- ln_pre ---
    h_s[...] = _layernorm(h_s[...], ln_pre_g_ref[...], ln_pre_b_ref[...])

    # block-diagonal mask bias keeps attention within each image while all
    # images share one dense contraction per head.
    mask_bias = mask_ref[...]                         # (N*T, N*T)

    # --- residual attention blocks (fully unrolled, everything stays in VMEM) ---
    for l in range(LAYERS):
        h = h_s[...]                                  # (N*T, W)

        # -- multi-head self attention --
        y = _layernorm(h, ln1_g_ref[l], ln1_b_ref[l])
        qkv_s[...] = jnp.dot(y, qkv_w_ref[l],
                             preferred_element_type=jnp.float32) + qkv_b_ref[l]
        for hd in range(HEADS):
            q = qkv_s[:, hd * DH:(hd + 1) * DH]                           # (N*T, DH)
            k = qkv_s[:, WIDTH + hd * DH:WIDTH + (hd + 1) * DH]
            v = qkv_s[:, 2 * WIDTH + hd * DH:2 * WIDTH + (hd + 1) * DH]
            # one contraction over all images per head (q @ k^T, trans_b)
            s = jax.lax.dot_general(
                q, k, (((1,), (1,)), ((), ())),
                preferred_element_type=jnp.float32) * scale + mask_bias
            s = s - jnp.max(s, axis=-1, keepdims=True)
            p = jnp.exp(s)
            p = p * pl.reciprocal(jnp.sum(p, axis=-1, keepdims=True), approx=True)
            attn_s[:, hd * DH:(hd + 1) * DH] = jnp.dot(
                p, v, preferred_element_type=jnp.float32)
        o = jnp.dot(attn_s[...], attn_w_ref[l],
                    preferred_element_type=jnp.float32) + attn_b_ref[l]
        h = h + o

        # -- MLP --
        y = _layernorm(h, ln2_g_ref[l], ln2_b_ref[l])
        # TODO(synk): PyTorch nn.GELU defaults to exact erf; tanh approx used here.
        m = jax.nn.gelu(
            jnp.dot(y, fc1_w_ref[l], preferred_element_type=jnp.float32)
            + fc1_b_ref[l],
            approximate=True)
        m = jnp.dot(m, fc2_w_ref[l],
                    preferred_element_type=jnp.float32) + fc2_b_ref[l]
        h_s[...] = h + m

    # --- ln_post ---
    h_s[...] = _layernorm(h_s[...], ln_post_g_ref[...], ln_post_b_ref[...])

    # --- split cls / patch tokens; project pooled (no bias) ---
    for i in range(N):
        cls_s[i:i + 1, :] = h_s[i * T:i * T + 1, :]
        tokens_ref[i * P:(i + 1) * P, :] = h_s[i * T + 1:(i + 1) * T, :]
    pooled_ref[...] = jnp.dot(cls_s[...], head_w_ref[...],
                              preferred_element_type=jnp.float32)


def _fused_vit(params, patches, n_imgs):
    """patches: (n_imgs * P, PATCH_DIM) -> (pooled (n_imgs, OUT_DIM),
                                            tokens (n_imgs * P, WIDTH))."""
    NT = n_imgs * T
    blk = params["blocks"]
    img_id = jnp.arange(NT, dtype=jnp.int32) // T
    mask_bias = jnp.where(img_id[:, None] == img_id[None, :],
                          0.0, NEG_BIAS).astype(jnp.float32)

    kernel = functools.partial(_fused_vit_kernel, n_imgs=n_imgs)
    pooled, tokens = pl.pallas_call(
        kernel,
        out_shape=(jax.ShapeDtypeStruct((n_imgs, OUT_DIM), jnp.float32),
                   jax.ShapeDtypeStruct((n_imgs * P, WIDTH), jnp.float32)),
        scratch_shapes=[
            pltpu.VMEM((n_imgs * P, WIDTH), jnp.float32),      # pe_s
            pltpu.VMEM((NT, WIDTH), jnp.float32),              # h_s (residual)
            pltpu.VMEM((NT, 3 * WIDTH), jnp.float32),          # qkv_s
            pltpu.VMEM((NT, WIDTH), jnp.float32),              # attn_s
            pltpu.VMEM((n_imgs, WIDTH), jnp.float32),          # cls_s
        ],
    )(patches, mask_bias, params["conv_w"], params["cls"], params["pos"],
      params["ln_pre_g"], params["ln_pre_b"],
      blk["ln1_g"], blk["ln1_b"], blk["qkv_w"], blk["qkv_b"],
      blk["attn_w"], blk["attn_b"],
      blk["ln2_g"], blk["ln2_b"], blk["fc1_w"], blk["fc1_b"],
      blk["fc2_w"], blk["fc2_b"],
      params["ln_post_g"], params["ln_post_b"], params["proj_w"])
    return pooled, tokens


# ---------------- parameter init (deterministic, synthetic) ----------------
def init_params(key):
    keys = iter(jax.random.split(key, 32))

    def nrm(shape, scale=0.02):
        return (scale * jax.random.normal(next(keys), shape)).astype(jnp.float32)

    def zeros(shape):
        return jnp.zeros(shape, jnp.float32)

    def ones(shape):
        return jnp.ones(shape, jnp.float32)

    return {
        "conv_w": nrm((PATCH_DIM, WIDTH)),               # conv1 (bias=False)
        "cls": nrm((1, WIDTH)),
        "pos": nrm((T, WIDTH)),
        "ln_pre_g": ones((1, WIDTH)), "ln_pre_b": zeros((1, WIDTH)),
        "ln_post_g": ones((1, WIDTH)), "ln_post_b": zeros((1, WIDTH)),
        "proj_w": nrm((WIDTH, OUT_DIM)),                 # CLIP projection (no bias)
        "blocks": {                                      # stacked over LAYERS
            "ln1_g": ones((LAYERS, 1, WIDTH)), "ln1_b": zeros((LAYERS, 1, WIDTH)),
            "qkv_w": nrm((LAYERS, WIDTH, 3 * WIDTH)),
            "qkv_b": zeros((LAYERS, 1, 3 * WIDTH)),
            "attn_w": nrm((LAYERS, WIDTH, WIDTH)),
            "attn_b": zeros((LAYERS, 1, WIDTH)),
            "ln2_g": ones((LAYERS, 1, WIDTH)), "ln2_b": zeros((LAYERS, 1, WIDTH)),
            "fc1_w": nrm((LAYERS, WIDTH, MLP)), "fc1_b": zeros((LAYERS, 1, MLP)),
            "fc2_w": nrm((LAYERS, MLP, WIDTH)), "fc2_b": zeros((LAYERS, 1, WIDTH)),
        },
    }


# ---------------- CLIP-style ViT forward (output_tokens=True) ----------------
def vit_forward(params, images):
    """images: (N, C, H, W) NCHW -> (pooled (N, OUT_DIM), tokens (N, P, WIDTH))."""
    N, C, H, W = images.shape
    gh, gw = H // PATCH, W // PATCH
    # patchify in XLA (pure layout op, once per forward); all math is in the kernel
    patches = images.reshape(N, C, gh, PATCH, gw, PATCH)
    patches = patches.transpose(0, 2, 4, 1, 3, 5).reshape(
        N * gh * gw, C * PATCH * PATCH).astype(jnp.float32)
    pooled, tokens = _fused_vit(params, patches, N)
    tokens = tokens.reshape(N, gh * gw, WIDTH)
    return pooled, tokens


# ---------------- VisionTransformer.forward equivalent ----------------
def vision_transformer_forward(params, vision_x):
    """vision_x: (b, s, c, h, w)  (PyTorch layout)."""
    b, s = vision_x.shape[:2]
    x = vision_x.reshape((b * s,) + vision_x.shape[2:])   # 'b s c h w -> (b s) c h w'
    pooled, tokens = vit_forward(params, x)
    tokens = tokens[:, None, None, :, :]                  # .unsqueeze(1).unsqueeze(1)
    # perceiver = nn.Identity()
    return pooled, tokens


if __name__ == "__main__":
    key = jax.random.PRNGKey(0)
    pkey, xkey = jax.random.split(key)
    params = init_params(pkey)

    b, s = 2, 2
    vision_x = jax.random.normal(xkey, (b, s, CIN, IMG, IMG), dtype=jnp.float32)

    fwd = jax.jit(vision_transformer_forward)
    pooled, tokens = fwd(params, vision_x)
    jax.block_until_ready((pooled, tokens))

    assert pooled.shape == (b * s, OUT_DIM)
    assert tokens.shape == (b * s, 1, 1, P, WIDTH)
    assert bool(jnp.all(jnp.isfinite(pooled))) and bool(jnp.all(jnp.isfinite(tokens)))
    print("KERNEL_OK")
</pallas_src>

<mosaic_0001>
module attributes {stable_mosaic.version = 11 : i64} {
  func.func @_fused_vit_kernel(%arg0: memref<16x192xf32, #tpu.memory_space<vmem>>, %arg1: memref<20x20xf32, #tpu.memory_space<vmem>>, %arg2: memref<192x32xf32, #tpu.memory_space<vmem>>, %arg3: memref<1x32xf32, #tpu.memory_space<vmem>>, %arg4: memref<5x32xf32, #tpu.memory_space<vmem>>, %arg5: memref<1x32xf32, #tpu.memory_space<vmem>>, %arg6: memref<1x32xf32, #tpu.memory_space<vmem>>, %arg7: memref<2x1x32xf32, #tpu.memory_space<vmem>>, %arg8: memref<2x1x32xf32, #tpu.memory_space<vmem>>, %arg9: memref<2x32x96xf32, #tpu.memory_space<vmem>>, %arg10: memref<2x1x96xf32, #tpu.memory_space<vmem>>, %arg11: memref<2x32x32xf32, #tpu.memory_space<vmem>>, %arg12: memref<2x1x32xf32, #tpu.memory_space<vmem>>, %arg13: memref<2x1x32xf32, #tpu.memory_space<vmem>>, %arg14: memref<2x1x32xf32, #tpu.memory_space<vmem>>, %arg15: memref<2x32x128xf32, #tpu.memory_space<vmem>>, %arg16: memref<2x1x128xf32, #tpu.memory_space<vmem>>, %arg17: memref<2x128x32xf32, #tpu.memory_space<vmem>>, %arg18: memref<2x1x32xf32, #tpu.memory_space<vmem>>, %arg19: memref<1x32xf32, #tpu.memory_space<vmem>>, %arg20: memref<1x32xf32, #tpu.memory_space<vmem>>, %arg21: memref<32x16xf32, #tpu.memory_space<vmem>>, %arg22: memref<4x16xf32, #tpu.memory_space<vmem>>, %arg23: memref<16x32xf32, #tpu.memory_space<vmem>>, %arg24: memref<16x32xf32, #tpu.memory_space<vmem>>, %arg25: memref<20x32xf32, #tpu.memory_space<vmem>>, %arg26: memref<20x96xf32, #tpu.memory_space<vmem>>, %arg27: memref<20x32xf32, #tpu.memory_space<vmem>>, %arg28: memref<4x32xf32, #tpu.memory_space<vmem>>) attributes {dimension_semantics = [], scalar_prefetch = 0 : i64, scratch_operands = 5 : i64, tpu.core_type = #tpu.core_type<tc>} {
    %c0 = arith.constant 0 : index
    %c0_0 = arith.constant 0 : index
    %0 = vector.load %arg0[%c0, %c0_0] : memref<16x192xf32, #tpu.memory_space<vmem>>, vector<16x192xf32>
    %c0_1 = arith.constant 0 : index
    %c0_2 = arith.constant 0 : index
    %1 = vector.load %arg2[%c0_1, %c0_2] : memref<192x32xf32, #tpu.memory_space<vmem>>, vector<192x32xf32>
    %cst = arith.constant dense<0.000000e+00> : vector<16x32xf32>
    %2 = tpu.matmul %0, %1, %cst {dimension_numbers = #tpu.dot_dimension_numbers<[1], [0], [0], [1], [0, 0, 1, 1], [], []>} : vector<16x192xf32>, vector<192x32xf32>, vector<16x32xf32> -> vector<16x32xf32>
    %c0_3 = arith.constant 0 : index
    %c0_4 = arith.constant 0 : index
    %3 = vector.load %arg24[%c0_3, %c0_4] : memref<16x32xf32, #tpu.memory_space<vmem>>, vector<16x32xf32>
    tpu.vector_store %arg24[%c0_3, %c0_4], %2 {strides = array<i32>} : memref<16x32xf32, #tpu.memory_space<vmem>>, vector<16x32xf32>,
    %c0_5 = arith.constant 0 : index
    %c0_6 = arith.constant 0 : index
    %4 = vector.load %arg3[%c0_5, %c0_6] : memref<1x32xf32, #tpu.memory_space<vmem>>, vector<1x32xf32>
    %c0_7 = arith.constant 0 : index
    %c0_8 = arith.constant 0 : index
    %5 = vector.load %arg4[%c0_7, %c0_8] : memref<5x32xf32, #tpu.memory_space<vmem>>, vector<1x32xf32>
    %6 = arith.addf %4, %5 : vector<1x32xf32>
    %c1 = arith.constant 1 : index
    %c0_9 = arith.constant 0 : index
    %7 = vector.load %arg4[%c1, %c0_9] : memref<5x32xf32, #tpu.memory_space<vmem>>, vector<4x32xf32>
    %c0_10 = arith.constant 0 : index
    %c0_11 = arith.constant 0 : index
    %8 = vector.load %arg25[%c0_10, %c0_11] : memref<20x32xf32, #tpu.memory_space<vmem>>, vector<1x32xf32>
    tpu.vector_store %arg25[%c0_10, %c0_11], %6 {strides = array<i32>} : memref<20x32xf32, #tpu.memory_space<vmem>>, vector<1x32xf32>,
    %c0_12 = arith.constant 0 : index
    %c0_13 = arith.constant 0 : index
    %9 = vector.load %arg24[%c0_12, %c0_13] : memref<16x32xf32, #tpu.memory_space<vmem>>, vector<4x32xf32>
    %10 = arith.addf %9, %7 : vector<4x32xf32>
    %c1_14 = arith.constant 1 : index
    %c0_15 = arith.constant 0 : index
    %11 = vector.load %arg25[%c1_14, %c0_15] : memref<20x32xf32, #tpu.memory_space<vmem>>, vector<4x32xf32>
    tpu.vector_store %arg25[%c1_14, %c0_15], %10 {strides = array<i32>} : memref<20x32xf32, #tpu.memory_space<vmem>>, vector<4x32xf32>,
    %c5 = arith.constant 5 : index
    %c0_16 = arith.constant 0 : index
    %12 = vector.load %arg25[%c5, %c0_16] : memref<20x32xf32, #tpu.memory_space<vmem>>, vector<1x32xf32>
    tpu.vector_store %arg25[%c5, %c0_16], %6 {strides = array<i32>} : memref<20x32xf32, #tpu.memory_space<vmem>>, vector<1x32xf32>,
    %c4 = arith.constant 4 : index
    %c0_17 = arith.constant 0 : index
    %13 = vector.load %arg24[%c4, %c0_17] : memref<16x32xf32, #tpu.memory_space<vmem>>, vector<4x32xf32>
    %14 = arith.addf %13, %7 : vector<4x32xf32>
    %c6 = arith.constant 6 : index
    %c0_18 = arith.constant 0 : index
    %15 = vector.load %arg25[%c6, %c0_18] : memref<20x32xf32, #tpu.memory_space<vmem>>, vector<4x32xf32>
    tpu.vector_store %arg25[%c6, %c0_18], %14 {strides = array<i32>} : memref<20x32xf32, #tpu.memory_space<vmem>>, vector<4x32xf32>,
    %c10 = arith.constant 10 : index
    %c0_19 = arith.constant 0 : index
    %16 = vector.load %arg25[%c10, %c0_19] : memref<20x32xf32, #tpu.memory_space<vmem>>, vector<1x32xf32>
    tpu.vector_store %arg25[%c10, %c0_19], %6 {strides = array<i32>} : memref<20x32xf32, #tpu.memory_space<vmem>>, vector<1x32xf32>,
    %c8 = arith.constant 8 : index
    %c0_20 = arith.constant 0 : index
    %17 = vector.load %arg24[%c8, %c0_20] : memref<16x32xf32, #tpu.memory_space<vmem>>, vector<4x32xf32>
    %18 = arith.addf %17, %7 : vector<4x32xf32>
    %c11 = arith.constant 11 : index
    %c0_21 = arith.constant 0 : index
    %19 = vector.load %arg25[%c11, %c0_21] : memref<20x32xf32, #tpu.memory_space<vmem>>, vector<4x32xf32>
    tpu.vector_store %arg25[%c11, %c0_21], %18 {strides = array<i32>} : memref<20x32xf32, #tpu.memory_space<vmem>>, vector<4x32xf32>,
    %c15 = arith.constant 15 : index
    %c0_22 = arith.constant 0 : index
    %20 = vector.load %arg25[%c15, %c0_22] : memref<20x32xf32, #tpu.memory_space<vmem>>, vector<1x32xf32>
    tpu.vector_store %arg25[%c15, %c0_22], %6 {strides = array<i32>} : memref<20x32xf32, #tpu.memory_space<vmem>>, vector<1x32xf32>,
    %c12 = arith.constant 12 : index
    %c0_23 = arith.constant 0 : index
    %21 = vector.load %arg24[%c12, %c0_23] : memref<16x32xf32, #tpu.memory_space<vmem>>, vector<4x32xf32>
    %22 = arith.addf %21, %7 : vector<4x32xf32>
    %c16 = arith.constant 16 : index
    %c0_24 = arith.constant 0 : index
    %23 = vector.load %arg25[%c16, %c0_24] : memref<20x32xf32, #tpu.memory_space<vmem>>, vector<4x32xf32>
    tpu.vector_store %arg25[%c16, %c0_24], %22 {strides = array<i32>} : memref<20x32xf32, #tpu.memory_space<vmem>>, vector<4x32xf32>,
    %c0_25 = arith.constant 0 : index
    %c0_26 = arith.constant 0 : index
    %24 = vector.load %arg25[%c0_25, %c0_26] : memref<20x32xf32, #tpu.memory_space<vmem>>, vector<20x32xf32>
    %c0_27 = arith.constant 0 : index
    %c0_28 = arith.constant 0 : index
    %25 = vector.load %arg5[%c0_27, %c0_28] : memref<1x32xf32, #tpu.memory_space<vmem>>, vector<1x32xf32>
    %c0_29 = arith.constant 0 : index
    %c0_30 = arith.constant 0 : index
    %26 = vector.load %arg6[%c0_29, %c0_30] : memref<1x32xf32, #tpu.memory_space<vmem>>, vector<1x32xf32>
    %cst_31 = arith.constant dense<0.000000e+00> : vector<20xf32>
    %27 = vector.multi_reduction <add>, %24, %cst_31 [1] : vector<20x32xf32> to vector<20xf32>
    %28 = vector.shape_cast %27 : vector<20xf32> to vector<20x1xf32>
    %cst_32 = arith.constant 3.200000e+01 : f32
    %29 = vector.broadcast %cst_32 : f32 to vector<20x1xf32>
    %30 = arith.divf %28, %29 : vector<20x1xf32>
    %31 = vector.broadcast %30 : vector<20x1xf32> to vector<20x32xf32>
    %32 = arith.subf %24, %31 : vector<20x32xf32>
    %33 = arith.mulf %32, %32 : vector<20x32xf32>
    %cst_33 = arith.constant dense<0.000000e+00> : vector<20xf32>
    %34 = vector.multi_reduction <add>, %33, %cst_33 [1] : vector<20x32xf32> to vector<20xf32>
    %35 = vector.shape_cast %34 : vector<20xf32> to vector<20x1xf32>
    %cst_34 = arith.constant 3.200000e+01 : f32
    %36 = vector.broadcast %cst_34 : f32 to vector<20x1xf32>
    %37 = arith.divf %35, %36 : vector<20x1xf32>
    %38 = vector.broadcast %30 : vector<20x1xf32> to vector<20x32xf32>
    %39 = arith.subf %24, %38 : vector<20x32xf32>
    %cst_35 = arith.constant 9.99999974E-6 : f32
    %40 = vector.broadcast %cst_35 : f32 to vector<20x1xf32>
    %41 = arith.addf %37, %40 : vector<20x1xf32>
    %42 = math.rsqrt %41 : vector<20x1xf32>
    %43 = vector.broadcast %42 : vector<20x1xf32> to vector<20x32xf32>
    %44 = arith.mulf %39, %43 : vector<20x32xf32>
    %45 = vector.broadcast %25 : vector<1x32xf32> to vector<20x32xf32>
    %46 = arith.mulf %44, %45 : vector<20x32xf32>
    %47 = vector.broadcast %26 : vector<1x32xf32> to vector<20x32xf32>
    %48 = arith.addf %46, %47 : vector<20x32xf32>
    %c0_36 = arith.constant 0 : index
    %c0_37 = arith.constant 0 : index
    %49 = vector.load %arg25[%c0_36, %c0_37] : memref<20x32xf32, #tpu.memory_space<vmem>>, vector<20x32xf32>
    tpu.vector_store %arg25[%c0_36, %c0_37], %48 {strides = array<i32>} : memref<20x32xf32, #tpu.memory_space<vmem>>, vector<20x32xf32>,
    %c0_38 = arith.constant 0 : index
    %c0_39 = arith.constant 0 : index
    %50 = vector.load %arg1[%c0_38, %c0_39] : memref<20x20xf32, #tpu.memory_space<vmem>>, vector<20x20xf32>
    %c0_40 = arith.constant 0 : index
    %c0_41 = arith.constant 0 : index
    %51 = vector.load %arg25[%c0_40, %c0_41] : memref<20x32xf32, #tpu.memory_space<vmem>>, vector<20x32xf32>
    %c0_42 = arith.constant 0 : index
    %c0_43 = arith.constant 0 : index
    %c0_44 = arith.constant 0 : index
    %52 = vector.load %arg7[%c0_42, %c0_43, %c0_44] : memref<2x1x32xf32, #tpu.memory_space<vmem>>, vector<1x1x32xf32>
    %53 = vector.shape_cast %52 : vector<1x1x32xf32> to vector<1x32xf32>
    %c0_45 = arith.constant 0 : index
    %c0_46 = arith.constant 0 : index
    %c0_47 = arith.constant 0 : index
    %54 = vector.load %arg8[%c0_45, %c0_46, %c0_47] : memref<2x1x32xf32, #tpu.memory_space<vmem>>, vector<1x1x32xf32>
    %55 = vector.shape_cast %54 : vector<1x1x32xf32> to vector<1x32xf32>
    %cst_48 = arith.constant dense<0.000000e+00> : vector<20xf32>
    %56 = vector.multi_reduction <add>, %51, %cst_48 [1] : vector<20x32xf32> to vector<20xf32>
    %57 = vector.shape_cast %56 : vector<20xf32> to vector<20x1xf32>
    %cst_49 = arith.constant 3.200000e+01 : f32
    %58 = vector.broadcast %cst_49 : f32 to vector<20x1xf32>
    %59 = arith.divf %57, %58 : vector<20x1xf32>
    %60 = vector.broadcast %59 : vector<20x1xf32> to vector<20x32xf32>
    %61 = arith.subf %51, %60 : vector<20x32xf32>
    %62 = arith.mulf %61, %61 : vector<20x32xf32>
    %cst_50 = arith.constant dense<0.000000e+00> : vector<20xf32>
    %63 = vector.multi_reduction <add>, %62, %cst_50 [1] : vector<20x32xf32> to vector<20xf32>
    %64 = vector.shape_cast %63 : vector<20xf32> to vector<20x1xf32>
    %cst_51 = arith.constant 3.200000e+01 : f32
    %65 = vector.broadcast %cst_51 : f32 to vector<20x1xf32>
    %66 = arith.divf %64, %65 : vector<20x1xf32>
    %67 = vector.broadcast %59 : vector<20x1xf32> to vector<20x32xf32>
    %68 = arith.subf %51, %67 : vector<20x32xf32>
    %cst_52 = arith.constant 9.99999974E-6 : f32
    %69 = vector.broadcast %cst_52 : f32 to vector<20x1xf32>
    %70 = arith.addf %66, %69 : vector<20x1xf32>
    %71 = math.rsqrt %70 : vector<20x1xf32>
    %72 = vector.broadcast %71 : vector<20x1xf32> to vector<20x32xf32>
    %73 = arith.mulf %68, %72 : vector<20x32xf32>
    %74 = vector.broadcast %53 : vector<1x32xf32> to vector<20x32xf32>
    %75 = arith.mulf %73, %74 : vector<20x32xf32>
    %76 = vector.broadcast %55 : vector<1x32xf32> to vector<20x32xf32>
    %77 = arith.addf %75, %76 : vector<20x32xf32>
    %c0_53 = arith.constant 0 : index
    %c0_54 = arith.constant 0 : index
    %c0_55 = arith.constant 0 : index
    %78 = vector.load %arg9[%c0_53, %c0_54, %c0_55] : memref<2x32x96xf32, #tpu.memory_space<vmem>>, vector<1x32x96xf32>
    %79 = vector.shape_cast %78 : vector<1x32x96xf32> to vector<32x96xf32>
    %cst_56 = arith.constant dense<0.000000e+00> : vector<20x96xf32>
    %80 = tpu.matmul %77, %79, %cst_56 {dimension_numbers = #tpu.dot_dimension_numbers<[1], [0], [0], [1], [0, 0, 1, 1], [], []>} : vector<20x32xf32>, vector<32x96xf32>, vector<20x96xf32> -> vector<20x96xf32>
    %c0_57 = arith.constant 0 : index
    %c0_58 = arith.constant 0 : index
    %c0_59 = arith.constant 0 : index
    %81 = vector.load %arg10[%c0_57, %c0_58, %c0_59] : memref<2x1x96xf32, #tpu.memory_space<vmem>>, vector<1x1x96xf32>
    %82 = vector.shape_cast %81 : vector<1x1x96xf32> to vector<1x96xf32>
    %83 = vector.broadcast %82 : vector<1x96xf32> to vector<20x96xf32>
    %84 = arith.addf %80, %83 : vector<20x96xf32>
    %c0_60 = arith.constant 0 : index
    %c0_61 = arith.constant 0 : index
    %85 = vector.load %arg26[%c0_60, %c0_61] : memref<20x96xf32, #tpu.memory_space<vmem>>, vector<20x96xf32>
    tpu.vector_store %arg26[%c0_60, %c0_61], %84 {strides = array<i32>} : memref<20x96xf32, #tpu.memory_space<vmem>>, vector<20x96xf32>,
    %c0_62 = arith.constant 0 : index
    %c0_63 = arith.constant 0 : index
    %86 = vector.load %arg26[%c0_62, %c0_63] : memref<20x96xf32, #tpu.memory_space<vmem>>, vector<20x8xf32>
    %c0_64 = arith.constant 0 : index
    %c32 = arith.constant 32 : index
    %87 = vector.load %arg26[%c0_64, %c32] : memref<20x96xf32, #tpu.memory_space<vmem>>, vector<20x8xf32>
    %c0_65 = arith.constant 0 : index
    %c64 = arith.constant 64 : index
    %88 = vector.load %arg26[%c0_65, %c64] : memref<20x96xf32, #tpu.memory_space<vmem>>, vector<20x8xf32>
    %cst_66 = arith.constant dense<0.000000e+00> : vector<20x20xf32>
    %89 = tpu.matmul %86, %87, %cst_66 {dimension_numbers = #tpu.dot_dimension_numbers<[1], [1], [0], [0], [0, 0, 1, 0], [], []>} : vector<20x8xf32>, vector<20x8xf32>, vector<20x20xf32> -> vector<20x20xf32>
    %cst_67 = arith.constant 0.353553385 : f32
    %90 = vector.broadcast %cst_67 : f32 to vector<20x20xf32>
    %91 = arith.mulf %89, %90 : vector<20x20xf32>
    %92 = arith.addf %91, %50 : vector<20x20xf32>
    %cst_68 = arith.constant dense<0xFF800000> : vector<20xf32>
    %93 = vector.multi_reduction <maximumf>, %92, %cst_68 [1] : vector<20x20xf32> to vector<20xf32>
    %94 = vector.shape_cast %93 : vector<20xf32> to vector<20x1xf32>
    %95 = vector.broadcast %94 : vector<20x1xf32> to vector<20x20xf32>
    %96 = arith.subf %92, %95 : vector<20x20xf32>
    %97 = math.exp %96 : vector<20x20xf32>
    %cst_69 = arith.constant dense<0.000000e+00> : vector<20xf32>
    %98 = vector.multi_reduction <add>, %97, %cst_69 [1] : vector<20x20xf32> to vector<20xf32>
    %99 = vector.shape_cast %98 : vector<20xf32> to vector<20x1xf32>
    %100 = tpu.reciprocal %99 {approx = true} : vector<20x1xf32> -> vector<20x1xf32>
    %101 = vector.broadcast %100 : vector<20x1xf32> to vector<20x20xf32>
    %102 = arith.mulf %97, %101 : vector<20x20xf32>
    %cst_70 = arith.constant dense<0.000000e+00> : vector<20x8xf32>
    %103 = tpu.matmul %102, %88, %cst_70 {dimension_numbers = #tpu.dot_dimension_numbers<[1], [0], [0], [1], [0, 0, 1, 1], [], []>} : vector<20x20xf32>, vector<20x8xf32>, vector<20x8xf32> -> vector<20x8xf32>
    %c0_71 = arith.constant 0 : index
    %c0_72 = arith.constant 0 : index
    %104 = vector.load %arg27[%c0_71, %c0_72] : memref<20x32xf32, #tpu.memory_space<vmem>>, vector<20x8xf32>
    tpu.vector_store %arg27[%c0_71, %c0_72], %103 {strides = array<i32>} : memref<20x32xf32, #tpu.memory_space<vmem>>, vector<20x8xf32>,
    %c0_73 = arith.constant 0 : index
    %c8_74 = arith.constant 8 : index
    %105 = vector.load %arg26[%c0_73, %c8_74] : memref<20x96xf32, #tpu.memory_space<vmem>>, vector<20x8xf32>
    %c0_75 = arith.constant 0 : index
    %c40 = arith.constant 40 : index
    %106 = vector.load %arg26[%c0_75, %c40] : memref<20x96xf32, #tpu.memory_space<vmem>>, vector<20x8xf32>
    %c0_76 = arith.constant 0 : index
    %c72 = arith.constant 72 : index
    %107 = vector.load %arg26[%c0_76, %c72] : memref<20x96xf32, #tpu.memory_space<vmem>>, vector<20x8xf32>
    %cst_77 = arith.constant dense<0.000000e+00> : vector<20x20xf32>
    %108 = tpu.matmul %105, %106, %cst_77 {dimension_numbers = #tpu.dot_dimension_numbers<[1], [1], [0], [0], [0, 0, 1, 0], [], []>} : vector<20x8xf32>, vector<20x8xf32>, vector<20x20xf32> -> vector<20x20xf32>
    %cst_78 = arith.constant 0.353553385 : f32
    %109 = vector.broadcast %cst_78 : f32 to vector<20x20xf32>
    %110 = arith.mulf %108, %109 : vector<20x20xf32>
    %111 = arith.addf %110, %50 : vector<20x20xf32>
    %cst_79 = arith.constant dense<0xFF800000> : vector<20xf32>
    %112 = vector.multi_reduction <maximumf>, %111, %cst_79 [1] : vector<20x20xf32> to vector<20xf32>
    %113 = vector.shape_cast %112 : vector<20xf32> to vector<20x1xf32>
    %114 = vector.broadcast %113 : vector<20x1xf32> to vector<20x20xf32>
    %115 = arith.subf %111, %114 : vector<20x20xf32>
    %116 = math.exp %115 : vector<20x20xf32>
    %cst_80 = arith.constant dense<0.000000e+00> : vector<20xf32>
    %117 = vector.multi_reduction <add>, %116, %cst_80 [1] : vector<20x20xf32> to vector<20xf32>
    %118 = vector.shape_cast %117 : vector<20xf32> to vector<20x1xf32>
    %119 = tpu.reciprocal %118 {approx = true} : vector<20x1xf32> -> vector<20x1xf32>
    %120 = vector.broadcast %119 : vector<20x1xf32> to vector<20x20xf32>
    %121 = arith.mulf %116, %120 : vector<20x20xf32>
    %cst_81 = arith.constant dense<0.000000e+00> : vector<20x8xf32>
    %122 = tpu.matmul %121, %107, %cst_81 {dimension_numbers = #tpu.dot_dimension_numbers<[1], [0], [0], [1], [0, 0, 1, 1], [], []>} : vector<20x20xf32>, vector<20x8xf32>, vector<20x8xf32> -> vector<20x8xf32>
    %c0_82 = arith.constant 0 : index
    %c8_83 = arith.constant 8 : index
    %123 = vector.load %arg27[%c0_82, %c8_83] : memref<20x32xf32, #tpu.memory_space<vmem>>, vector<20x8xf32>
    tpu.vector_store %arg27[%c0_82, %c8_83], %122 {strides = array<i32>} : memref<20x32xf32, #tpu.memory_space<vmem>>, vector<20x8xf32>,
    %c0_84 = arith.constant 0 : index
    %c16_85 = arith.constant 16 : index
    %124 = vector.load %arg26[%c0_84, %c16_85] : memref<20x96xf32, #tpu.memory_space<vmem>>, vector<20x8xf32>
    %c0_86 = arith.constant 0 : index
    %c48 = arith.constant 48 : index
    %125 = vector.load %arg26[%c0_86, %c48] : memref<20x96xf32, #tpu.memory_space<vmem>>, vector<20x8xf32>
    %c0_87 = arith.constant 0 : index
    %c80 = arith.constant 80 : index
    %126 = vector.load %arg26[%c0_87, %c80] : memref<20x96xf32, #tpu.memory_space<vmem>>, vector<20x8xf32>
    %cst_88 = arith.constant dense<0.000000e+00> : vector<20x20xf32>
    %127 = tpu.matmul %124, %125, %cst_88 {dimension_numbers = #tpu.dot_dimension_numbers<[1], [1], [0], [0], [0, 0, 1, 0], [], []>} : vector<20x8xf32>, vector<20x8xf32>, vector<20x20xf32> -> vector<20x20xf32>
    %cst_89 = arith.constant 0.353553385 : f32
    %128 = vector.broadcast %cst_89 : f32 to vector<20x20xf32>
    %129 = arith.mulf %127, %128 : vector<20x20xf32>
    %130 = arith.addf %129, %50 : vector<20x20xf32>
    %cst_90 = arith.constant dense<0xFF800000> : vector<20xf32>
    %131 = vector.multi_reduction <maximumf>, %130, %cst_90 [1] : vector<20x20xf32> to vector<20xf32>
    %132 = vector.shape_cast %131 : vector<20xf32> to vector<20x1xf32>
    %133 = vector.broadcast %132 : vector<20x1xf32> to vector<20x20xf32>
    %134 = arith.subf %130, %133 : vector<20x20xf32>
    %135 = math.exp %134 : vector<20x20xf32>
    %cst_91 = arith.constant dense<0.000000e+00> : vector<20xf32>
    %136 = vector.multi_reduction <add>, %135, %cst_91 [1] : vector<20x20xf32> to vector<20xf32>
    %137 = vector.shape_cast %136 : vector<20xf32> to vector<20x1xf32>
    %138 = tpu.reciprocal %137 {approx = true} : vector<20x1xf32> -> vector<20x1xf32>
    %139 = vector.broadcast %138 : vector<20x1xf32> to vector<20x20xf32>
    %140 = arith.mulf %135, %139 : vector<20x20xf32>
    %cst_92 = arith.constant dense<0.000000e+00> : vector<20x8xf32>
    %141 = tpu.matmul %140, %126, %cst_92 {dimension_numbers = #tpu.dot_dimension_numbers<[1], [0], [0], [1], [0, 0, 1, 1], [], []>} : vector<20x20xf32>, vector<20x8xf32>, vector<20x8xf32> -> vector<20x8xf32>
    %c0_93 = arith.constant 0 : index
    %c16_94 = arith.constant 16 : index
    %142 = vector.load %arg27[%c0_93, %c16_94] : memref<20x32xf32, #tpu.memory_space<vmem>>, vector<20x8xf32>
    tpu.vector_store %arg27[%c0_93, %c16_94], %141 {strides = array<i32>} : memref<20x32xf32, #tpu.memory_space<vmem>>, vector<20x8xf32>,
    %c0_95 = arith.constant 0 : index
    %c24 = arith.constant 24 : index
    %143 = vector.load %arg26[%c0_95, %c24] : memref<20x96xf32, #tpu.memory_space<vmem>>, vector<20x8xf32>
    %c0_96 = arith.constant 0 : index
    %c56 = arith.constant 56 : index
    %144 = vector.load %arg26[%c0_96, %c56] : memref<20x96xf32, #tpu.memory_space<vmem>>, vector<20x8xf32>
    %c0_97 = arith.constant 0 : index
    %c88 = arith.constant 88 : index
    %145 = vector.load %arg26[%c0_97, %c88] : memref<20x96xf32, #tpu.memory_space<vmem>>, vector<20x8xf32>
    %cst_98 = arith.constant dense<0.000000e+00> : vector<20x20xf32>
    %146 = tpu.matmul %143, %144, %cst_98 {dimension_numbers = #tpu.dot_dimension_numbers<[1], [1], [0], [0], [0, 0, 1, 0], [], []>} : vector<20x8xf32>, vector<20x8xf32>, vector<20x20xf32> -> vector<20x20xf32>
    %cst_99 = arith.constant 0.353553385 : f32
    %147 = vector.broadcast %cst_99 : f32 to vector<20x20xf32>
    %148 = arith.mulf %146, %147 : vector<20x20xf32>
    %149 = arith.addf %148, %50 : vector<20x20xf32>
    %cst_100 = arith.constant dense<0xFF800000> : vector<20xf32>
    %150 = vector.multi_reduction <maximumf>, %149, %cst_100 [1] : vector<20x20xf32> to vector<20xf32>
    %151 = vector.shape_cast %150 : vector<20xf32> to vector<20x1xf32>
    %152 = vector.broadcast %151 : vector<20x1xf32> to vector<20x20xf32>
    %153 = arith.subf %149, %152 : vector<20x20xf32>
    %154 = math.exp %153 : vector<20x20xf32>
    %cst_101 = arith.constant dense<0.000000e+00> : vector<20xf32>
    %155 = vector.multi_reduction <add>, %154, %cst_101 [1] : vector<20x20xf32> to vector<20xf32>
    %156 = vector.shape_cast %155 : vector<20xf32> to vector<20x1xf32>
    %157 = tpu.reciprocal %156 {approx = true} : vector<20x1xf32> -> vector<20x1xf32>
    %158 = vector.broadcast %157 : vector<20x1xf32> to vector<20x20xf32>
    %159 = arith.mulf %154, %158 : vector<20x20xf32>
    %cst_102 = arith.constant dense<0.000000e+00> : vector<20x8xf32>
    %160 = tpu.matmul %159, %145, %cst_102 {dimension_numbers = #tpu.dot_dimension_numbers<[1], [0], [0], [1], [0, 0, 1, 1], [], []>} : vector<20x20xf32>, vector<20x8xf32>, vector<20x8xf32> -> vector<20x8xf32>
    %c0_103 = arith.constant 0 : index
    %c24_104 = arith.constant 24 : index
    %161 = vector.load %arg27[%c0_103, %c24_104] : memref<20x32xf32, #tpu.memory_space<vmem>>, vector<20x8xf32>
    tpu.vector_store %arg27[%c0_103, %c24_104], %160 {strides = array<i32>} : memref<20x32xf32, #tpu.memory_space<vmem>>, vector<20x8xf32>,
    %c0_105 = arith.constant 0 : index
    %c0_106 = arith.constant 0 : index
    %162 = vector.load %arg27[%c0_105, %c0_106] : memref<20x32xf32, #tpu.memory_space<vmem>>, vector<20x32xf32>
    %c0_107 = arith.constant 0 : index
    %c0_108 = arith.constant 0 : index
    %c0_109 = arith.constant 0 : index
    %163 = vector.load %arg11[%c0_107, %c0_108, %c0_109] : memref<2x32x32xf32, #tpu.memory_space<vmem>>, vector<1x32x32xf32>
    %164 = vector.shape_cast %163 : vector<1x32x32xf32> to vector<32x32xf32>
    %cst_110 = arith.constant dense<0.000000e+00> : vector<20x32xf32>
    %165 = tpu.matmul %162, %164, %cst_110 {dimension_numbers = #tpu.dot_dimension_numbers<[1], [0], [0], [1], [0, 0, 1, 1], [], []>} : vector<20x32xf32>, vector<32x32xf32>, vector<20x32xf32> -> vector<20x32xf32>
    %c0_111 = arith.constant 0 : index
    %c0_112 = arith.constant 0 : index
    %c0_113 = arith.constant 0 : index
    %166 = vector.load %arg12[%c0_111, %c0_112, %c0_113] : memref<2x1x32xf32, #tpu.memory_space<vmem>>, vector<1x1x32xf32>
    %167 = vector.shape_cast %166 : vector<1x1x32xf32> to vector<1x32xf32>
    %168 = vector.broadcast %167 : vector<1x32xf32> to vector<20x32xf32>
    %169 = arith.addf %165, %168 : vector<20x32xf32>
    %170 = arith.addf %51, %169 : vector<20x32xf32>
    %c0_114 = arith.constant 0 : index
    %c0_115 = arith.constant 0 : index
    %c0_116 = arith.constant 0 : index
    %171 = vector.load %arg13[%c0_114, %c0_115, %c0_116] : memref<2x1x32xf32, #tpu.memory_space<vmem>>, vector<1x1x32xf32>
    %172 = vector.shape_cast %171 : vector<1x1x32xf32> to vector<1x32xf32>
    %c0_117 = arith.constant 0 : index
    %c0_118 = arith.constant 0 : index
    %c0_119 = arith.constant 0 : index
    %173 = vector.load %arg14[%c0_117, %c0_118, %c0_119] : memref<2x1x32xf32, #tpu.memory_space<vmem>>, vector<1x1x32xf32>
    %174 = vector.shape_cast %173 : vector<1x1x32xf32> to vector<1x32xf32>
    %cst_120 = arith.constant dense<0.000000e+00> : vector<20xf32>
    %175 = vector.multi_reduction <add>, %170, %cst_120 [1] : vector<20x32xf32> to vector<20xf32>
    %176 = vector.shape_cast %175 : vector<20xf32> to vector<20x1xf32>
    %cst_121 = arith.constant 3.200000e+01 : f32
    %177 = vector.broadcast %cst_121 : f32 to vector<20x1xf32>
    %178 = arith.divf %176, %177 : vector<20x1xf32>
    %179 = vector.broadcast %178 : vector<20x1xf32> to vector<20x32xf32>
    %180 = arith.subf %170, %179 : vector<20x32xf32>
    %181 = arith.mulf %180, %180 : vector<20x32xf32>
    %cst_122 = arith.constant dense<0.000000e+00> : vector<20xf32>
    %182 = vector.multi_reduction <add>, %181, %cst_122 [1] : vector<20x32xf32> to vector<20xf32>
    %183 = vector.shape_cast %182 : vector<20xf32> to vector<20x1xf32>
    %cst_123 = arith.constant 3.200000e+01 : f32
    %184 = vector.broadcast %cst_123 : f32 to vector<20x1xf32>
    %185 = arith.divf %183, %184 : vector<20x1xf32>
    %186 = vector.broadcast %178 : vector<20x1xf32> to vector<20x32xf32>
    %187 = arith.subf %170, %186 : vector<20x32xf32>
    %cst_124 = arith.constant 9.99999974E-6 : f32
    %188 = vector.broadcast %cst_124 : f32 to vector<20x1xf32>
    %189 = arith.addf %185, %188 : vector<20x1xf32>
    %190 = math.rsqrt %189 : vector<20x1xf32>
    %191 = vector.broadcast %190 : vector<20x1xf32> to vector<20x32xf32>
    %192 = arith.mulf %187, %191 : vector<20x32xf32>
    %193 = vector.broadcast %172 : vector<1x32xf32> to vector<20x32xf32>
    %194 = arith.mulf %192, %193 : vector<20x32xf32>
    %195 = vector.broadcast %174 : vector<1x32xf32> to vector<20x32xf32>
    %196 = arith.addf %194, %195 : vector<20x32xf32>
    %c0_125 = arith.constant 0 : index
    %c0_126 = arith.constant 0 : index
    %c0_127 = arith.constant 0 : index
    %197 = vector.load %arg15[%c0_125, %c0_126, %c0_127] : memref<2x32x128xf32, #tpu.memory_space<vmem>>, vector<1x32x128xf32>
    %198 = vector.shape_cast %197 : vector<1x32x128xf32> to vector<32x128xf32>
    %cst_128 = arith.constant dense<0.000000e+00> : vector<20x128xf32>
    %199 = tpu.matmul %196, %198, %cst_128 {dimension_numbers = #tpu.dot_dimension_numbers<[1], [0], [0], [1], [0, 0, 1, 1], [], []>} : vector<20x32xf32>, vector<32x128xf32>, vector<20x128xf32> -> vector<20x128xf32>
    %c0_129 = arith.constant 0 : index
    %c0_130 = arith.constant 0 : index
    %c0_131 = arith.constant 0 : index
    %200 = vector.load %arg16[%c0_129, %c0_130, %c0_131] : memref<2x1x128xf32, #tpu.memory_space<vmem>>, vector<1x1x128xf32>
    %201 = vector.shape_cast %200 : vector<1x1x128xf32> to vector<1x128xf32>
    %202 = vector.broadcast %201 : vector<1x128xf32> to vector<20x128xf32>
    %203 = arith.addf %199, %202 : vector<20x128xf32>
    %204 = arith.mulf %203, %203 : vector<20x128xf32>
    %205 = arith.mulf %203, %204 : vector<20x128xf32>
    %cst_132 = arith.constant 4.471500e-02 : f32
    %206 = vector.broadcast %cst_132 : f32 to vector<20x128xf32>
    %207 = arith.mulf %206, %205 : vector<20x128xf32>
    %208 = arith.addf %203, %207 : vector<20x128xf32>
    %cst_133 = arith.constant 0.797884583 : f32
    %209 = vector.broadcast %cst_133 : f32 to vector<20x128xf32>
    %210 = arith.mulf %209, %208 : vector<20x128xf32>
    %211 = math.tanh %210 : vector<20x128xf32>
    %cst_134 = arith.constant 1.000000e+00 : f32
    %212 = vector.broadcast %cst_134 : f32 to vector<20x128xf32>
    %213 = arith.addf %212, %211 : vector<20x128xf32>
    %cst_135 = arith.constant 5.000000e-01 : f32
    %214 = vector.broadcast %cst_135 : f32 to vector<20x128xf32>
    %215 = arith.mulf %214, %213 : vector<20x128xf32>
    %216 = arith.mulf %203, %215 : vector<20x128xf32>
    %c0_136 = arith.constant 0 : index
    %c0_137 = arith.constant 0 : index
    %c0_138 = arith.constant 0 : index
    %217 = vector.load %arg17[%c0_136, %c0_137, %c0_138] : memref<2x128x32xf32, #tpu.memory_space<vmem>>, vector<1x128x32xf32>
    %218 = vector.shape_cast %217 : vector<1x128x32xf32> to vector<128x32xf32>
    %cst_139 = arith.constant dense<0.000000e+00> : vector<20x32xf32>
    %219 = tpu.matmul %216, %218, %cst_139 {dimension_numbers = #tpu.dot_dimension_numbers<[1], [0], [0], [1], [0, 0, 1, 1], [], []>} : vector<20x128xf32>, vector<128x32xf32>, vector<20x32xf32> -> vector<20x32xf32>
    %c0_140 = arith.constant 0 : index
    %c0_141 = arith.constant 0 : index
    %c0_142 = arith.constant 0 : index
    %220 = vector.load %arg18[%c0_140, %c0_141, %c0_142] : memref<2x1x32xf32, #tpu.memory_space<vmem>>, vector<1x1x32xf32>
    %221 = vector.shape_cast %220 : vector<1x1x32xf32> to vector<1x32xf32>
    %222 = vector.broadcast %221 : vector<1x32xf32> to vector<20x32xf32>
    %223 = arith.addf %219, %222 : vector<20x32xf32>
    %224 = arith.addf %170, %223 : vector<20x32xf32>
    %c0_143 = arith.constant 0 : index
    %c0_144 = arith.constant 0 : index
    %225 = vector.load %arg25[%c0_143, %c0_144] : memref<20x32xf32, #tpu.memory_space<vmem>>, vector<20x32xf32>
    tpu.vector_store %arg25[%c0_143, %c0_144], %224 {strides = array<i32>} : memref<20x32xf32, #tpu.memory_space<vmem>>, vector<20x32xf32>,
    %c0_145 = arith.constant 0 : index
    %c0_146 = arith.constant 0 : index
    %226 = vector.load %arg25[%c0_145, %c0_146] : memref<20x32xf32, #tpu.memory_space<vmem>>, vector<20x32xf32>
    %c1_147 = arith.constant 1 : index
    %c0_148 = arith.constant 0 : index
    %c0_149 = arith.constant 0 : index
    %227 = vector.load %arg7[%c1_147, %c0_148, %c0_149] : memref<2x1x32xf32, #tpu.memory_space<vmem>>, vector<1x1x32xf32>
    %228 = vector.shape_cast %227 : vector<1x1x32xf32> to vector<1x32xf32>
    %c1_150 = arith.constant 1 : index
    %c0_151 = arith.constant 0 : index
    %c0_152 = arith.constant 0 : index
    %229 = vector.load %arg8[%c1_150, %c0_151, %c0_152] : memref<2x1x32xf32, #tpu.memory_space<vmem>>, vector<1x1x32xf32>
    %230 = vector.shape_cast %229 : vector<1x1x32xf32> to vector<1x32xf32>
    %cst_153 = arith.constant dense<0.000000e+00> : vector<20xf32>
    %231 = vector.multi_reduction <add>, %226, %cst_153 [1] : vector<20x32xf32> to vector<20xf32>
    %232 = vector.shape_cast %231 : vector<20xf32> to vector<20x1xf32>
    %cst_154 = arith.constant 3.200000e+01 : f32
    %233 = vector.broadcast %cst_154 : f32 to vector<20x1xf32>
    %234 = arith.divf %232, %233 : vector<20x1xf32>
    %235 = vector.broadcast %234 : vector<20x1xf32> to vector<20x32xf32>
    %236 = arith.subf %226, %235 : vector<20x32xf32>
    %237 = arith.mulf %236, %236 : vector<20x32xf32>
    %cst_155 = arith.constant dense<0.000000e+00> : vector<20xf32>
    %238 = vector.multi_reduction <add>, %237, %cst_155 [1] : vector<20x32xf32> to vector<20xf32>
    %239 = vector.shape_cast %238 : vector<20xf32> to vector<20x1xf32>
    %cst_156 = arith.constant 3.200000e+01 : f32
    %240 = vector.broadcast %cst_156 : f32 to vector<20x1xf32>
    %241 = arith.divf %239, %240 : vector<20x1xf32>
    %242 = vector.broadcast %234 : vector<20x1xf32> to vector<20x32xf32>
    %243 = arith.subf %226, %242 : vector<20x32xf32>
    %cst_157 = arith.constant 9.99999974E-6 : f32
    %244 = vector.broadcast %cst_157 : f32 to vector<20x1xf32>
    %245 = arith.addf %241, %244 : vector<20x1xf32>
    %246 = math.rsqrt %245 : vector<20x1xf32>
    %247 = vector.broadcast %246 : vector<20x1xf32> to vector<20x32xf32>
    %248 = arith.mulf %243, %247 : vector<20x32xf32>
    %249 = vector.broadcast %228 : vector<1x32xf32> to vector<20x32xf32>
    %250 = arith.mulf %248, %249 : vector<20x32xf32>
    %251 = vector.broadcast %230 : vector<1x32xf32> to vector<20x32xf32>
    %252 = arith.addf %250, %251 : vector<20x32xf32>
    %c1_158 = arith.constant 1 : index
    %c0_159 = arith.constant 0 : index
    %c0_160 = arith.constant 0 : index
    %253 = vector.load %arg9[%c1_158, %c0_159, %c0_160] : memref<2x32x96xf32, #tpu.memory_space<vmem>>, vector<1x32x96xf32>
    %254 = vector.shape_cast %253 : vector<1x32x96xf32> to vector<32x96xf32>
    %cst_161 = arith.constant dense<0.000000e+00> : vector<20x96xf32>
    %255 = tpu.matmul %252, %254, %cst_161 {dimension_numbers = #tpu.dot_dimension_numbers<[1], [0], [0], [1], [0, 0, 1, 1], [], []>} : vector<20x32xf32>, vector<32x96xf32>, vector<20x96xf32> -> vector<20x96xf32>
    %c1_162 = arith.constant 1 : index
    %c0_163 = arith.constant 0 : index
    %c0_164 = arith.constant 0 : index
    %256 = vector.load %arg10[%c1_162, %c0_163, %c0_164] : memref<2x1x96xf32, #tpu.memory_space<vmem>>, vector<1x1x96xf32>
    %257 = vector.shape_cast %256 : vector<1x1x96xf32> to vector<1x96xf32>
    %258 = vector.broadcast %257 : vector<1x96xf32> to vector<20x96xf32>
    %259 = arith.addf %255, %258 : vector<20x96xf32>
    %c0_165 = arith.constant 0 : index
    %c0_166 = arith.constant 0 : index
    %260 = vector.load %arg26[%c0_165, %c0_166] : memref<20x96xf32, #tpu.memory_space<vmem>>, vector<20x96xf32>
    tpu.vector_store %arg26[%c0_165, %c0_166], %259 {strides = array<i32>} : memref<20x96xf32, #tpu.memory_space<vmem>>, vector<20x96xf32>,
    %c0_167 = arith.constant 0 : index
    %c0_168 = arith.constant 0 : index
    %261 = vector.load %arg26[%c0_167, %c0_168] : memref<20x96xf32, #tpu.memory_space<vmem>>, vector<20x8xf32>
    %c0_169 = arith.constant 0 : index
    %c32_170 = arith.constant 32 : index
    %262 = vector.load %arg26[%c0_169, %c32_170] : memref<20x96xf32, #tpu.memory_space<vmem>>, vector<20x8xf32>
    %c0_171 = arith.constant 0 : index
    %c64_172 = arith.constant 64 : index
    %263 = vector.load %arg26[%c0_171, %c64_172] : memref<20x96xf32, #tpu.memory_space<vmem>>, vector<20x8xf32>
    %cst_173 = arith.constant dense<0.000000e+00> : vector<20x20xf32>
    %264 = tpu.matmul %261, %262, %cst_173 {dimension_numbers = #tpu.dot_dimension_numbers<[1], [1], [0], [0], [0, 0, 1, 0], [], []>} : vector<20x8xf32>, vector<20x8xf32>, vector<20x20xf32> -> vector<20x20xf32>
    %cst_174 = arith.constant 0.353553385 : f32
    %265 = vector.broadcast %cst_174 : f32 to vector<20x20xf32>
    %266 = arith.mulf %264, %265 : vector<20x20xf32>
    %267 = arith.addf %266, %50 : vector<20x20xf32>
    %cst_175 = arith.constant dense<0xFF800000> : vector<20xf32>
    %268 = vector.multi_reduction <maximumf>, %267, %cst_175 [1] : vector<20x20xf32> to vector<20xf32>
    %269 = vector.shape_cast %268 : vector<20xf32> to vector<20x1xf32>
    %270 = vector.broadcast %269 : vector<20x1xf32> to vector<20x20xf32>
    %271 = arith.subf %267, %270 : vector<20x20xf32>
    %272 = math.exp %271 : vector<20x20xf32>
    %cst_176 = arith.constant dense<0.000000e+00> : vector<20xf32>
    %273 = vector.multi_reduction <add>, %272, %cst_176 [1] : vector<20x20xf32> to vector<20xf32>
    %274 = vector.shape_cast %273 : vector<20xf32> to vector<20x1xf32>
    %275 = tpu.reciprocal %274 {approx = true} : vector<20x1xf32> -> vector<20x1xf32>
    %276 = vector.broadcast %275 : vector<20x1xf32> to vector<20x20xf32>
    %277 = arith.mulf %272, %276 : vector<20x20xf32>
    %cst_177 = arith.constant dense<0.000000e+00> : vector<20x8xf32>
    %278 = tpu.matmul %277, %263, %cst_177 {dimension_numbers = #tpu.dot_dimension_numbers<[1], [0], [0], [1], [0, 0, 1, 1], [], []>} : vector<20x20xf32>, vector<20x8xf32>, vector<20x8xf32> -> vector<20x8xf32>
    %c0_178 = arith.constant 0 : index
    %c0_179 = arith.constant 0 : index
    %279 = vector.load %arg27[%c0_178, %c0_179] : memref<20x32xf32, #tpu.memory_space<vmem>>, vector<20x8xf32>
    tpu.vector_store %arg27[%c0_178, %c0_179], %278 {strides = array<i32>} : memref<20x32xf32, #tpu.memory_space<vmem>>, vector<20x8xf32>,
    %c0_180 = arith.constant 0 : index
    %c8_181 = arith.constant 8 : index
    %280 = vector.load %arg26[%c0_180, %c8_181] : memref<20x96xf32, #tpu.memory_space<vmem>>, vector<20x8xf32>
    %c0_182 = arith.constant 0 : index
    %c40_183 = arith.constant 40 : index
    %281 = vector.load %arg26[%c0_182, %c40_183] : memref<20x96xf32, #tpu.memory_space<vmem>>, vector<20x8xf32>
    %c0_184 = arith.constant 0 : index
    %c72_185 = arith.constant 72 : index
    %282 = vector.load %arg26[%c0_184, %c72_185] : memref<20x96xf32, #tpu.memory_space<vmem>>, vector<20x8xf32>
    %cst_186 = arith.constant dense<0.000000e+00> : vector<20x20xf32>
    %283 = tpu.matmul %280, %281, %cst_186 {dimension_numbers = #tpu.dot_dimension_numbers<[1], [1], [0], [0], [0, 0, 1, 0], [], []>} : vector<20x8xf32>, vector<20x8xf32>, vector<20x20xf32> -> vector<20x20xf32>
    %cst_187 = arith.constant 0.353553385 : f32
    %284 = vector.broadcast %cst_187 : f32 to vector<20x20xf32>
    %285 = arith.mulf %283, %284 : vector<20x20xf32>
    %286 = arith.addf %285, %50 : vector<20x20xf32>
    %cst_188 = arith.constant dense<0xFF800000> : vector<20xf32>
    %287 = vector.multi_reduction <maximumf>, %286, %cst_188 [1] : vector<20x20xf32> to vector<20xf32>
    %288 = vector.shape_cast %287 : vector<20xf32> to vector<20x1xf32>
    %289 = vector.broadcast %288 : vector<20x1xf32> to vector<20x20xf32>
    %290 = arith.subf %286, %289 : vector<20x20xf32>
    %291 = math.exp %290 : vector<20x20xf32>
    %cst_189 = arith.constant dense<0.000000e+00> : vector<20xf32>
    %292 = vector.multi_reduction <add>, %291, %cst_189 [1] : vector<20x20xf32> to vector<20xf32>
    %293 = vector.shape_cast %292 : vector<20xf32> to vector<20x1xf32>
    %294 = tpu.reciprocal %293 {approx = true} : vector<20x1xf32> -> vector<20x1xf32>
    %295 = vector.broadcast %294 : vector<20x1xf32> to vector<20x20xf32>
    %296 = arith.mulf %291, %295 : vector<20x20xf32>
    %cst_190 = arith.constant dense<0.000000e+00> : vector<20x8xf32>
    %297 = tpu.matmul %296, %282, %cst_190 {dimension_numbers = #tpu.dot_dimension_numbers<[1], [0], [0], [1], [0, 0, 1, 1], [], []>} : vector<20x20xf32>, vector<20x8xf32>, vector<20x8xf32> -> vector<20x8xf32>
    %c0_191 = arith.constant 0 : index
    %c8_192 = arith.constant 8 : index
    %298 = vector.load %arg27[%c0_191, %c8_192] : memref<20x32xf32, #tpu.memory_space<vmem>>, vector<20x8xf32>
    tpu.vector_store %arg27[%c0_191, %c8_192], %297 {strides = array<i32>} : memref<20x32xf32, #tpu.memory_space<vmem>>, vector<20x8xf32>,
    %c0_193 = arith.constant 0 : index
    %c16_194 = arith.constant 16 : index
    %299 = vector.load %arg26[%c0_193, %c16_194] : memref<20x96xf32, #tpu.memory_space<vmem>>, vector<20x8xf32>
    %c0_195 = arith.constant 0 : index
    %c48_196 = arith.constant 48 : index
    %300 = vector.load %arg26[%c0_195, %c48_196] : memref<20x96xf32, #tpu.memory_space<vmem>>, vector<20x8xf32>
    %c0_197 = arith.constant 0 : index
    %c80_198 = arith.constant 80 : index
    %301 = vector.load %arg26[%c0_197, %c80_198] : memref<20x96xf32, #tpu.memory_space<vmem>>, vector<20x8xf32>
    %cst_199 = arith.constant dense<0.000000e+00> : vector<20x20xf32>
    %302 = tpu.matmul %299, %300, %cst_199 {dimension_numbers = #tpu.dot_dimension_numbers<[1], [1], [0], [0], [0, 0, 1, 0], [], []>} : vector<20x8xf32>, vector<20x8xf32>, vector<20x20xf32> -> vector<20x20xf32>
    %cst_200 = arith.constant 0.353553385 : f32
    %303 = vector.broadcast %cst_200 : f32 to vector<20x20xf32>
    %304 = arith.mulf %302, %303 : vector<20x20xf32>
    %305 = arith.addf %304, %50 : vector<20x20xf32>
    %cst_201 = arith.constant dense<0xFF800000> : vector<20xf32>
    %306 = vector.multi_reduction <maximumf>, %305, %cst_201 [1] : vector<20x20xf32> to vector<20xf32>
    %307 = vector.shape_cast %306 : vector<20xf32> to vector<20x1xf32>
    %308 = vector.broadcast %307 : vector<20x1xf32> to vector<20x20xf32>
    %309 = arith.subf %305, %308 : vector<20x20xf32>
    %310 = math.exp %309 : vector<20x20xf32>
    %cst_202 = arith.constant dense<0.000000e+00> : vector<20xf32>
    %311 = vector.multi_reduction <add>, %310, %cst_202 [1] : vector<20x20xf32> to vector<20xf32>
    %312 = vector.shape_cast %311 : vector<20xf32> to vector<20x1xf32>
    %313 = tpu.reciprocal %312 {approx = true} : vector<20x1xf32> -> vector<20x1xf32>
    %314 = vector.broadcast %313 : vector<20x1xf32> to vector<20x20xf32>
    %315 = arith.mulf %310, %314 : vector<20x20xf32>
    %cst_203 = arith.constant dense<0.000000e+00> : vector<20x8xf32>
    %316 = tpu.matmul %315, %301, %cst_203 {dimension_numbers = #tpu.dot_dimension_numbers<[1], [0], [0], [1], [0, 0, 1, 1], [], []>} : vector<20x20xf32>, vector<20x8xf32>, vector<20x8xf32> -> vector<20x8xf32>
    %c0_204 = arith.constant 0 : index
    %c16_205 = arith.constant 16 : index
    %317 = vector.load %arg27[%c0_204, %c16_205] : memref<20x32xf32, #tpu.memory_space<vmem>>, vector<20x8xf32>
    tpu.vector_store %arg27[%c0_204, %c16_205], %316 {strides = array<i32>} : memref<20x32xf32, #tpu.memory_space<vmem>>, vector<20x8xf32>,
    %c0_206 = arith.constant 0 : index
    %c24_207 = arith.constant 24 : index
    %318 = vector.load %arg26[%c0_206, %c24_207] : memref<20x96xf32, #tpu.memory_space<vmem>>, vector<20x8xf32>
    %c0_208 = arith.constant 0 : index
    %c56_209 = arith.constant 56 : index
    %319 = vector.load %arg26[%c0_208, %c56_209] : memref<20x96xf32, #tpu.memory_space<vmem>>, vector<20x8xf32>
    %c0_210 = arith.constant 0 : index
    %c88_211 = arith.constant 88 : index
    %320 = vector.load %arg26[%c0_210, %c88_211] : memref<20x96xf32, #tpu.memory_space<vmem>>, vector<20x8xf32>
    %cst_212 = arith.constant dense<0.000000e+00> : vector<20x20xf32>
    %321 = tpu.matmul %318, %319, %cst_212 {dimension_numbers = #tpu.dot_dimension_numbers<[1], [1], [0], [0], [0, 0, 1, 0], [], []>} : vector<20x8xf32>, vector<20x8xf32>, vector<20x20xf32> -> vector<20x20xf32>
    %cst_213 = arith.constant 0.353553385 : f32
    %322 = vector.broadcast %cst_213 : f32 to vector<20x20xf32>
    %323 = arith.mulf %321, %322 : vector<20x20xf32>
    %324 = arith.addf %323, %50 : vector<20x20xf32>
    %cst_214 = arith.constant dense<0xFF800000> : vector<20xf32>
    %325 = vector.multi_reduction <maximumf>, %324, %cst_214 [1] : vector<20x20xf32> to vector<20xf32>
    %326 = vector.shape_cast %325 : vector<20xf32> to vector<20x1xf32>
    %327 = vector.broadcast %326 : vector<20x1xf32> to vector<20x20xf32>
    %328 = arith.subf %324, %327 : vector<20x20xf32>
    %329 = math.exp %328 : vector<20x20xf32>
    %cst_215 = arith.constant dense<0.000000e+00> : vector<20xf32>
    %330 = vector.multi_reduction <add>, %329, %cst_215 [1] : vector<20x20xf32> to vector<20xf32>
    %331 = vector.shape_cast %330 : vector<20xf32> to vector<20x1xf32>
    %332 = tpu.reciprocal %331 {approx = true} : vector<20x1xf32> -> vector<20x1xf32>
    %333 = vector.broadcast %332 : vector<20x1xf32> to vector<20x20xf32>
    %334 = arith.mulf %329, %333 : vector<20x20xf32>
    %cst_216 = arith.constant dense<0.000000e+00> : vector<20x8xf32>
    %335 = tpu.matmul %334, %320, %cst_216 {dimension_numbers = #tpu.dot_dimension_numbers<[1], [0], [0], [1], [0, 0, 1, 1], [], []>} : vector<20x20xf32>, vector<20x8xf32>, vector<20x8xf32> -> vector<20x8xf32>
    %c0_217 = arith.constant 0 : index
    %c24_218 = arith.constant 24 : index
    %336 = vector.load %arg27[%c0_217, %c24_218] : memref<20x32xf32, #tpu.memory_space<vmem>>, vector<20x8xf32>
    tpu.vector_store %arg27[%c0_217, %c24_218], %335 {strides = array<i32>} : memref<20x32xf32, #tpu.memory_space<vmem>>, vector<20x8xf32>,
    %c0_219 = arith.constant 0 : index
    %c0_220 = arith.constant 0 : index
    %337 = vector.load %arg27[%c0_219, %c0_220] : memref<20x32xf32, #tpu.memory_space<vmem>>, vector<20x32xf32>
    %c1_221 = arith.constant 1 : index
    %c0_222 = arith.constant 0 : index
    %c0_223 = arith.constant 0 : index
    %338 = vector.load %arg11[%c1_221, %c0_222, %c0_223] : memref<2x32x32xf32, #tpu.memory_space<vmem>>, vector<1x32x32xf32>
    %339 = vector.shape_cast %338 : vector<1x32x32xf32> to vector<32x32xf32>
    %cst_224 = arith.constant dense<0.000000e+00> : vector<20x32xf32>
    %340 = tpu.matmul %337, %339, %cst_224 {dimension_numbers = #tpu.dot_dimension_numbers<[1], [0], [0], [1], [0, 0, 1, 1], [], []>} : vector<20x32xf32>, vector<32x32xf32>, vector<20x32xf32> -> vector<20x32xf32>
    %c1_225 = arith.constant 1 : index
    %c0_226 = arith.constant 0 : index
    %c0_227 = arith.constant 0 : index
    %341 = vector.load %arg12[%c1_225, %c0_226, %c0_227] : memref<2x1x32xf32, #tpu.memory_space<vmem>>, vector<1x1x32xf32>
    %342 = vector.shape_cast %341 : vector<1x1x32xf32> to vector<1x32xf32>
    %343 = vector.broadcast %342 : vector<1x32xf32> to vector<20x32xf32>
    %344 = arith.addf %340, %343 : vector<20x32xf32>
    %345 = arith.addf %226, %344 : vector<20x32xf32>
    %c1_228 = arith.constant 1 : index
    %c0_229 = arith.constant 0 : index
    %c0_230 = arith.constant 0 : index
    %346 = vector.load %arg13[%c1_228, %c0_229, %c0_230] : memref<2x1x32xf32, #tpu.memory_space<vmem>>, vector<1x1x32xf32>
    %347 = vector.shape_cast %346 : vector<1x1x32xf32> to vector<1x32xf32>
    %c1_231 = arith.constant 1 : index
    %c0_232 = arith.constant 0 : index
    %c0_233 = arith.constant 0 : index
    %348 = vector.load %arg14[%c1_231, %c0_232, %c0_233] : memref<2x1x32xf32, #tpu.memory_space<vmem>>, vector<1x1x32xf32>
    %349 = vector.shape_cast %348 : vector<1x1x32xf32> to vector<1x32xf32>
    %cst_234 = arith.constant dense<0.000000e+00> : vector<20xf32>
    %350 = vector.multi_reduction <add>, %345, %cst_234 [1] : vector<20x32xf32> to vector<20xf32>
    %351 = vector.shape_cast %350 : vector<20xf32> to vector<20x1xf32>
    %cst_235 = arith.constant 3.200000e+01 : f32
    %352 = vector.broadcast %cst_235 : f32 to vector<20x1xf32>
    %353 = arith.divf %351, %352 : vector<20x1xf32>
    %354 = vector.broadcast %353 : vector<20x1xf32> to vector<20x32xf32>
    %355 = arith.subf %345, %354 : vector<20x32xf32>
    %356 = arith.mulf %355, %355 : vector<20x32xf32>
    %cst_236 = arith.constant dense<0.000000e+00> : vector<20xf32>
    %357 = vector.multi_reduction <add>, %356, %cst_236 [1] : vector<20x32xf32> to vector<20xf32>
    %358 = vector.shape_cast %357 : vector<20xf32> to vector<20x1xf32>
    %cst_237 = arith.constant 3.200000e+01 : f32
    %359 = vector.broadcast %cst_237 : f32 to vector<20x1xf32>
    %360 = arith.divf %358, %359 : vector<20x1xf32>
    %361 = vector.broadcast %353 : vector<20x1xf32> to vector<20x32xf32>
    %362 = arith.subf %345, %361 : vector<20x32xf32>
    %cst_238 = arith.constant 9.99999974E-6 : f32
    %363 = vector.broadcast %cst_238 : f32 to vector<20x1xf32>
    %364 = arith.addf %360, %363 : vector<20x1xf32>
    %365 = math.rsqrt %364 : vector<20x1xf32>
    %366 = vector.broadcast %365 : vector<20x1xf32> to vector<20x32xf32>
    %367 = arith.mulf %362, %366 : vector<20x32xf32>
    %368 = vector.broadcast %347 : vector<1x32xf32> to vector<20x32xf32>
    %369 = arith.mulf %367, %368 : vector<20x32xf32>
    %370 = vector.broadcast %349 : vector<1x32xf32> to vector<20x32xf32>
    %371 = arith.addf %369, %370 : vector<20x32xf32>
    %c1_239 = arith.constant 1 : index
    %c0_240 = arith.constant 0 : index
    %c0_241 = arith.constant 0 : index
    %372 = vector.load %arg15[%c1_239, %c0_240, %c0_241] : memref<2x32x128xf32, #tpu.memory_space<vmem>>, vector<1x32x128xf32>
    %373 = vector.shape_cast %372 : vector<1x32x128xf32> to vector<32x128xf32>
    %cst_242 = arith.constant dense<0.000000e+00> : vector<20x128xf32>
    %374 = tpu.matmul %371, %373, %cst_242 {dimension_numbers = #tpu.dot_dimension_numbers<[1], [0], [0], [1], [0, 0, 1, 1], [], []>} : vector<20x32xf32>, vector<32x128xf32>, vector<20x128xf32> -> vector<20x128xf32>
    %c1_243 = arith.constant 1 : index
    %c0_244 = arith.constant 0 : index
    %c0_245 = arith.constant 0 : index
    %375 = vector.load %arg16[%c1_243, %c0_244, %c0_245] : memref<2x1x128xf32, #tpu.memory_space<vmem>>, vector<1x1x128xf32>
    %376 = vector.shape_cast %375 : vector<1x1x128xf32> to vector<1x128xf32>
    %377 = vector.broadcast %376 : vector<1x128xf32> to vector<20x128xf32>
    %378 = arith.addf %374, %377 : vector<20x128xf32>
    %379 = arith.mulf %378, %378 : vector<20x128xf32>
    %380 = arith.mulf %378, %379 : vector<20x128xf32>
    %cst_246 = arith.constant 4.471500e-02 : f32
    %381 = vector.broadcast %cst_246 : f32 to vector<20x128xf32>
    %382 = arith.mulf %381, %380 : vector<20x128xf32>
    %383 = arith.addf %378, %382 : vector<20x128xf32>
    %cst_247 = arith.constant 0.797884583 : f32
    %384 = vector.broadcast %cst_247 : f32 to vector<20x128xf32>
    %385 = arith.mulf %384, %383 : vector<20x128xf32>
    %386 = math.tanh %385 : vector<20x128xf32>
    %cst_248 = arith.constant 1.000000e+00 : f32
    %387 = vector.broadcast %cst_248 : f32 to vector<20x128xf32>
    %388 = arith.addf %387, %386 : vector<20x128xf32>
    %cst_249 = arith.constant 5.000000e-01 : f32
    %389 = vector.broadcast %cst_249 : f32 to vector<20x128xf32>
    %390 = arith.mulf %389, %388 : vector<20x128xf32>
    %391 = arith.mulf %378, %390 : vector<20x128xf32>
    %c1_250 = arith.constant 1 : index
    %c0_251 = arith.constant 0 : index
    %c0_252 = arith.constant 0 : index
    %392 = vector.load %arg17[%c1_250, %c0_251, %c0_252] : memref<2x128x32xf32, #tpu.memory_space<vmem>>, vector<1x128x32xf32>
    %393 = vector.shape_cast %392 : vector<1x128x32xf32> to vector<128x32xf32>
    %cst_253 = arith.constant dense<0.000000e+00> : vector<20x32xf32>
    %394 = tpu.matmul %391, %393, %cst_253 {dimension_numbers = #tpu.dot_dimension_numbers<[1], [0], [0], [1], [0, 0, 1, 1], [], []>} : vector<20x128xf32>, vector<128x32xf32>, vector<20x32xf32> -> vector<20x32xf32>
    %c1_254 = arith.constant 1 : index
    %c0_255 = arith.constant 0 : index
    %c0_256 = arith.constant 0 : index
    %395 = vector.load %arg18[%c1_254, %c0_255, %c0_256] : memref<2x1x32xf32, #tpu.memory_space<vmem>>, vector<1x1x32xf32>
    %396 = vector.shape_cast %395 : vector<1x1x32xf32> to vector<1x32xf32>
    %397 = vector.broadcast %396 : vector<1x32xf32> to vector<20x32xf32>
    %398 = arith.addf %394, %397 : vector<20x32xf32>
    %399 = arith.addf %345, %398 : vector<20x32xf32>
    %c0_257 = arith.constant 0 : index
    %c0_258 = arith.constant 0 : index
    %400 = vector.load %arg25[%c0_257, %c0_258] : memref<20x32xf32, #tpu.memory_space<vmem>>, vector<20x32xf32>
    tpu.vector_store %arg25[%c0_257, %c0_258], %399 {strides = array<i32>} : memref<20x32xf32, #tpu.memory_space<vmem>>, vector<20x32xf32>,
    %c0_259 = arith.constant 0 : index
    %c0_260 = arith.constant 0 : index
    %401 = vector.load %arg25[%c0_259, %c0_260] : memref<20x32xf32, #tpu.memory_space<vmem>>, vector<20x32xf32>
    %c0_261 = arith.constant 0 : index
    %c0_262 = arith.constant 0 : index
    %402 = vector.load %arg19[%c0_261, %c0_262] : memref<1x32xf32, #tpu.memory_space<vmem>>, vector<1x32xf32>
    %c0_263 = arith.constant 0 : index
    %c0_264 = arith.constant 0 : index
    %403 = vector.load %arg20[%c0_263, %c0_264] : memref<1x32xf32, #tpu.memory_space<vmem>>, vector<1x32xf32>
    %cst_265 = arith.constant dense<0.000000e+00> : vector<20xf32>
    %404 = vector.multi_reduction <add>, %401, %cst_265 [1] : vector<20x32xf32> to vector<20xf32>
    %405 = vector.shape_cast %404 : vector<20xf32> to vector<20x1xf32>
    %cst_266 = arith.constant 3.200000e+01 : f32
    %406 = vector.broadcast %cst_266 : f32 to vector<20x1xf32>
    %407 = arith.divf %405, %406 : vector<20x1xf32>
    %408 = vector.broadcast %407 : vector<20x1xf32> to vector<20x32xf32>
    %409 = arith.subf %401, %408 : vector<20x32xf32>
    %410 = arith.mulf %409, %409 : vector<20x32xf32>
    %cst_267 = arith.constant dense<0.000000e+00> : vector<20xf32>
    %411 = vector.multi_reduction <add>, %410, %cst_267 [1] : vector<20x32xf32> to vector<20xf32>
    %412 = vector.shape_cast %411 : vector<20xf32> to vector<20x1xf32>
    %cst_268 = arith.constant 3.200000e+01 : f32
    %413 = vector.broadcast %cst_268 : f32 to vector<20x1xf32>
    %414 = arith.divf %412, %413 : vector<20x1xf32>
    %415 = vector.broadcast %407 : vector<20x1xf32> to vector<20x32xf32>
    %416 = arith.subf %401, %415 : vector<20x32xf32>
    %cst_269 = arith.constant 9.99999974E-6 : f32
    %417 = vector.broadcast %cst_269 : f32 to vector<20x1xf32>
    %418 = arith.addf %414, %417 : vector<20x1xf32>
    %419 = math.rsqrt %418 : vector<20x1xf32>
    %420 = vector.broadcast %419 : vector<20x1xf32> to vector<20x32xf32>
    %421 = arith.mulf %416, %420 : vector<20x32xf32>
    %422 = vector.broadcast %402 : vector<1x32xf32> to vector<20x32xf32>
    %423 = arith.mulf %421, %422 : vector<20x32xf32>
    %424 = vector.broadcast %403 : vector<1x32xf32> to vector<20x32xf32>
    %425 = arith.addf %423, %424 : vector<20x32xf32>
    %c0_270 = arith.constant 0 : index
    %c0_271 = arith.constant 0 : index
    %426 = vector.load %arg25[%c0_270, %c0_271] : memref<20x32xf32, #tpu.memory_space<vmem>>, vector<20x32xf32>
    tpu.vector_store %arg25[%c0_270, %c0_271], %425 {strides = array<i32>} : memref<20x32xf32, #tpu.memory_space<vmem>>, vector<20x32xf32>,
    %c0_272 = arith.constant 0 : index
    %c0_273 = arith.constant 0 : index
    %427 = vector.load %arg25[%c0_272, %c0_273] : memref<20x32xf32, #tpu.memory_space<vmem>>, vector<1x32xf32>
    %c0_274 = arith.constant 0 : index
    %c0_275 = arith.constant 0 : index
    %428 = vector.load %arg28[%c0_274, %c0_275] : memref<4x32xf32, #tpu.memory_space<vmem>>, vector<1x32xf32>
    tpu.vector_store %arg28[%c0_274, %c0_275], %427 {strides = array<i32>} : memref<4x32xf32, #tpu.memory_space<vmem>>, vector<1x32xf32>,
    %c1_276 = arith.constant 1 : index
    %c0_277 = arith.constant 0 : index
    %429 = vector.load %arg25[%c1_276, %c0_277] : memref<20x32xf32, #tpu.memory_space<vmem>>, vector<4x32xf32>
    %c0_278 = arith.constant 0 : index
    %c0_279 = arith.constant 0 : index
    %430 = vector.load %arg23[%c0_278, %c0_279] : memref<16x32xf32, #tpu.memory_space<vmem>>, vector<4x32xf32>
    tpu.vector_store %arg23[%c0_278, %c0_279], %429 {strides = array<i32>} : memref<16x32xf32, #tpu.memory_space<vmem>>, vector<4x32xf32>,
    %c5_280 = arith.constant 5 : index
    %c0_281 = arith.constant 0 : index
    %431 = vector.load %arg25[%c5_280, %c0_281] : memref<20x32xf32, #tpu.memory_space<vmem>>, vector<1x32xf32>
    %c1_282 = arith.constant 1 : index
    %c0_283 = arith.constant 0 : index
    %432 = vector.load %arg28[%c1_282, %c0_283] : memref<4x32xf32, #tpu.memory_space<vmem>>, vector<1x32xf32>
    tpu.vector_store %arg28[%c1_282, %c0_283], %431 {strides = array<i32>} : memref<4x32xf32, #tpu.memory_space<vmem>>, vector<1x32xf32>,
    %c6_284 = arith.constant 6 : index
    %c0_285 = arith.constant 0 : index
    %433 = vector.load %arg25[%c6_284, %c0_285] : memref<20x32xf32, #tpu.memory_space<vmem>>, vector<4x32xf32>
    %c4_286 = arith.constant 4 : index
    %c0_287 = arith.constant 0 : index
    %434 = vector.load %arg23[%c4_286, %c0_287] : memref<16x32xf32, #tpu.memory_space<vmem>>, vector<4x32xf32>
    tpu.vector_store %arg23[%c4_286, %c0_287], %433 {strides = array<i32>} : memref<16x32xf32, #tpu.memory_space<vmem>>, vector<4x32xf32>,
    %c10_288 = arith.constant 10 : index
    %c0_289 = arith.constant 0 : index
    %435 = vector.load %arg25[%c10_288, %c0_289] : memref<20x32xf32, #tpu.memory_space<vmem>>, vector<1x32xf32>
    %c2 = arith.constant 2 : index
    %c0_290 = arith.constant 0 : index
    %436 = vector.load %arg28[%c2, %c0_290] : memref<4x32xf32, #tpu.memory_space<vmem>>, vector<1x32xf32>
    tpu.vector_store %arg28[%c2, %c0_290], %435 {strides = array<i32>} : memref<4x32xf32, #tpu.memory_space<vmem>>, vector<1x32xf32>,
    %c11_291 = arith.constant 11 : index
    %c0_292 = arith.constant 0 : index
    %437 = vector.load %arg25[%c11_291, %c0_292] : memref<20x32xf32, #tpu.memory_space<vmem>>, vector<4x32xf32>
    %c8_293 = arith.constant 8 : index
    %c0_294 = arith.constant 0 : index
    %438 = vector.load %arg23[%c8_293, %c0_294] : memref<16x32xf32, #tpu.memory_space<vmem>>, vector<4x32xf32>
    tpu.vector_store %arg23[%c8_293, %c0_294], %437 {strides = array<i32>} : memref<16x32xf32, #tpu.memory_space<vmem>>, vector<4x32xf32>,
    %c15_295 = arith.constant 15 : index
    %c0_296 = arith.constant 0 : index
    %439 = vector.load %arg25[%c15_295, %c0_296] : memref<20x32xf32, #tpu.memory_space<vmem>>, vector<1x32xf32>
    %c3 = arith.constant 3 : index
    %c0_297 = arith.constant 0 : index
    %440 = vector.load %arg28[%c3, %c0_297] : memref<4x32xf32, #tpu.memory_space<vmem>>, vector<1x32xf32>
    tpu.vector_store %arg28[%c3, %c0_297], %439 {strides = array<i32>} : memref<4x32xf32, #tpu.memory_space<vmem>>, vector<1x32xf32>,
    %c16_298 = arith.constant 16 : index
    %c0_299 = arith.constant 0 : index
    %441 = vector.load %arg25[%c16_298, %c0_299] : memref<20x32xf32, #tpu.memory_space<vmem>>, vector<4x32xf32>
    %c12_300 = arith.constant 12 : index
    %c0_301 = arith.constant 0 : index
    %442 = vector.load %arg23[%c12_300, %c0_301] : memref<16x32xf32, #tpu.memory_space<vmem>>, vector<4x32xf32>
    tpu.vector_store %arg23[%c12_300, %c0_301], %441 {strides = array<i32>} : memref<16x32xf32, #tpu.memory_space<vmem>>, vector<4x32xf32>,
    %c0_302 = arith.constant 0 : index
    %c0_303 = arith.constant 0 : index
    %443 = vector.load %arg28[%c0_302, %c0_303] : memref<4x32xf32, #tpu.memory_space<vmem>>, vector<4x32xf32>
    %c0_304 = arith.constant 0 : index
    %c0_305 = arith.constant 0 : index
    %444 = vector.load %arg21[%c0_304, %c0_305] : memref<32x16xf32, #tpu.memory_space<vmem>>, vector<32x16xf32>
    %cst_306 = arith.constant dense<0.000000e+00> : vector<4x16xf32>
    %445 = tpu.matmul %443, %444, %cst_306 {dimension_numbers = #tpu.dot_dimension_numbers<[1], [0], [0], [1], [0, 0, 1, 1], [], []>} : vector<4x32xf32>, vector<32x16xf32>, vector<4x16xf32> -> vector<4x16xf32>
    %c0_307 = arith.constant 0 : index
    %c0_308 = arith.constant 0 : index
    %446 = vector.load %arg22[%c0_307, %c0_308] : memref<4x16xf32, #tpu.memory_space<vmem>>, vector<4x16xf32>
    tpu.vector_store %arg22[%c0_307, %c0_308], %445 {strides = array<i32>} : memref<4x16xf32, #tpu.memory_space<vmem>>, vector<4x16xf32>,
    return
  }
}

</mosaic_0001>

<bundles_post_ra>
// kernel: vision_transformer_forward.1
= control target key start
LH: loop header
LB: loop body
LE: loop exit
PB: predicated region body
PF: predicated region fallthrough
CT: control target
= control target key end

     0   :  { %s6043_s0 = inlined_call_operand.vmem [shape: f32[16,192], index: 0, kind: input, shape index: {}]   ;;  %s6044_s1 = inlined_call_operand.vmem [shape: f32[20,20], index: 1, kind: input, shape index: {}]   ;;  %s6045_s2 = inlined_call_operand.vmem [shape: f32[192,32], index: 2, kind: input, shape index: {}]   ;;  %s6046_s3 = inlined_call_operand.vmem [shape: f32[1,32], index: 3, kind: input, shape index: {}]   ;;  %s6047_s4 = inlined_call_operand.vmem [shape: f32[5,32], index: 4, kind: input, shape index: {}]   ;;  %s6048_s5 = inlined_call_operand.vmem [shape: f32[1,32], index: 5, kind: input, shape index: {}]   ;;  %s6049_s6 = inlined_call_operand.vmem [shape: f32[1,32], index: 6, kind: input, shape index: {}]   ;;  %s6050_s7 = inlined_call_operand.vmem [shape: f32[2,1,32], index: 7, kind: input, shape index: {}]   ;;  %s6051_s8 = inlined_call_operand.vmem [shape: f32[2,1,32], index: 8, kind: input, shape index: {}]   ;;  %s6052_s9 = inlined_call_operand.vmem [shape: f32[2,32,96], index: 9, kind: input, shape index: {}]   ;;  %s6053_s10 = inlined_call_operand.vmem [shape: f32[2,1,96], index: 10, kind: input, shape index: {}]   ;;  %s6054_s11 = inlined_call_operand.vmem [shape: f32[2,32,32], index: 11, kind: input, shape index: {}]   ;;  %s6055_s12 = inlined_call_operand.vmem [shape: f32[2,1,32], index: 12, kind: input, shape index: {}]   ;;  %s6056_s13 = inlined_call_operand.vmem [shape: f32[2,1,32], index: 13, kind: input, shape index: {}]   ;;  %s6057_s14 = inlined_call_operand.vmem [shape: f32[2,1,32], index: 14, kind: input, shape index: {}]   ;;  %s6058_s15 = inlined_call_operand.vmem [shape: f32[2,32,128], index: 15, kind: input, shape index: {}]   ;;  %s6059_s16 = inlined_call_operand.vmem [shape: f32[2,1,128], index: 16, kind: input, shape index: {}]   ;;  %s6060_s17 = inlined_call_operand.vmem [shape: f32[2,128,32], index: 17, kind: input, shape index: {}]   ;;  %s6061_s18 = inlined_call_operand.vmem [shape: f32[2,1,32], index: 18, kind: input, shape index: {}]   ;;  %s6062_s19 = inlined_call_operand.vmem [shape: f32[1,32], index: 19, kind: input, shape index: {}]   ;;  %s6063_s20 = inlined_call_operand.vmem [shape: f32[1,32], index: 20, kind: input, shape index: {}]   ;;  %s6064_s21 = inlined_call_operand.vmem [shape: f32[32,16], index: 21, kind: input, shape index: {}]   ;;  %s6065_s22 = inlined_call_operand.hbm [shape: f32[4,16], index: 22, kind: output, shape index: {0}]   ;;  %s6066_s23 = inlined_call_operand.hbm [shape: f32[16,32], index: 23, kind: output, shape index: {1}]  }
   0x1   :  { %6091 = sst [smem:[#allocation13_spill]] %s6043_s0 }
   0x2   :  { %6092 = sst [smem:[#allocation14_spill]] %s6044_s1 }
   0x3   :  { %6093 = sst [smem:[#allocation15_spill]] %s6045_s2 }
   0x4   :  { %6094 = sst [smem:[#allocation16_spill]] %s6046_s3 }
   0x5   :  { %6095 = sst [smem:[#allocation17_spill]] %s6047_s4 }
   0x6   :  { %6096 = sst [smem:[#allocation18_spill]] %s6048_s5 }
   0x7   :  { %6097 = sst [smem:[#allocation19_spill]] %s6049_s6 }
   0x8   :  { %6098 = sst [smem:[#allocation20_spill]] %s6050_s7 }
   0x9   :  { %29 = vsyncpa [#allocation8], 0  ;;  %s6099_s24 = sld [smem:[#allocation15_spill]]  ;;  %v4684_v1 = vmov 0.0   ;;  %vm103_vm0 = vcmask 523264  }
   0xa   :  { %110 = vmatprep.subr.mxu0 %v4684_v1  ;;  %4033 = vmatprep.subr.mxu1 %v4684_v1  ;;  %s6100_s3 = sld [smem:[#allocation13_spill]] }
   0xf   :  { %v94_v0 = vld [vmem:[%s6099_s24 + $0x78] sm:$0xff]  ;;  %v93_v2 = vld [vmem:[%s6099_s24 + $0x70] sm:$0xff]  ;;  %v92_v3 = vld [vmem:[%s6099_s24 + $0x68] sm:$0xff] }
  0x10   :  { %111 = vmatpush1.msra.mxu0 %v94_v0  ;;  %v91_v4 = vld [vmem:[%s6099_s24 + $0x60] sm:$0xff]  ;;  %v90_v5 = vld [vmem:[%s6099_s24 + $0x58] sm:$0xff]  ;;  %v76_v6 = vld [vmem:[%s6100_s3 + $0x8] sm:$0xff] }
  0x11   :  { %112 = vmatprep.subr.mxu0 %v4684_v1  ;;  %v89_v7 = vld [vmem:[%s6099_s24 + $0x50] sm:$0xff]  ;;  %3695 = vmatprep.mubr.msk.f32.mxu0 %vm103_vm0, %v76_v6 }
  0x12   :  { %113 = vmatpush1.msra.mxu0 %v93_v2 }
  0x13   :  { %114 = vmatprep.subr.mxu0 %v4684_v1 }
  0x14   :  { %115 = vmatpush1.msra.mxu0 %v92_v3 }
  0x15   :  { %116 = vmatprep.subr.mxu0 %v4684_v1 }
  0x16   :  { %117 = vmatpush1.msra.mxu0 %v91_v4 }
  0x17   :  { %118 = vmatprep.subr.mxu0 %v4684_v1 }
  0x18   :  { %30 = vsyncpa [#allocation10], 0  ;;  %119 = vmatpush1.msra.mxu0 %v90_v5  ;;  %v88_v8 = vld [vmem:[%s6099_s24 + $0x48] sm:$0xff]  ;;  %v87_v9 = vld [vmem:[%s6099_s24 + $0x40] sm:$0xff]  ;;  %s6101_s26 = sld [smem:[#allocation16_spill]]  ;;  %vm6084_vm1 = vcmask 253952  }
  0x19   :  { %120 = vmatprep.subr.mxu0 %v4684_v1  ;;  %v86_v10 = vld [vmem:[%s6099_s24 + $0x38] sm:$0xff]  ;;  %v85_v11 = vld [vmem:[%s6099_s24 + $0x30] sm:$0xff]  ;;  %v84_v12 = vld [vmem:[%s6099_s24 + $0x28] sm:$0xff]  ;;  %s6102_s27 = sld [smem:[#allocation17_spill]]  ;;  %vm185_vm2 = vcmask 261120   ;;  %vm196_vm3 = vcmask 257024  }
  0x1a   :  { %121 = vmatpush1.msra.mxu0 %v89_v7  ;;  %v83_v13 = vld [vmem:[%s6099_s24 + $0x20] sm:$0xff]  ;;  %v82_v14 = vld [vmem:[%s6099_s24 + $0x18] sm:$0xff]  ;;  %v81_v15 = vld [vmem:[%s6099_s24 + $0x10] sm:$0xff]  ;;  %s6103_s0 = sld [smem:[#allocation18_spill]]  ;;  %vm4685_vm4 = vmmov 0   ;;  %vm441_vm5 = vcmask 785408  }
  0x1b   :  { %122 = vmatprep.subr.mxu0 %v4684_v1  ;;  %v80_v16 = vld [vmem:[%s6099_s24 + $0x8] sm:$0xff]  ;;  %v79_v17 = vld [vmem:[%s6099_s24] sm:$0xff]  ;;  %v102_v18 = vld [vmem:[%s6099_s24 + $0xb8] sm:$0xff]  ;;  %s6104_s25 = sld [smem:[#allocation19_spill]]  ;;  %4041 = vmatprep.mubr.msk.f32.mxu1 %vm4685_vm4, %v4684_v1  ;;  %vm444_vm6 = vcmask 781312   ;;  %s4686_s5 = smov 96  }
  0x1c   :  { %123 = vmatpush1.msra.mxu0 %v88_v8  ;;  %v101_v19 = vld [vmem:[%s6099_s24 + $0xb0] sm:$0xff]  ;;  %v100_v20 = vld [vmem:[%s6099_s24 + $0xa8] sm:$0xff]  ;;  %v99_v21 = vld [vmem:[%s6099_s24 + $0xa0] sm:$0xff]  ;;  %s6105_s29 = sld [smem:[#allocation20_spill]]  ;;  %vm458_vm7 = vcmask 64512   ;;  %vm557_vm8 = vcmask 162816  }
  0x1d   :  { %124 = vmatprep.subr.mxu0 %v4684_v1  ;;  %v98_v22 = vld [vmem:[%s6099_s24 + $0x98] sm:$0xff]  ;;  %v97_v23 = vld [vmem:[%s6099_s24 + $0x90] sm:$0xff]  ;;  %v96_v24 = vld [vmem:[%s6099_s24 + $0x88] sm:$0xff]  ;;  %vm564_vm9 = vcmask 158720   ;;  %s6078_s7 = smov 64   ;;  %s4688_s28 = smov 88  }
  0x1e   :  { %125 = vmatpush1.msra.mxu0 %v87_v9  ;;  %v95_v25 = vld [vmem:[%s6099_s24 + $0x80] sm:$0xff]  ;;  %v78_v27 = vld [vmem:[%s6100_s3 + $0x18] sm:$0xff]  ;;  %v77_v28 = vld [vmem:[%s6100_s3 + $0x10] sm:$0xff]  ;;  %vm609_vm10 = vcmask 1043456   ;;  %vm694_vm11 = vcmask 60416   ;;  %s6076_s4 = smov 56  }
  0x1f   :  { %126 = vmatprep.subr.mxu0 %v4684_v1  ;;  %v75_v26 = vld [vmem:[%s6100_s3] sm:$0xff]  ;;  %s4691_s30 = smov 80   ;;  %s4693_s24 = smov 112   ;;  %vm956_vm12 = vcmask 130112   ;;  %vm1221_vm13 = vcmask 195712   ;;  %vm1486_vm14 = vcmask 261312  }
  0x20   :  { %127 = vmatpush1.msra.mxu0 %v86_v10  ;;  %v188_v29 = vld [vmem:[%s6101_s26] sm:$0x1]  ;;  %v191_v35 = vld [vmem:[%s6102_s27 + $0x1] sm:$0xf]  ;;  %s6106_s26 = sld [smem:[#allocation14_spill]]  ;;  %s6080_s1 = smov 104  }
  0x21   :  { %128 = vmatprep.subr.mxu0 %v4684_v1  ;;  %v189_v30 = vld [vmem:[%s6102_s27] sm:$0x1]  ;;  %s6074_s2 = smov 48   ;;  %s6072_s6 = smov 40   ;;  %vm959_vm15 = vcmask 126016  }
  0x22   :  { %129 = vmatpush1.msra.mxu0 %v85_v11  ;;  %v190_v31 = vadd.f32 %v189_v30, %v188_v29  ;;  %s6089_s27 = smov 8  }
  0x23   :  { %130 = vmatprep.subr.mxu0 %v4684_v1 }
  0x24   :  { %131 = vmatpush1.msra.mxu0 %v84_v12  ;;  %193 = vst.msk [vmem:[#allocation3] sm:$0x1] %vm6084_vm1, %v190_v31  ;;  %198 = vst.msk [vmem:[#allocation3 + $0x5] sm:$0x1] %vm6084_vm1, %v190_v31 }
  0x25   :  { %132 = vmatprep.subr.mxu0 %v4684_v1  ;;  %202 = vst.msk [vmem:[#allocation3 + $0xa] sm:$0x1] %vm6084_vm1, %v190_v31  ;;  %206 = vst.msk [vmem:[#allocation3 + $0xf] sm:$0x1] %vm6084_vm1, %v190_v31  ;;  %vm1489_vm1 = vcmask 257216  }
  0x26   :  { %133 = vmatpush1.msra.mxu0 %v83_v13  ;;  %v3697_v13 = vld [vmem:[%s6103_s0] ss:$0 sm:$0xff]  ;;  %s4689_s0 = smov 120  }
  0x27   :  { %134 = vmatprep.subr.mxu0 %v4684_v1 }
  0x28   :  { %135 = vmatpush1.msra.mxu0 %v82_v14 }
  0x29   :  { %136 = vmatprep.subr.mxu0 %v4684_v1 }
  0x2a   :  { %137 = vmatpush1.msra.mxu0 %v81_v15  ;;  %v3698_v15 = vld [vmem:[%s6104_s25] ss:$0 sm:$0xff]  ;;  %s6082_s25 = smov 72  }
  0x2b   :  { %138 = vmatprep.subr.mxu0 %v4684_v1 }
  0x2c   :  { %139 = vmatpush1.msra.mxu0 %v80_v16 }
  0x2d   :  { %140 = vmatprep.subr.mxu0 %v4684_v1 }
  0x2e   :  { %141 = vmatpush1.msra.mxu0 %v79_v17 }
  0x2f   :  { %158 = vmatprep.subr.mxu0 %v4684_v1 }
  0x30   :  { %159 = vmatpush2.msra.mxu0 %v102_v18 }
  0x31   :  { %160 = vmatprep.subr.mxu0 %v4684_v1 }
  0x32   :  { %161 = vmatpush2.msra.mxu0 %v101_v19 }
  0x33   :  { %162 = vmatprep.subr.mxu0 %v4684_v1 }
  0x34   :  { %163 = vmatpush2.msra.mxu0 %v100_v20 }
  0x35   :  { %164 = vmatprep.subr.mxu0 %v4684_v1 }
  0x36   :  { %165 = vmatpush2.msra.mxu0 %v99_v21 }
  0x37   :  { %166 = vmatprep.subr.mxu0 %v4684_v1 }
  0x38   :  { %167 = vmatpush2.msra.mxu0 %v98_v22 }
  0x39   :  { %168 = vmatprep.subr.mxu0 %v4684_v1 }
  0x3a   :  { %169 = vmatpush2.msra.mxu0 %v97_v23 }
  0x3b   :  { %170 = vmatprep.subr.mxu0 %v4684_v1 }
  0x3c   :  { %171 = vmatpush2.msra.mxu0 %v96_v24 }
  0x3d   :  { %172 = vmatprep.subr.mxu0 %v4684_v1 }
  0x3e   :  { %173 = vmatpush2.msra.mxu0 %v95_v25 }
  0x3f   :  { %175 = vmatmul.mubr.f32.vlgmr.msra.gmra.mxu0 %v75_v26  ;;  %4125 = vmatprep.subr.mxu0 %v4684_v1 }
  0x40   :  { %3696 = vmatprep.mubr.msk.f32.mxu0 %vm103_vm0, %v78_v27  ;;  %vm1224_vm0 = vcmask 191616  }
  0x43   :  { %180 = vmatmul.mubr.f32.gmra.mxu0 %v77_v28 }
  0x44   :  { %4131 = vmatprep.mubr.msk.f32.mxu0 %vm4685_vm4, %v4684_v1 }
  0xff   :  { %v176_v32 = vpop.f32.mrf.mxu0 }
 0x100   :  { %186 = vst.msk [vmem:[#allocation2] sm:$0xff] %vm185_vm2, %v176_v32 }
 0x101   :  { %v178_v33 = vpop.f32.mrf.mxu0 }
 0x103   :  { %v181_v34 = vpop.f32.mrf.mxu0 }
 0x104   :  { %187 = vst.msk [vmem:[#allocation2 + $0x8] sm:$0xff] %vm185_vm2, %v181_v34 }
 0x105   :  { %v183_v36 = vpop.f32.mrf.mxu0 }
 0x107   :  { %v194_v37 = vld [vmem:[#allocation2] sm:$0xf]  ;;  %v199_v38 = vld [vmem:[#allocation2 + $0x4] sm:$0xf] }
 0x108   :  { %v195_v39 = vadd.f32 %v194_v37, %v191_v35  ;;  %v200_v40 = vadd.f32 %v199_v38, %v191_v35 }
 0x10a   :  { %197 = vst.msk [vmem:[#allocation3 + $0x1] sm:$0xf] %vm196_vm3, %v195_v39  ;;  %201 = vst.msk [vmem:[#allocation3 + $0x6] sm:$0xf] %vm196_vm3, %v200_v40 }
 0x10b   :  { %v203_v41 = vld [vmem:[#allocation2 + $0x8] sm:$0xf]  ;;  %v207_v42 = vld [vmem:[#allocation2 + $0xc] sm:$0xf] }
 0x10c   :  { %v204_v43 = vadd.f32 %v203_v41, %v191_v35  ;;  %v208_v44 = vadd.f32 %v207_v42, %v191_v35 }
 0x10e   :  { %209 = vst.msk [vmem:[#allocation3 + $0x10] sm:$0xf] %vm196_vm3, %v208_v44  ;;  %205 = vst.msk [vmem:[#allocation3 + $0xb] sm:$0xf] %vm196_vm3, %v204_v43 }
 0x111   :  { %v210_v45 = vld [vmem:[#allocation3] sm:$0xff] }
 0x112   :  { %v215_v46 = vsel %vm185_vm2, %v210_v45, 0.0 }
 0x113   :  { %216 = vadd.xlane.f32.xlu0 %v215_v46 }
 0x115   :  { %v212_v47 = vld [vmem:[#allocation3 + $0x10] sm:$0xf]  ;;  %v211_v48 = vld [vmem:[#allocation3 + $0x8] sm:$0xff] }
 0x116   :  { %v221_v49 = vsel %vm196_vm3, %v212_v47, 0.0  ;;  %v218_v50 = vsel %vm185_vm2, %v211_v48, 0.0 }
 0x117   :  { %222 = vadd.xlane.f32.xlu1 %v221_v49  ;;  %219 = vadd.xlane.f32.xlu0 %v218_v50  ;;  %v342_v49 = vld [vmem:[%s6052_s9 + $0x8] sm:$0xff]  ;;  %v341_v50 = vld [vmem:[%s6052_s9] sm:$0xff] }
 0x19c   :  { %v217_v51 = vpop.xlane.xlu0 %216 }
 0x19d   :  { %v225_v52 = vmul.f32 0.03125, %v217_v51 }
 0x19f   :  { %v228_v53 = vsub.f32 %v210_v45, %v225_v52 }
 0x1a0   :  { %v223_v54 = vpop.xlane.xlu1 %222  ;;  %v220_v55 = vpop.xlane.xlu0 %219 }
 0x1a1   :  { %v227_v56 = vmul.f32 0.03125, %v223_v54  ;;  %v226_v57 = vmul.f32 0.03125, %v220_v55  ;;  %v231_v58 = vmul.f32 %v228_v53, %v228_v53 }
 0x1a3   :  { %v230_v59 = vsub.f32 %v212_v47, %v227_v56  ;;  %v229_v60 = vsub.f32 %v211_v48, %v226_v57  ;;  %v234_v61 = vsel %vm185_vm2, %v231_v58, 0.0  ;;  %v344_v47 = vld [vmem:[%s6052_s9 + $0x18] sm:$0xff]  ;;  %v343_v48 = vld [vmem:[%s6052_s9 + $0x10] sm:$0xff] }
 0x1a4   :  { %235 = vadd.xlane.f32.xlu1 %v234_v61  ;;  %4034 = vmatpush3.msra.mxu1 %v344_v47  ;;  %v3699_v61 = vld [vmem:[%s6105_s29] ss:$0 sm:$0xff] }
 0x1a5   :  { %v233_v62 = vmul.f32 %v230_v59, %v230_v59  ;;  %v232_v63 = vmul.f32 %v229_v60, %v229_v60  ;;  %4035 = vmatprep.subr.mxu1 %v4684_v1 }
 0x1a6   :  { %4036 = vmatpush3.msra.mxu1 %v343_v48 }
 0x1a7   :  { %v240_v0 = vsel %vm196_vm3, %v233_v62, 0.0  ;;  %v237_v2 = vsel %vm185_vm2, %v232_v63, 0.0  ;;  %4037 = vmatprep.subr.mxu1 %v4684_v1  ;;  %v3700_v63 = vld [vmem:[%s6051_s8] ss:$0 sm:$0xff] }
 0x1a8   :  { %241 = vadd.xlane.f32.xlu1 %v240_v0  ;;  %238 = vadd.xlane.f32.xlu0 %v237_v2 }
 0x1a9   :  { %4038 = vmatpush3.msra.mxu1 %v342_v49 }
 0x1aa   :  { %4039 = vmatprep.subr.mxu1 %v4684_v1 }
 0x1ab   :  { %4040 = vmatpush3.msra.mxu1 %v341_v50 }
 0x1ac   :  { %4050 = vmatprep.subr.mxu1 %v4684_v1 }
 0x22d   :  { %v236_v3 = vpop.xlane.xlu1 %235 }
 0x22e   :  { %v243_v4 = vmul.f32 0.03125, %v236_v3 }
 0x230   :  { %v246_v5 = vadd.f32 1e-05, %v243_v4 }
 0x231   :  { %v242_v6 = vpop.xlane.xlu1 %241  ;;  %v239_v7 = vpop.xlane.xlu0 %238 }
 0x232   :  { %4487 = vrsqrt.f32 %v246_v5  ;;  %v245_v8 = vmul.f32 0.03125, %v242_v6  ;;  %v244_v9 = vmul.f32 0.03125, %v239_v7 }
 0x234   :  { %v248_v10 = vadd.f32 1e-05, %v245_v8  ;;  %v247_v11 = vadd.f32 1e-05, %v244_v9 }
 0x236   :  { %4489 = vrsqrt.f32 %v248_v10 }
 0x237   :  { %4491 = vrsqrt.f32 %v247_v11  ;;  %v3701_v11 = vld [vmem:[%s6053_s10] ss:$0 sm:$0xff] }
 0x23f   :  { %v4488_v12 = vpop.eup %4487 }
 0x240   :  { %v252_v14 = vmul.f32 %v4488_v12, %v228_v53 }
 0x242   :  { %v261_v16 = vmul.f32 %v3697_v13, %v252_v14 }
 0x243   :  { %v4490_v17 = vpop.eup %4489 }
 0x244   :  { %v4492_v18 = vpop.eup %4491  ;;  %v270_v19 = vadd.f32 %v3698_v15, %v261_v16  ;;  %v254_v20 = vmul.f32 %v4490_v17, %v230_v59 }
 0x245   :  { %v253_v21 = vmul.f32 %v4492_v18, %v229_v60 }
 0x246   :  { %273 = vst.msk [vmem:[#allocation3] sm:$0xff] %vm185_vm2, %v270_v19  ;;  %v263_v22 = vmul.f32 %v3697_v13, %v254_v20 }
 0x247   :  { %v262_v23 = vmul.f32 %v3697_v13, %v253_v21 }
 0x248   :  { %v272_v24 = vadd.f32 %v3698_v15, %v263_v22 }
 0x249   :  { %v271_v25 = vadd.f32 %v3698_v15, %v262_v23 }
 0x24a   :  { %275 = vst.msk [vmem:[#allocation3 + $0x10] sm:$0xf] %vm196_vm3, %v272_v24 }
 0x24b   :  { %274 = vst.msk [vmem:[#allocation3 + $0x8] sm:$0xff] %vm185_vm2, %v271_v25 }
 0x24d   :  { %v279_v26 = vld [vmem:[#allocation3] sm:$0xff] }
 0x24e   :  { %v284_v27 = vsel %vm185_vm2, %v279_v26, 0.0 }
 0x24f   :  { %285 = vadd.xlane.f32.xlu0 %v284_v27 }
 0x251   :  { %v281_v28 = vld [vmem:[#allocation3 + $0x10] sm:$0xf] }
 0x252   :  { %v290_v29 = vsel %vm196_vm3, %v281_v28, 0.0  ;;  %v280_v30 = vld [vmem:[#allocation3 + $0x8] sm:$0xff] }
 0x253   :  { %291 = vadd.xlane.f32.xlu0 %v290_v29  ;;  %v287_v31 = vsel %vm185_vm2, %v280_v30, 0.0 }
 0x254   :  { %288 = vadd.xlane.f32.xlu1 %v287_v31 }
 0x2d8   :  { %v286_v32 = vpop.xlane.xlu0 %285 }
 0x2d9   :  { %v293_v33 = vmul.f32 0.03125, %v286_v32 }
 0x2db   :  { %v296_v34 = vsub.f32 %v279_v26, %v293_v33  ;;  %v5051_v33 = vld [vmem:[%s6106_s26 + $0x8] sm:$0xff] }
 0x2dc   :  { %v292_v35 = vpop.xlane.xlu0 %291 }
 0x2dd   :  { %v289_v36 = vpop.xlane.xlu1 %288  ;;  %v295_v37 = vmul.f32 0.03125, %v292_v35  ;;  %v299_v38 = vmul.f32 %v296_v34, %v296_v34 }
 0x2de   :  { %v294_v39 = vmul.f32 0.03125, %v289_v36 }
 0x2df   :  { %v298_v40 = vsub.f32 %v281_v28, %v295_v37  ;;  %v302_v41 = vsel %vm185_vm2, %v299_v38, 0.0  ;;  %v5045_v28 = vld [vmem:[%s6106_s26] sm:$0xff] }
 0x2e0   :  { %v297_v42 = vsub.f32 %v280_v30, %v294_v39  ;;  %303 = vadd.xlane.f32.xlu1 %v302_v41  ;;  %v5058_v39 = vld [vmem:[%s6106_s26 + $0x10] sm:$0xf] }
 0x2e1   :  { %v301_v43 = vmul.f32 %v298_v40, %v298_v40 }
 0x2e2   :  { %v300_v44 = vmul.f32 %v297_v42, %v297_v42 }
 0x2e3   :  { %v308_v45 = vsel %vm196_vm3, %v301_v43, 0.0 }
 0x2e4   :  { %v305_v46 = vsel %vm185_vm2, %v300_v44, 0.0  ;;  %309 = vadd.xlane.f32.xlu1 %v308_v45 }
 0x2e5   :  { %306 = vadd.xlane.f32.xlu0 %v305_v46 }
 0x369   :  { %v304_v51 = vpop.xlane.xlu1 %303 }
 0x36a   :  { %v311_v52 = vmul.f32 0.03125, %v304_v51 }
 0x36c   :  { %v314_v53 = vadd.f32 1e-05, %v311_v52 }
 0x36d   :  { %v310_v54 = vpop.xlane.xlu1 %309 }
 0x36e   :  { %4493 = vrsqrt.f32 %v314_v53  ;;  %v313_v55 = vmul.f32 0.03125, %v310_v54  ;;  %v307_v56 = vpop.xlane.xlu0 %306 }
 0x36f   :  { %v312_v57 = vmul.f32 0.03125, %v307_v56 }
 0x370   :  { %v316_v58 = vadd.f32 1e-05, %v313_v55 }
 0x371   :  { %v315_v59 = vadd.f32 1e-05, %v312_v57 }
 0x372   :  { %4495 = vrsqrt.f32 %v316_v58 }
 0x373   :  { %4497 = vrsqrt.f32 %v315_v59 }
 0x37b   :  { %v4494_v60 = vpop.eup %4493 }
 0x37c   :  { %v320_v62 = vmul.f32 %v4494_v60, %v296_v34 }
 0x37e   :  { %v329_v0 = vmul.f32 %v3699_v61, %v320_v62 }
 0x37f   :  { %v4496_v2 = vpop.eup %4495 }
 0x380   :  { %v4498_v3 = vpop.eup %4497  ;;  %v338_v4 = vadd.f32 %v3700_v63, %v329_v0  ;;  %v322_v6 = vmul.f32 %v4496_v2, %v298_v40 }
 0x381   :  { %v321_v5 = vmul.f32 %v4498_v3, %v297_v42 }
 0x382   :  { %4042 = vmatmul.mubr.msk.f32.vlgmr.msra.gmra.mxu1 %vm185_vm2, %v338_v4  ;;  %v331_v9 = vmul.f32 %v3699_v61, %v322_v6 }
 0x383   :  { %4044 = vmatprep.mubr.msk.f32.mxu1 %vm4685_vm4, %v4684_v1  ;;  %v330_v7 = vmul.f32 %v3699_v61, %v321_v5 }
 0x384   :  { %v340_v10 = vadd.f32 %v3700_v63, %v331_v9 }
 0x385   :  { %v339_v8 = vadd.f32 %v3700_v63, %v330_v7 }
 0x387   :  { %4045 = vmatmul.mubr.msk.f32.gmra.mxu1 %vm185_vm2, %v339_v8 }
 0x388   :  { %4047 = vmatprep.mubr.msk.f32.mxu1 %vm4685_vm4, %v4684_v1 }
 0x38b   :  { %4048 = vmatmul.mubr.msk.f32.gmra.mxu1 %vm185_vm2, %v340_v10 }
 0x38c   :  { %4056 = vmatprep.mubr.msk.f32.mxu1 %vm4685_vm4, %v4684_v1 }
 0x442   :  { %v427_v12 = vpop.f32.mrf.mxu1 }
 0x443   :  { %v428_v13 = vadd.f32 %v3701_v11, %v427_v12 }
 0x444   :  { %v4043_v14 = vpop.f32.mrf.mxu1 }
 0x445   :  { %442 = vst.msk [vmem:[#allocation4] sm:$0xff] %vm441_vm5, %v428_v13 }
 0x447   :  { %v432_v15 = vpop.f32.mrf.mxu1 }
 0x448   :  { %v433_v16 = vadd.f32 %v3701_v11, %v432_v15 }
 0x449   :  { %v4046_v17 = vpop.f32.mrf.mxu1 }
 0x44a   :  { %443 = vst.msk [vmem:[#allocation4 + $0x8] sm:$0xff] %vm441_vm5, %v433_v16 }
 0x44b   :  { %v437_v18 = vpop.f32.mrf.mxu1 }
 0x44c   :  { %v438_v19 = vadd.f32 %v3701_v11, %v437_v18  ;;  %v5020_v22 = vld [vmem:[#allocation4] sm:$0xff] }
 0x44d   :  { %v4049_v20 = vpop.f32.mrf.mxu1 }
 0x44e   :  { %445 = vst.msk [vmem:[#allocation4 + $0x10] sm:$0xf] %vm444_vm6, %v438_v19 }
 0x451   :  { %v5016_v21 = vld [vmem:[#allocation4 + $0x8] sm:$0xff] }
 0x452   :  { %454 = vrot.lane.b32.xlu1 %v5016_v21, %s4686_s5 }
 0x455   :  { %v448_v23 = vld [vmem:[#allocation4 + $0x10] sm:$0xf] }
 0x456   :  { %452 = vrot.lane.b32.xlu1 %v5020_v22, %s4686_s5  ;;  %456 = vrot.lane.b32.xlu0 %v448_v23, %s4686_s5  ;;  %v5066_v45 = vld [vmem:[#allocation4 + $0x10] sm:$0xf] }
 0x4c4   :  { %v455_v25 = vpop.permute.xlu1 %454 }
 0x4c8   :  { %v457_v24 = vpop.permute.xlu0 %456  ;;  %v453_v26 = vpop.permute.xlu1 %452 }
 0x4c9   :  { %4051 = vmatpush3.xpose.msk.msra.mxu1 %vm458_vm7, %v457_v24 }
 0x4ca   :  { %4052 = vmatprep.subr.mxu1 %v4684_v1 }
 0x4cd   :  { %4053 = vmatpush3.xpose.msk.msra.mxu1 %vm458_vm7, %v455_v25 }
 0x4ce   :  { %4054 = vmatprep.subr.mxu1 %v4684_v1 }
 0x4d1   :  { %4055 = vmatpush3.xpose.msk.msra.mxu1 %vm458_vm7, %v453_v26 }
 0x4d2   :  { %4065 = vmatprep.subr.mxu1 %v4684_v1 }
 0x4d4   :  { %4057 = vmatmul.mubr.msk.f32.vlgmr.msra.gmra.mxu1 %vm458_vm7, %v5020_v22 }
 0x4d5   :  { %4059 = vmatprep.mubr.msk.f32.mxu1 %vm4685_vm4, %v4684_v1 }
 0x4d8   :  { %4060 = vmatmul.mubr.msk.f32.gmra.mxu1 %vm458_vm7, %v5016_v21 }
 0x4d9   :  { %4062 = vmatprep.mubr.msk.f32.mxu1 %vm4685_vm4, %v4684_v1 }
 0x4dc   :  { %4063 = vmatmul.mubr.msk.f32.gmra.mxu1 %vm458_vm7, %v448_v23 }
 0x4dd   :  { %4071 = vmatprep.mubr.msk.f32.mxu1 %vm4685_vm4, %v4684_v1 }
 0x594   :  { %v537_v27 = vpop.f32.mrf.mxu1 }
 0x595   :  { %v551_v29 = vmul.f32 0.35355338, %v537_v27 }
 0x596   :  { %v4058_v30 = vpop.f32.mrf.mxu1 }
 0x597   :  { %v554_v31 = vadd.f32 %v551_v29, %v5045_v28 }
 0x598   :  { %v542_v32 = vpop.f32.mrf.mxu1 }
 0x599   :  { %v552_v34 = vmul.f32 0.35355338, %v542_v32  ;;  %v558_v35 = vsel %vm557_vm8, %v554_v31, -inf }
 0x59a   :  { %559 = vmax.xlane.f32.xlu1 %v558_v35  ;;  %v4061_v36 = vpop.f32.mrf.mxu1 }
 0x59b   :  { %v555_v37 = vadd.f32 %v552_v34, %v5051_v33 }
 0x59c   :  { %v547_v38 = vpop.f32.mrf.mxu1 }
 0x59d   :  { %v553_v40 = vmul.f32 0.35355338, %v547_v38  ;;  %v561_v41 = vsel %vm557_vm8, %v555_v37, -inf }
 0x59e   :  { %562 = vmax.xlane.f32.xlu0 %v561_v41  ;;  %v4064_v42 = vpop.f32.mrf.mxu1 }
 0x59f   :  { %v556_v43 = vadd.f32 %v553_v40, %v5058_v39  ;;  %v5126_v42 = vld [vmem:[#allocation4 + $0x10] sm:$0xf] }
 0x5a1   :  { %v565_v44 = vsel %vm564_vm9, %v556_v43, -inf }
 0x5a2   :  { %566 = vmax.xlane.f32.xlu0 %v565_v44 }
 0x5ab   :  { %596 = vrot.lane.b32.xlu1 %v448_v23, %s6078_s7 }
 0x5af   :  { %592 = vrot.lane.b32.xlu1 %v5020_v22, %s6078_s7 }
 0x5b3   :  { %712 = vrot.lane.b32.xlu1 %v5066_v45, %s4688_s28 }
 0x5b7   :  { %710 = vrot.lane.b32.xlu1 %v5016_v21, %s4688_s28 }
 0x623   :  { %v560_v46 = vpop.xlane.xlu1 %559 }
 0x624   :  { %v568_v47 = vsub.f32 %v554_v31, %v560_v46 }
 0x626   :  { %v571_v48 = vmul.f32 1.442695, %v568_v47 }
 0x627   :  { %v597_v49 = vpop.permute.xlu1 %596  ;;  %v563_v50 = vpop.xlane.xlu0 %562 }
 0x628   :  { %4499 = vpow2.f32 %v571_v48  ;;  %v569_v51 = vsub.f32 %v555_v37, %v563_v50  ;;  %4066 = vmatpush3.msk.msra.mxu1 %vm609_vm10, %v597_v49 }
 0x629   :  { %4067 = vmatprep.subr.mxu1 %v4684_v1 }
 0x62a   :  { %v573_v52 = vmul.f32 1.442695, %v569_v51 }
 0x62b   :  { %v567_v57 = vpop.xlane.xlu0 %566  ;;  %v593_v62 = vpop.permute.xlu1 %592 }
 0x62c   :  { %4501 = vpow2.f32 %v573_v52  ;;  %v570_v58 = vsub.f32 %v556_v43, %v567_v57 }
 0x62e   :  { %v575_v59 = vmul.f32 1.442695, %v570_v58 }
 0x62f   :  { %v713_v63 = vpop.permute.xlu1 %712 }
 0x630   :  { %4503 = vpow2.f32 %v575_v59 }
 0x633   :  { %v711_v0 = vpop.permute.xlu1 %710 }
 0x635   :  { %v4500_v53 = vpop.eup %4499 }
 0x636   :  { %v577_v54 = vsel %vm557_vm8, %v4500_v53, 0.0 }
 0x637   :  { %578 = vadd.xlane.f32.xlu0 %v577_v54 }
 0x639   :  { %v4502_v55 = vpop.eup %4501 }
 0x63a   :  { %v580_v56 = vsel %vm557_vm8, %v4502_v55, 0.0 }
 0x63b   :  { %581 = vadd.xlane.f32.xlu1 %v580_v56 }
 0x63d   :  { %v4504_v60 = vpop.eup %4503 }
 0x63e   :  { %v583_v61 = vsel %vm564_vm9, %v4504_v60, 0.0 }
 0x64c   :  { %702 = vrot.lane.b32.xlu1 %v5020_v22, %s4689_s0 }
 0x64d   :  { %594 = vrot.lane.b32.xlu0 %v5016_v21, %s6078_s7  ;;  %s6087_s7 = smov 16  }
 0x650   :  { %706 = vrot.lane.b32.xlu1 %v5066_v45, %s4689_s0 }
 0x66c   :  { %584 = vadd.xlane.f32.xlu0 %v583_v61  ;;  %v5141_v61 = vld [vmem:[#allocation4 + $0x10] sm:$0xf] }
 0x682   :  { %708 = vrot.lane.b32.xlu0 %v5020_v22, %s4688_s28 }
 0x686   :  { %704 = vrot.lane.b32.xlu0 %v5016_v21, %s4689_s0 }
 0x6c0   :  { %v579_v2 = vpop.xlane.xlu0 %578 }
 0x6c1   :  { %4505 = vrcp.f32 %v579_v2 }
 0x6c4   :  { %v582_v3 = vpop.xlane.xlu1 %581  ;;  %v595_v4 = vpop.permute.xlu0 %594 }
 0x6c5   :  { %4507 = vrcp.f32 %v582_v3  ;;  %4068 = vmatpush3.msra.mxu1 %v595_v4 }
 0x6c6   :  { %4069 = vmatprep.subr.mxu1 %v4684_v1 }
 0x6c7   :  { %4070 = vmatpush3.msra.mxu1 %v593_v62 }
 0x6c8   :  { %4080 = vmatprep.subr.mxu1 %v4684_v1  ;;  %v703_v13 = vpop.permute.xlu1 %702 }
 0x6cc   :  { %v707_v15 = vpop.permute.xlu1 %706 }
 0x6ce   :  { %v4506_v5 = vpop.eup %4505 }
 0x6cf   :  { %v589_v6 = vmul.f32 %v4506_v5, %v4500_v53 }
 0x6d1   :  { %4072 = vmatmul.mubr.msk.f32.vlgmr.msra.gmra.mxu1 %vm557_vm8, %v589_v6 }
 0x6d2   :  { %v4508_v7 = vpop.eup %4507  ;;  %4081 = vmatpush3.xpose.msk.msra.mxu1 %vm458_vm7, %v713_v63  ;;  %4074 = vmatprep.mubr.msk.f32.mxu1 %vm4685_vm4, %v4684_v1 }
 0x6d3   :  { %4082 = vmatprep.subr.mxu1 %v4684_v1  ;;  %v590_v8 = vmul.f32 %v4508_v7, %v4502_v55 }
 0x6d5   :  { %4075 = vmatmul.mubr.msk.f32.gmra.mxu1 %vm557_vm8, %v590_v8 }
 0x6d6   :  { %4083 = vmatpush3.xpose.msk.msra.mxu1 %vm458_vm7, %v711_v0  ;;  %4077 = vmatprep.mubr.msk.f32.mxu1 %vm4685_vm4, %v4684_v1 }
 0x6d7   :  { %4084 = vmatprep.subr.mxu1 %v4684_v1 }
 0x6f5   :  { %v585_v9 = vpop.xlane.xlu0 %584 }
 0x6f6   :  { %4509 = vrcp.f32 %v585_v9 }
 0x6f9   :  { %v709_v10 = vpop.permute.xlu0 %708 }
 0x6fa   :  { %4085 = vmatpush3.xpose.msk.msra.mxu1 %vm458_vm7, %v709_v10 }
 0x6fb   :  { %4095 = vmatprep.subr.mxu1 %v4684_v1 }
 0x6fd   :  { %v705_v14 = vpop.permute.xlu0 %704 }
 0x703   :  { %v4510_v11 = vpop.eup %4509 }
 0x704   :  { %v591_v12 = vmul.f32 %v4510_v11, %v4504_v60 }
 0x706   :  { %4078 = vmatmul.mubr.msk.f32.gmra.mxu1 %vm557_vm8, %v591_v12 }
 0x707   :  { %4086 = vmatprep.mubr.msk.f32.mxu1 %vm4685_vm4, %v4684_v1 }
 0x70a   :  { %4087 = vmatmul.mubr.msk.f32.vlgmr.msra.gmra.mxu1 %vm458_vm7, %v703_v13 }
 0x70b   :  { %4089 = vmatprep.mubr.msk.f32.mxu1 %vm4685_vm4, %v4684_v1 }
 0x70e   :  { %4090 = vmatmul.mubr.msk.f32.gmra.mxu1 %vm458_vm7, %v705_v14 }
 0x70f   :  { %4092 = vmatprep.mubr.msk.f32.mxu1 %vm4685_vm4, %v4684_v1 }
 0x712   :  { %4093 = vmatmul.mubr.msk.f32.gmra.mxu1 %vm458_vm7, %v707_v15 }
 0x713   :  { %4101 = vmatprep.mubr.msk.f32.mxu1 %vm4685_vm4, %v4684_v1 }
 0x791   :  { %v678_v16 = vpop.f32.mrf.mxu1 }
 0x792   :  { %692 = vst.msk [vmem:[#allocation5] sm:$0xff] %vm458_vm7, %v678_v16 }
 0x793   :  { %v4073_v17 = vpop.f32.mrf.mxu1 }
 0x795   :  { %v683_v18 = vpop.f32.mrf.mxu1 }
 0x796   :  { %693 = vst.msk [vmem:[#allocation5 + $0x8] sm:$0xff] %vm458_vm7, %v683_v18 }
 0x797   :  { %v4076_v19 = vpop.f32.mrf.mxu1 }
 0x7c6   :  { %v688_v20 = vpop.f32.mrf.mxu1 }
 0x7c7   :  { %695 = vst.msk [vmem:[#allocation5 + $0x10] sm:$0xf] %vm694_vm11, %v688_v20 }
 0x7c8   :  { %v4079_v23 = vpop.f32.mrf.mxu1 }
 0x7ca   :  { %v792_v24 = vpop.f32.mrf.mxu1 }
 0x7cb   :  { %v806_v25 = vmul.f32 0.35355338, %v792_v24 }
 0x7cc   :  { %v4088_v26 = vpop.f32.mrf.mxu1 }
 0x7cd   :  { %v809_v27 = vadd.f32 %v806_v25, %v5045_v28 }
 0x7ce   :  { %v797_v29 = vpop.f32.mrf.mxu1 }
 0x7cf   :  { %v807_v30 = vmul.f32 0.35355338, %v797_v29  ;;  %v812_v31 = vsel %vm557_vm8, %v809_v27, -inf }
 0x7d0   :  { %813 = vmax.xlane.f32.xlu0 %v812_v31  ;;  %v4091_v32 = vpop.f32.mrf.mxu1 }
 0x7d1   :  { %v810_v34 = vadd.f32 %v807_v30, %v5051_v33 }
 0x7d2   :  { %v802_v35 = vpop.f32.mrf.mxu1 }
 0x7d3   :  { %v808_v36 = vmul.f32 0.35355338, %v802_v35  ;;  %v815_v37 = vsel %vm557_vm8, %v810_v34, -inf }
 0x7d4   :  { %816 = vmax.xlane.f32.xlu1 %v815_v37  ;;  %v4094_v38 = vpop.f32.mrf.mxu1 }
 0x7d5   :  { %v811_v40 = vadd.f32 %v808_v36, %v5058_v39 }
 0x7d7   :  { %v818_v41 = vsel %vm564_vm9, %v811_v40, -inf }
 0x7d8   :  { %819 = vmax.xlane.f32.xlu0 %v818_v41 }
 0x7e5   :  { %847 = vrot.lane.b32.xlu1 %v5016_v21, %s6076_s4 }
 0x7e9   :  { %845 = vrot.lane.b32.xlu1 %v5020_v22, %s6076_s4 }
 0x7ed   :  { %977 = vrot.lane.b32.xlu1 %v5126_v42, %s4691_s30 }
 0x7ee   :  { %849 = vrot.lane.b32.xlu0 %v5066_v45, %s6076_s4  ;;  %s6085_s4 = smov 24  }
 0x7f1   :  { %973 = vrot.lane.b32.xlu1 %v5020_v22, %s4691_s30 }
 0x859   :  { %v814_v43 = vpop.xlane.xlu0 %813 }
 0x85a   :  { %v821_v44 = vsub.f32 %v809_v27, %v814_v43 }
 0x85c   :  { %v824_v46 = vmul.f32 1.442695, %v821_v44 }
 0x85d   :  { %v817_v47 = vpop.xlane.xlu1 %816 }
 0x85e   :  { %4511 = vpow2.f32 %v824_v46  ;;  %v822_v48 = vsub.f32 %v810_v34, %v817_v47 }
 0x860   :  { %v826_v49 = vmul.f32 1.442695, %v822_v48 }
 0x861   :  { %v820_v50 = vpop.xlane.xlu0 %819  ;;  %v848_v52 = vpop.permute.xlu1 %847 }
 0x862   :  { %4513 = vpow2.f32 %v826_v49  ;;  %v823_v51 = vsub.f32 %v811_v40, %v820_v50 }
 0x864   :  { %v828_v53 = vmul.f32 1.442695, %v823_v51 }
 0x865   :  { %v850_v54 = vpop.permute.xlu0 %849  ;;  %v846_v45 = vpop.permute.xlu1 %845 }
 0x866   :  { %4515 = vpow2.f32 %v828_v53  ;;  %4096 = vmatpush3.msk.msra.mxu1 %vm609_vm10, %v850_v54 }
 0x867   :  { %4097 = vmatprep.subr.mxu1 %v4684_v1 }
 0x868   :  { %4098 = vmatpush3.msra.mxu1 %v848_v52 }
 0x869   :  { %4099 = vmatprep.subr.mxu1 %v4684_v1  ;;  %v978_v62 = vpop.permute.xlu1 %977 }
 0x86a   :  { %4100 = vmatpush3.msra.mxu1 %v846_v45 }
 0x86b   :  { %v4512_v55 = vpop.eup %4511  ;;  %4110 = vmatprep.subr.mxu1 %v4684_v1 }
 0x86c   :  { %v830_v56 = vsel %vm557_vm8, %v4512_v55, 0.0 }
 0x86d   :  { %831 = vadd.xlane.f32.xlu0 %v830_v56  ;;  %v974_v0 = vpop.permute.xlu1 %973 }
 0x86f   :  { %v4514_v57 = vpop.eup %4513 }
 0x870   :  { %v833_v58 = vsel %vm557_vm8, %v4514_v57, 0.0 }
 0x871   :  { %834 = vadd.xlane.f32.xlu0 %v833_v58 }
 0x873   :  { %v4516_v59 = vpop.eup %4515 }
 0x874   :  { %v836_v60 = vsel %vm564_vm9, %v4516_v59, 0.0 }
 0x875   :  { %837 = vadd.xlane.f32.xlu1 %v836_v60 }
 0x886   :  { %1242 = vrot.lane.b32.xlu1 %v5141_v61, %s6082_s25 }
 0x887   :  { %975 = vrot.lane.b32.xlu0 %v5016_v21, %s4691_s30 }
 0x88a   :  { %1240 = vrot.lane.b32.xlu1 %v5016_v21, %s6082_s25 }
 0x88b   :  { %967 = vrot.lane.b32.xlu0 %v5020_v22, %s4693_s24 }
 0x88e   :  { %1238 = vrot.lane.b32.xlu1 %v5020_v22, %s6082_s25  ;;  %s6111_s25 = smov 48  }
 0x88f   :  { %969 = vrot.lane.b32.xlu0 %v5016_v21, %s4693_s24 }
 0x892   :  { %1234 = vrot.lane.b32.xlu1 %v5016_v21, %s6080_s1 }
 0x893   :  { %971 = vrot.lane.b32.xlu0 %v5126_v42, %s4693_s24 }
 0x897   :  { %1232 = vrot.lane.b32.xlu0 %v5020_v22, %s6080_s1 }
 0x89b   :  { %1236 = vrot.lane.b32.xlu0 %v5141_v61, %s6080_s1  ;;  %s6112_s1 = smov 40  }
 0x8f6   :  { %v832_v63 = vpop.xlane.xlu0 %831 }
 0x8f7   :  { %4517 = vrcp.f32 %v832_v63 }
 0x8fa   :  { %v835_v2 = vpop.xlane.xlu0 %834 }
 0x8fb   :  { %4519 = vrcp.f32 %v835_v2 }
 0x8fe   :  { %v838_v3 = vpop.xlane.xlu1 %837  ;;  %v976_v6 = vpop.permute.xlu0 %975 }
 0x8ff   :  { %4521 = vrcp.f32 %v838_v3 }
 0x902   :  { %v968_v10 = vpop.permute.xlu0 %967  ;;  %v1243_v12 = vpop.permute.xlu1 %1242 }
 0x904   :  { %v4518_v4 = vpop.eup %4517 }
 0x905   :  { %v842_v5 = vmul.f32 %v4518_v4, %v4512_v55 }
 0x906   :  { %v970_v13 = vpop.permute.xlu0 %969  ;;  %v1241_v14 = vpop.permute.xlu1 %1240 }
 0x907   :  { %4102 = vmatmul.mubr.msk.f32.vlgmr.msra.gmra.mxu1 %vm557_vm8, %v842_v5 }
 0x908   :  { %v4520_v7 = vpop.eup %4519  ;;  %4111 = vmatpush3.xpose.msk.msra.mxu1 %vm458_vm7, %v978_v62  ;;  %4104 = vmatprep.mubr.msk.f32.mxu1 %vm4685_vm4, %v4684_v1 }
 0x909   :  { %4112 = vmatprep.subr.mxu1 %v4684_v1  ;;  %v843_v8 = vmul.f32 %v4520_v7, %v4514_v57 }
 0x90a   :  { %v972_v15 = vpop.permute.xlu0 %971  ;;  %v1239_v16 = vpop.permute.xlu1 %1238 }
 0x90b   :  { %4105 = vmatmul.mubr.msk.f32.gmra.mxu1 %vm557_vm8, %v843_v8 }
 0x90c   :  { %v4522_v9 = vpop.eup %4521  ;;  %4113 = vmatpush3.xpose.msk.msra.mxu1 %vm458_vm7, %v976_v6  ;;  %4107 = vmatprep.mubr.msk.f32.mxu1 %vm4685_vm4, %v4684_v1 }
 0x90d   :  { %4114 = vmatprep.subr.mxu1 %v4684_v1  ;;  %v844_v11 = vmul.f32 %v4522_v9, %v4516_v59 }
 0x90e   :  { %v1233_v17 = vpop.permute.xlu0 %1232  ;;  %v1235_v18 = vpop.permute.xlu1 %1234 }
 0x90f   :  { %4108 = vmatmul.mubr.msk.f32.gmra.mxu1 %vm557_vm8, %v844_v11 }
 0x910   :  { %4115 = vmatpush3.xpose.msk.msra.mxu1 %vm458_vm7, %v974_v0  ;;  %4116 = vmatprep.mubr.msk.f32.mxu1 %vm4685_vm4, %v4684_v1 }
 0x911   :  { %4140 = vmatprep.subr.mxu1 %v4684_v1 }
 0x912   :  { %v1237_v19 = vpop.permute.xlu0 %1236 }
 0x913   :  { %4117 = vmatmul.mubr.msk.f32.vlgmr.msra.gmra.mxu1 %vm458_vm7, %v968_v10 }
 0x914   :  { %4141 = vmatpush3.xpose.msk.msra.mxu1 %vm458_vm7, %v1243_v12  ;;  %4119 = vmatprep.mubr.msk.f32.mxu1 %vm4685_vm4, %v4684_v1 }
 0x915   :  { %4142 = vmatprep.subr.mxu1 %v4684_v1 }
 0x917   :  { %4120 = vmatmul.mubr.msk.f32.gmra.mxu1 %vm458_vm7, %v970_v13 }
 0x918   :  { %4143 = vmatpush3.xpose.msk.msra.mxu1 %vm458_vm7, %v1241_v14  ;;  %4122 = vmatprep.mubr.msk.f32.mxu1 %vm4685_vm4, %v4684_v1 }
 0x919   :  { %4144 = vmatprep.subr.mxu1 %v4684_v1 }
 0x91b   :  { %4123 = vmatmul.mubr.msk.f32.gmra.mxu1 %vm458_vm7, %v972_v15 }
 0x91c   :  { %4145 = vmatpush3.xpose.msk.msra.mxu1 %vm458_vm7, %v1239_v16  ;;  %4146 = vmatprep.mubr.msk.f32.mxu1 %vm4685_vm4, %v4684_v1 }
 0x91d   :  { %4170 = vmatprep.subr.mxu1 %v4684_v1 }
 0x91f   :  { %4147 = vmatmul.mubr.msk.f32.vlgmr.msra.gmra.mxu1 %vm458_vm7, %v1233_v17 }
 0x920   :  { %4149 = vmatprep.mubr.msk.f32.mxu1 %vm4685_vm4, %v4684_v1 }
 0x923   :  { %4150 = vmatmul.mubr.msk.f32.gmra.mxu1 %vm458_vm7, %v1235_v18 }
 0x924   :  { %4152 = vmatprep.mubr.msk.f32.mxu1 %vm4685_vm4, %v4684_v1 }
 0x927   :  { %4153 = vmatmul.mubr.msk.f32.gmra.mxu1 %vm458_vm7, %v1237_v19 }
 0x928   :  { %4178 = vmatprep.mubr.msk.f32.mxu1 %vm4685_vm4, %v4684_v1 }
 0x9c7   :  { %v5202_v20 = vpop.f32.mrf.mxu1 }
 0x9c9   :  { %v4103_v23 = vpop.f32.mrf.mxu1 }
 0x9cb   :  { %v5204_v24 = vpop.f32.mrf.mxu1 }
 0x9cd   :  { %v4106_v25 = vpop.f32.mrf.mxu1 }
 0x9cf   :  { %v5206_v26 = vpop.f32.mrf.mxu1 }
 0x9d1   :  { %v4109_v27 = vpop.f32.mrf.mxu1 }
 0x9d3   :  { %v1057_v29 = vpop.f32.mrf.mxu1 }
 0x9d4   :  { %v1071_v30 = vmul.f32 0.35355338, %v1057_v29 }
 0x9d5   :  { %v4118_v31 = vpop.f32.mrf.mxu1 }
 0x9d6   :  { %v1074_v32 = vadd.f32 %v1071_v30, %v5045_v28 }
 0x9d7   :  { %v1062_v34 = vpop.f32.mrf.mxu1 }
 0x9d8   :  { %v1072_v35 = vmul.f32 0.35355338, %v1062_v34  ;;  %v1077_v36 = vsel %vm557_vm8, %v1074_v32, -inf }
 0x9d9   :  { %1078 = vmax.xlane.f32.xlu1 %v1077_v36  ;;  %v4121_v37 = vpop.f32.mrf.mxu1 }
 0x9da   :  { %v1075_v38 = vadd.f32 %v1072_v35, %v5051_v33 }
 0x9db   :  { %v1067_v40 = vpop.f32.mrf.mxu1 }
 0x9dc   :  { %v1073_v41 = vmul.f32 0.35355338, %v1067_v40  ;;  %v1080_v43 = vsel %vm557_vm8, %v1075_v38, -inf }
 0x9dd   :  { %1081 = vmax.xlane.f32.xlu0 %v1080_v43  ;;  %v4124_v44 = vpop.f32.mrf.mxu1 }
 0x9de   :  { %v1076_v46 = vadd.f32 %v1073_v41, %v5058_v39 }
 0x9df   :  { %v1322_v47 = vpop.f32.mrf.mxu1 }
 0x9e0   :  { %v1336_v48 = vmul.f32 0.35355338, %v1322_v47  ;;  %v1083_v49 = vsel %vm564_vm9, %v1076_v46, -inf }
 0x9e1   :  { %1084 = vmax.xlane.f32.xlu0 %v1083_v49  ;;  %v4148_v50 = vpop.f32.mrf.mxu1 }
 0x9e2   :  { %v1339_v51 = vadd.f32 %v1336_v48, %v5045_v28 }
 0x9e3   :  { %v1327_v52 = vpop.f32.mrf.mxu1 }
 0x9e4   :  { %v1337_v53 = vmul.f32 0.35355338, %v1327_v52  ;;  %v1342_v54 = vsel %vm557_vm8, %v1339_v51, -inf }
 0x9e5   :  { %1343 = vmax.xlane.f32.xlu0 %v1342_v54  ;;  %v4151_v45 = vpop.f32.mrf.mxu1 }
 0x9e6   :  { %v1340_v55 = vadd.f32 %v1337_v53, %v5051_v33 }
 0x9e7   :  { %v1332_v56 = vpop.f32.mrf.mxu1 }
 0x9e8   :  { %v1338_v57 = vmul.f32 0.35355338, %v1332_v56  ;;  %v1345_v58 = vsel %vm557_vm8, %v1340_v55, -inf  ;;  %v1497_v56 = vld [vmem:[%s6054_s11 + $0x18] sm:$0xff] }
 0x9e9   :  { %1346 = vmax.xlane.f32.xlu1 %v1345_v58  ;;  %v4154_v59 = vpop.f32.mrf.mxu1  ;;  %4171 = vmatpush3.msra.mxu1 %v1497_v56  ;;  %v1496_v58 = vld [vmem:[%s6054_s11 + $0x10] sm:$0xff]  ;;  %v1656_v56 = vld [vmem:[%s6058_s15] sm:$0xff] }
 0x9ea   :  { %v1341_v60 = vadd.f32 %v1338_v57, %v5058_v39  ;;  %4172 = vmatprep.subr.mxu1 %v4684_v1 }
 0x9eb   :  { %4173 = vmatpush3.msra.mxu1 %v1496_v58 }
 0x9ec   :  { %v1348_v62 = vsel %vm564_vm9, %v1341_v60, -inf  ;;  %4174 = vmatprep.subr.mxu1 %v4684_v1 }
 0x9ed   :  { %1349 = vmax.xlane.f32.xlu0 %v1348_v62  ;;  %v1495_v62 = vld [vmem:[%s6054_s11 + $0x8] sm:$0xff] }
 0x9ee   :  { %4175 = vmatpush3.msra.mxu1 %v1495_v62 }
 0x9ef   :  { %4176 = vmatprep.subr.mxu1 %v4684_v1 }
 0x9fa   :  { %1114 = vrot.lane.b32.xlu1 %v5126_v42, %s6074_s2 }
 0x9fe   :  { %1110 = vrot.lane.b32.xlu1 %v5020_v22, %s6074_s2 }
 0xa02   :  { %1379 = vrot.lane.b32.xlu1 %v5141_v61, %s6072_s6 }
 0xa03   :  { %1112 = vrot.lane.b32.xlu0 %v5016_v21, %s6074_s2 }
 0xa62   :  { %v1079_v28 = vpop.xlane.xlu1 %1078 }
 0xa63   :  { %v1086_v33 = vsub.f32 %v1074_v32, %v1079_v28  ;;  %v1494_v28 = vld [vmem:[%s6054_s11] sm:$0xff] }
 0xa64   :  { %4177 = vmatpush3.msra.mxu1 %v1494_v28 }
 0xa65   :  { %v1089_v39 = vmul.f32 1.442695, %v1086_v33  ;;  %4204 = vmatprep.subr.mxu1 %v4684_v1 }
 0xa66   :  { %v1082_v63 = vpop.xlane.xlu0 %1081 }
 0xa67   :  { %4523 = vpow2.f32 %v1089_v39  ;;  %v1087_v0 = vsub.f32 %v1075_v38, %v1082_v63 }
 0xa69   :  { %v1091_v2 = vmul.f32 1.442695, %v1087_v0 }
 0xa6a   :  { %v1085_v3 = vpop.xlane.xlu0 %1084 }
 0xa6b   :  { %4525 = vpow2.f32 %v1091_v2  ;;  %v1088_v42 = vsub.f32 %v1076_v46, %v1085_v3 }
 0xa6d   :  { %v1093_v4 = vmul.f32 1.442695, %v1088_v42 }
 0xa6e   :  { %v1344_v5 = vpop.xlane.xlu0 %1343 }
 0xa6f   :  { %4527 = vpow2.f32 %v1093_v4  ;;  %v1351_v6 = vsub.f32 %v1339_v51, %v1344_v5 }
 0xa71   :  { %v1354_v7 = vmul.f32 1.442695, %v1351_v6 }
 0xa72   :  { %v1347_v8 = vpop.xlane.xlu1 %1346 }
 0xa73   :  { %4529 = vpow2.f32 %v1354_v7  ;;  %v1352_v61 = vsub.f32 %v1340_v55, %v1347_v8 }
 0xa74   :  { %v4524_v9 = vpop.eup %4523 }
 0xa75   :  { %v1356_v10 = vmul.f32 1.442695, %v1352_v61  ;;  %v1095_v11 = vsel %vm557_vm8, %v4524_v9, 0.0 }
 0xa76   :  { %1096 = vadd.xlane.f32.xlu1 %v1095_v11  ;;  %v1115_v12 = vpop.permute.xlu1 %1114  ;;  %v1350_v13 = vpop.xlane.xlu0 %1349 }
 0xa77   :  { %4531 = vpow2.f32 %v1356_v10  ;;  %v1353_v14 = vsub.f32 %v1341_v60, %v1350_v13  ;;  %4126 = vmatpush3.msk.msra.mxu0 %vm609_vm10, %v1115_v12 }
 0xa78   :  { %v4526_v15 = vpop.eup %4525  ;;  %4127 = vmatprep.subr.mxu0 %v4684_v1 }
 0xa79   :  { %v1358_v16 = vmul.f32 1.442695, %v1353_v14  ;;  %v1098_v17 = vsel %vm557_vm8, %v4526_v15, 0.0  ;;  %v3745_v14 = vld [vmem:[%s6055_s12] ss:$0 sm:$0xff] }
 0xa7a   :  { %1099 = vadd.xlane.f32.xlu0 %v1098_v17  ;;  %v1113_v18 = vpop.permute.xlu0 %1112  ;;  %v1111_v23 = vpop.permute.xlu1 %1110 }
 0xa7b   :  { %4533 = vpow2.f32 %v1358_v16  ;;  %4128 = vmatpush3.msra.mxu0 %v1113_v18  ;;  %v4631_v18 = vld [vmem:[#allocation3] sm:$0xff] }
 0xa7c   :  { %v4528_v19 = vpop.eup %4527  ;;  %4129 = vmatprep.subr.mxu0 %v4684_v1 }
 0xa7d   :  { %4130 = vmatpush3.msra.mxu0 %v1111_v23  ;;  %v1101_v25 = vsel %vm564_vm9, %v4528_v19, 0.0 }
 0xa7e   :  { %1102 = vadd.xlane.f32.xlu1 %v1101_v25  ;;  %4155 = vmatprep.subr.mxu0 %v4684_v1  ;;  %v1380_v35 = vpop.permute.xlu1 %1379 }
 0xa80   :  { %v4530_v27 = vpop.eup %4529 }
 0xa81   :  { %v1360_v29 = vsel %vm557_vm8, %v4530_v27, 0.0 }
 0xa82   :  { %1361 = vadd.xlane.f32.xlu0 %v1360_v29 }
 0xa84   :  { %v4532_v30 = vpop.eup %4531 }
 0xa85   :  { %v1363_v31 = vsel %vm557_vm8, %v4532_v30, 0.0 }
 0xa86   :  { %1364 = vadd.xlane.f32.xlu1 %v1363_v31 }
 0xa88   :  { %v4534_v32 = vpop.eup %4533 }
 0xa89   :  { %v1366_v34 = vsel %vm564_vm9, %v4534_v32, 0.0 }
 0xa8a   :  { %1367 = vadd.xlane.f32.xlu0 %v1366_v34 }
 0xa97   :  { %1377 = vrot.lane.b32.xlu1 %v5016_v21, %s6072_s6 }
 0xa9b   :  { %947 = vrot.lane.b32.xlu1 %v5202_v20, %s6089_s27 }
 0xaa0   :  { %1375 = vrot.lane.b32.xlu0 %v5020_v22, %s6072_s6 }
 0xaa4   :  { %949 = vrot.lane.b32.xlu0 %v5204_v24, %s6089_s27 }
 0xaff   :  { %v1097_v36 = vpop.xlane.xlu1 %1096 }
 0xb00   :  { %4535 = vrcp.f32 %v1097_v36 }
 0xb03   :  { %v1100_v37 = vpop.xlane.xlu0 %1099 }
 0xb04   :  { %4537 = vrcp.f32 %v1100_v37  ;;  %v4633_v37 = vld [vmem:[#allocation3 + $0x10] sm:$0xf] }
 0xb07   :  { %v1103_v38 = vpop.xlane.xlu1 %1102 }
 0xb08   :  { %4539 = vrcp.f32 %v1103_v38 }
 0xb0b   :  { %v1362_v40 = vpop.xlane.xlu0 %1361 }
 0xb0c   :  { %4541 = vrcp.f32 %v1362_v40 }
 0xb0d   :  { %v4536_v21 = vpop.eup %4535 }
 0xb0e   :  { %v1107_v41 = vmul.f32 %v4536_v21, %v4524_v9 }
 0xb0f   :  { %v1365_v43 = vpop.xlane.xlu1 %1364 }
 0xb10   :  { %4543 = vrcp.f32 %v1365_v43  ;;  %4132 = vmatmul.mubr.msk.f32.vlgmr.msra.gmra.mxu0 %vm557_vm8, %v1107_v41 }
 0xb11   :  { %v4538_v20 = vpop.eup %4537  ;;  %4156 = vmatpush3.msk.msra.mxu0 %vm609_vm10, %v1380_v35  ;;  %4134 = vmatprep.mubr.msk.f32.mxu0 %vm4685_vm4, %v4684_v1 }
 0xb12   :  { %4157 = vmatprep.subr.mxu0 %v4684_v1  ;;  %v1108_v22 = vmul.f32 %v4538_v20, %v4526_v15 }
 0xb13   :  { %v1378_v24 = vpop.permute.xlu1 %1377  ;;  %v1368_v44 = vpop.xlane.xlu0 %1367 }
 0xb14   :  { %4545 = vrcp.f32 %v1368_v44  ;;  %4135 = vmatmul.mubr.msk.f32.gmra.mxu0 %vm557_vm8, %v1108_v22 }
 0xb15   :  { %v4540_v46 = vpop.eup %4539  ;;  %4158 = vmatpush3.msra.mxu0 %v1378_v24  ;;  %4137 = vmatprep.mubr.msk.f32.mxu0 %vm4685_vm4, %v4684_v1 }
 0xb16   :  { %4159 = vmatprep.subr.mxu0 %v4684_v1  ;;  %v1109_v47 = vmul.f32 %v4540_v46, %v4528_v19 }
 0xb17   :  { %v948_v48 = vpop.permute.xlu1 %947  ;;  %v1376_v49 = vpop.permute.xlu0 %1375 }
 0xb18   :  { %957 = vst.msk [vmem:[#allocation5] sm:$0xff] %vm956_vm12, %v948_v48  ;;  %4138 = vmatmul.mubr.msk.f32.gmra.mxu0 %vm557_vm8, %v1109_v47 }
 0xb19   :  { %v4542_v50 = vpop.eup %4541  ;;  %4160 = vmatpush3.msra.mxu0 %v1376_v49  ;;  %4161 = vmatprep.mubr.msk.f32.mxu0 %vm4685_vm4, %v4684_v1 }
 0xb1a   :  { %v1372_v51 = vmul.f32 %v4542_v50, %v4530_v27  ;;  %4187 = vmatprep.subr.mxu0 %v4684_v1 }
 0xb1b   :  { %v950_v52 = vpop.permute.xlu0 %949 }
 0xb1c   :  { %958 = vst.msk [vmem:[#allocation5 + $0x8] sm:$0xff] %vm956_vm12, %v950_v52  ;;  %4162 = vmatmul.mubr.msk.f32.vlgmr.msra.gmra.mxu0 %vm557_vm8, %v1372_v51 }
 0xb1d   :  { %v4544_v53 = vpop.eup %4543  ;;  %4164 = vmatprep.mubr.msk.f32.mxu0 %vm4685_vm4, %v4684_v1 }
 0xb1e   :  { %v1373_v54 = vmul.f32 %v4544_v53, %v4532_v30  ;;  %v4632_v30 = vld [vmem:[#allocation3 + $0x8] sm:$0xff] }
 0xb20   :  { %4165 = vmatmul.mubr.msk.f32.gmra.mxu0 %vm557_vm8, %v1373_v54  ;;  %v1659_v54 = vld [vmem:[%s6058_s15 + $0x18] sm:$0xff] }
 0xb21   :  { %v4546_v45 = vpop.eup %4545  ;;  %4167 = vmatprep.mubr.msk.f32.mxu0 %vm4685_vm4, %v4684_v1  ;;  %4188 = vmatpush3.msra.mxu0 %v1659_v54 }
 0xb22   :  { %v1374_v55 = vmul.f32 %v4546_v45, %v4534_v32  ;;  %4189 = vmatprep.subr.mxu0 %v4684_v1  ;;  %v1658_v45 = vld [vmem:[%s6058_s15 + $0x10] sm:$0xff] }
 0xb23   :  { %4190 = vmatpush3.msra.mxu0 %v1658_v45 }
 0xb24   :  { %4168 = vmatmul.mubr.msk.f32.gmra.mxu0 %vm557_vm8, %v1374_v55  ;;  %v1657_v55 = vld [vmem:[%s6058_s15 + $0x8] sm:$0xff]  ;;  %4191 = vmatprep.subr.mxu0 %v4684_v1 }
 0xb25   :  { %4195 = vmatprep.mubr.msk.f32.mxu0 %vm4685_vm4, %v4684_v1  ;;  %4192 = vmatpush3.msra.mxu0 %v1657_v55 }
 0xb26   :  { %4193 = vmatprep.subr.mxu0 %v4684_v1 }
 0xb27   :  { %4194 = vmatpush3.msra.mxu0 %v1656_v56 }
 0xb28   :  { %4245 = vmatprep.subr.mxu0 %v4684_v1 }
 0xbd0   :  { %v1195_v57 = vpop.f32.mrf.mxu0 }
 0xbd1   :  { %1212 = vrot.lane.b32.xlu0 %v1195_v57, %s6087_s7 }
 0xbd2   :  { %v4133_v59 = vpop.f32.mrf.mxu0 }
 0xbd4   :  { %v1200_v60 = vpop.f32.mrf.mxu0 }
 0xbd5   :  { %1214 = vrot.lane.b32.xlu1 %v1200_v60, %s6087_s7 }
 0xbd6   :  { %v4136_v33 = vpop.f32.mrf.mxu0 }
 0xbd8   :  { %v1205_v39 = vpop.f32.mrf.mxu0 }
 0xbda   :  { %v4139_v63 = vpop.f32.mrf.mxu0 }
 0xbdc   :  { %v1460_v0 = vpop.f32.mrf.mxu0 }
 0xbdd   :  { %1477 = vrot.lane.b32.xlu1 %v1460_v0, %s6085_s4 }
 0xbde   :  { %v4163_v2 = vpop.f32.mrf.mxu0 }
 0xbdf   :  { %v3749_v2 = vld [vmem:[%s6056_s13] ss:$0 sm:$0xff] }
 0xbe0   :  { %v1465_v3 = vpop.f32.mrf.mxu0 }
 0xbe1   :  { %951 = vrot.lane.b32.xlu1 %v5206_v26, %s6089_s27  ;;  %1479 = vrot.lane.b32.xlu0 %v1465_v3, %s6085_s4 }
 0xbe2   :  { %v4166_v42 = vpop.f32.mrf.mxu0 }
 0xbe3   :  { %v3750_v42 = vld [vmem:[%s6057_s14] ss:$0 sm:$0xff] }
 0xbe4   :  { %v1470_v4 = vpop.f32.mrf.mxu0 }
 0xbe5   :  { %1216 = vrot.lane.b32.xlu0 %v1205_v39, %s6087_s7  ;;  %1481 = vrot.lane.b32.xlu1 %v1470_v4, %s6085_s4 }
 0xbe6   :  { %v4169_v5 = vpop.f32.mrf.mxu0 }
 0xc43   :  { %v1213_v6 = vpop.permute.xlu0 %1212 }
 0xc44   :  { %1222 = vst.msk [vmem:[#allocation5] sm:$0xff] %vm1221_vm13, %v1213_v6 }
 0xc47   :  { %v1215_v7 = vpop.permute.xlu1 %1214 }
 0xc48   :  { %1223 = vst.msk [vmem:[#allocation5 + $0x8] sm:$0xff] %vm1221_vm13, %v1215_v7 }
 0xc4f   :  { %v1478_v8 = vpop.permute.xlu1 %1477 }
 0xc50   :  { %1487 = vst.msk [vmem:[#allocation5] sm:$0xff] %vm1486_vm14, %v1478_v8 }
 0xc53   :  { %v952_v26 = vpop.permute.xlu1 %951  ;;  %v1480_v61 = vpop.permute.xlu0 %1479 }
 0xc54   :  { %960 = vst.msk [vmem:[#allocation5 + $0x10] sm:$0xf] %vm959_vm15, %v952_v26 }
 0xc55   :  { %1488 = vst.msk [vmem:[#allocation5 + $0x8] sm:$0xff] %vm1486_vm14, %v1480_v61 }
 0xc57   :  { %v1217_v9 = vpop.permute.xlu0 %1216  ;;  %v1482_v10 = vpop.permute.xlu1 %1481  ;;  %v1491_v11 = vld [vmem:[#allocation5] sm:$0xff] }
 0xc58   :  { %1225 = vst.msk [vmem:[#allocation5 + $0x10] sm:$0xf] %vm1224_vm0, %v1217_v9  ;;  %4179 = vmatmul.mubr.msk.f32.vlgmr.msra.gmra.mxu1 %vm185_vm2, %v1491_v11 }
 0xc59   :  { %1490 = vst.msk [vmem:[#allocation5 + $0x10] sm:$0xf] %vm1489_vm1, %v1482_v10  ;;  %4181 = vmatprep.mubr.msk.f32.mxu1 %vm4685_vm4, %v4684_v1 }
 0xc5c   :  { %v1492_v12 = vld [vmem:[#allocation5 + $0x8] sm:$0xff] }
 0xc5d   :  { %4182 = vmatmul.mubr.msk.f32.gmra.mxu1 %vm185_vm2, %v1492_v12  ;;  %v1798_v12 = vld [vmem:[%s6060_s17 + $0x78] sm:$0xff] }
 0xc5e   :  { %4184 = vmatprep.mubr.msk.f32.mxu1 %vm4685_vm4, %v4684_v1  ;;  %4205 = vmatpush3.msra.mxu1 %v1798_v12 }
 0xc5f   :  { %4206 = vmatprep.subr.mxu1 %v4684_v1 }
 0xc60   :  { %v1493_v13 = vld [vmem:[#allocation5 + $0x10] sm:$0xf] }
 0xc61   :  { %4185 = vmatmul.mubr.msk.f32.gmra.mxu1 %vm185_vm2, %v1493_v13  ;;  %v1797_v13 = vld [vmem:[%s6060_s17 + $0x70] sm:$0xff] }
 0xc62   :  { %4236 = vmatprep.mubr.msk.f32.mxu1 %vm4685_vm4, %v4684_v1  ;;  %4207 = vmatpush3.msra.mxu1 %v1797_v13 }
 0xc63   :  { %4208 = vmatprep.subr.mxu1 %v4684_v1 }
 0xd18   :  { %v1580_v15 = vpop.f32.mrf.mxu1 }
 0xd19   :  { %v1581_v16 = vadd.f32 %v3745_v14, %v1580_v15  ;;  %v1795_v15 = vld [vmem:[%s6060_s17 + $0x60] sm:$0xff] }
 0xd1a   :  { %v4180_v17 = vpop.f32.mrf.mxu1 }
 0xd1b   :  { %v5313_v19 = vadd.f32 %v4631_v18, %v1581_v16  ;;  %v1794_v16 = vld [vmem:[%s6060_s17 + $0x58] sm:$0xff]  ;;  %v1793_v17 = vld [vmem:[%s6060_s17 + $0x50] sm:$0xff]  ;;  %v1792_v18 = vld [vmem:[%s6060_s17 + $0x48] sm:$0xff] }
 0xd1d   :  { %v1585_v23 = vpop.f32.mrf.mxu1  ;;  %v1599_v27 = vsel %vm185_vm2, %v5313_v19, 0.0 }
 0xd1e   :  { %v1586_v25 = vadd.f32 %v3745_v14, %v1585_v23  ;;  %1600 = vadd.xlane.f32.xlu0 %v1599_v27  ;;  %v1791_v23 = vld [vmem:[%s6060_s17 + $0x40] sm:$0xff]  ;;  %v1789_v27 = vld [vmem:[%s6060_s17 + $0x30] sm:$0xff] }
 0xd1f   :  { %v4183_v29 = vpop.f32.mrf.mxu1 }
 0xd20   :  { %v5317_v31 = vadd.f32 %v4632_v30, %v1586_v25  ;;  %v1790_v25 = vld [vmem:[%s6060_s17 + $0x38] sm:$0xff]  ;;  %v1788_v29 = vld [vmem:[%s6060_s17 + $0x28] sm:$0xff]  ;;  %v1787_v30 = vld [vmem:[%s6060_s17 + $0x20] sm:$0xff] }
 0xd21   :  { %v1590_v32 = vpop.f32.mrf.mxu1 }
 0xd22   :  { %v1602_v34 = vsel %vm185_vm2, %v5317_v31, 0.0  ;;  %v1591_v35 = vadd.f32 %v3745_v14, %v1590_v32  ;;  %v1796_v14 = vld [vmem:[%s6060_s17 + $0x68] sm:$0xff]  ;;  %v1786_v32 = vld [vmem:[%s6060_s17 + $0x18] sm:$0xff] }
 0xd23   :  { %1603 = vadd.xlane.f32.xlu1 %v1602_v34  ;;  %v4186_v36 = vpop.f32.mrf.mxu1  ;;  %4209 = vmatpush3.msra.mxu1 %v1796_v14  ;;  %v1785_v34 = vld [vmem:[%s6060_s17 + $0x10] sm:$0xff] }
 0xd24   :  { %v5321_v38 = vadd.f32 %v4633_v37, %v1591_v35  ;;  %4210 = vmatprep.subr.mxu1 %v4684_v1  ;;  %v1784_v35 = vld [vmem:[%s6060_s17 + $0x8] sm:$0xff]  ;;  %v1783_v36 = vld [vmem:[%s6060_s17] sm:$0xff] }
 0xd25   :  { %4211 = vmatpush3.msra.mxu1 %v1795_v15  ;;  %v3751_v37 = vld [vmem:[%s6059_s16] ss:$0 sm:$0xff] }
 0xd26   :  { %v1605_v40 = vsel %vm196_vm3, %v5321_v38, 0.0  ;;  %4212 = vmatprep.subr.mxu1 %v4684_v1 }
 0xd27   :  { %1606 = vadd.xlane.f32.xlu0 %v1605_v40  ;;  %4213 = vmatpush3.msra.mxu1 %v1794_v16 }
 0xd28   :  { %4214 = vmatprep.subr.mxu1 %v4684_v1 }
 0xd29   :  { %4215 = vmatpush3.msra.mxu1 %v1793_v17 }
 0xd2a   :  { %4216 = vmatprep.subr.mxu1 %v4684_v1 }
 0xd2b   :  { %4217 = vmatpush3.msra.mxu1 %v1792_v18 }
 0xd2c   :  { %4218 = vmatprep.subr.mxu1 %v4684_v1 }
 0xd2d   :  { %4219 = vmatpush3.msra.mxu1 %v1791_v23 }
 0xd2e   :  { %4220 = vmatprep.subr.mxu1 %v4684_v1 }
 0xd2f   :  { %4221 = vmatpush3.msra.mxu1 %v1790_v25 }
 0xd30   :  { %4222 = vmatprep.subr.mxu1 %v4684_v1 }
 0xd31   :  { %4223 = vmatpush3.msra.mxu1 %v1789_v27 }
 0xd32   :  { %4224 = vmatprep.subr.mxu1 %v4684_v1 }
 0xd33   :  { %4225 = vmatpush3.msra.mxu1 %v1788_v29 }
 0xd34   :  { %4226 = vmatprep.subr.mxu1 %v4684_v1 }
 0xd35   :  { %4227 = vmatpush3.msra.mxu1 %v1787_v30 }
 0xd36   :  { %4228 = vmatprep.subr.mxu1 %v4684_v1 }
 0xd37   :  { %4229 = vmatpush3.msra.mxu1 %v1786_v32 }
 0xd38   :  { %4230 = vmatprep.subr.mxu1 %v4684_v1 }
 0xd39   :  { %4231 = vmatpush3.msra.mxu1 %v1785_v34 }
 0xd3a   :  { %4232 = vmatprep.subr.mxu1 %v4684_v1 }
 0xd3b   :  { %4233 = vmatpush3.msra.mxu1 %v1784_v35 }
 0xd3c   :  { %4234 = vmatprep.subr.mxu1 %v4684_v1 }
 0xd3d   :  { %4235 = vmatpush3.msra.mxu1 %v1783_v36 }
 0xd3e   :  { %4277 = vmatprep.subr.mxu1 %v4684_v1 }
 0xda7   :  { %v1601_v21 = vpop.xlane.xlu0 %1600 }
 0xda8   :  { %v1608_v41 = vmul.f32 0.03125, %v1601_v21 }
 0xdaa   :  { %v1611_v43 = vsub.f32 %v5313_v19, %v1608_v41 }
 0xdac   :  { %v1604_v20 = vpop.xlane.xlu1 %1603  ;;  %v1614_v24 = vmul.f32 %v1611_v43, %v1611_v43 }
 0xdad   :  { %v1609_v22 = vmul.f32 0.03125, %v1604_v20 }
 0xdae   :  { %v1617_v46 = vsel %vm185_vm2, %v1614_v24, 0.0 }
 0xdaf   :  { %v1612_v44 = vsub.f32 %v5317_v31, %v1609_v22  ;;  %1618 = vadd.xlane.f32.xlu0 %v1617_v46 }
 0xdb0   :  { %v1607_v47 = vpop.xlane.xlu0 %1606 }
 0xdb1   :  { %v1615_v48 = vmul.f32 %v1612_v44, %v1612_v44  ;;  %v1610_v49 = vmul.f32 0.03125, %v1607_v47 }
 0xdb3   :  { %v1620_v50 = vsel %vm185_vm2, %v1615_v48, 0.0  ;;  %v1613_v51 = vsub.f32 %v5321_v38, %v1610_v49 }
 0xdb4   :  { %1621 = vadd.xlane.f32.xlu0 %v1620_v50 }
 0xdb5   :  { %v1616_v52 = vmul.f32 %v1613_v51, %v1613_v51 }
 0xdb7   :  { %v1623_v53 = vsel %vm196_vm3, %v1616_v52, 0.0 }
 0xdb8   :  { %1624 = vadd.xlane.f32.xlu1 %v1623_v53 }
 0xe38   :  { %v1619_v57 = vpop.xlane.xlu0 %1618 }
 0xe39   :  { %v1626_v58 = vmul.f32 0.03125, %v1619_v57 }
 0xe3b   :  { %v1629_v59 = vadd.f32 1e-05, %v1626_v58 }
 0xe3d   :  { %v1622_v60 = vpop.xlane.xlu0 %1621  ;;  %4547 = vrsqrt.f32 %v1629_v59 }
 0xe3e   :  { %v1627_v62 = vmul.f32 0.03125, %v1622_v60 }
 0xe40   :  { %v1630_v28 = vadd.f32 1e-05, %v1627_v62 }
 0xe41   :  { %v1625_v33 = vpop.xlane.xlu1 %1624 }
 0xe42   :  { %4549 = vrsqrt.f32 %v1630_v28  ;;  %v1628_v39 = vmul.f32 0.03125, %v1625_v33 }
 0xe44   :  { %v1631_v63 = vadd.f32 1e-05, %v1628_v39 }
 0xe46   :  { %4551 = vrsqrt.f32 %v1631_v63 }
 0xe4a   :  { %v4548_v0 = vpop.eup %4547 }
 0xe4b   :  { %v1635_v3 = vmul.f32 %v4548_v0, %v1611_v43 }
 0xe4d   :  { %v1644_v4 = vmul.f32 %v3749_v2, %v1635_v3 }
 0xe4f   :  { %v4550_v5 = vpop.eup %4549  ;;  %v1653_v6 = vadd.f32 %v3750_v42, %v1644_v4 }
 0xe50   :  { %v1636_v7 = vmul.f32 %v4550_v5, %v1612_v44 }
 0xe51   :  { %4196 = vmatmul.mubr.msk.f32.vlgmr.msra.gmra.mxu0 %vm185_vm2, %v1653_v6 }
 0xe52   :  { %v1645_v8 = vmul.f32 %v3749_v2, %v1636_v7  ;;  %4198 = vmatprep.mubr.msk.f32.mxu0 %vm4685_vm4, %v4684_v1  ;;  %v3755_v7 = vld [vmem:[%s6061_s18] ss:$0 sm:$0xff] }
 0xe53   :  { %v4552_v26 = vpop.eup %4551 }
 0xe54   :  { %v1654_v61 = vadd.f32 %v3750_v42, %v1645_v8  ;;  %v1637_v9 = vmul.f32 %v4552_v26, %v1613_v51 }
 0xe56   :  { %4199 = vmatmul.mubr.msk.f32.gmra.mxu0 %vm185_vm2, %v1654_v61  ;;  %v1646_v10 = vmul.f32 %v3749_v2, %v1637_v9 }
 0xe57   :  { %4201 = vmatprep.mubr.msk.f32.mxu0 %vm4685_vm4, %v4684_v1 }
 0xe58   :  { %v1655_v11 = vadd.f32 %v3750_v42, %v1646_v10 }
 0xe5a   :  { %4202 = vmatmul.mubr.msk.f32.gmra.mxu0 %vm185_vm2, %v1655_v11 }
 0xe5b   :  { %4253 = vmatprep.mubr.msk.f32.mxu0 %vm4685_vm4, %v4684_v1 }
 0xf11   :  { %v1742_v40 = vpop.f32.mrf.mxu0 }
 0xf12   :  { %v1743_v21 = vadd.f32 %v3751_v37, %v1742_v40 }
 0xf13   :  { %v4197_v41 = vpop.f32.mrf.mxu0 }
 0xf14   :  { %v1756_v43 = vmul.f32 %v1743_v21, %v1743_v21 }
 0xf16   :  { %v1747_v20 = vpop.f32.mrf.mxu0  ;;  %v1759_v22 = vmul.f32 %v1756_v43, %v1743_v21 }
 0xf17   :  { %v1748_v24 = vadd.f32 %v3751_v37, %v1747_v20 }
 0xf18   :  { %v4200_v44 = vpop.f32.mrf.mxu0  ;;  %v1762_v46 = vmul.f32 0.044715, %v1759_v22 }
 0xf19   :  { %v1757_v47 = vmul.f32 %v1748_v24, %v1748_v24  ;;  %v3763_v44 = vld [vmem:[%s6052_s9 + $0x38] sm:$0xff] }
 0xf1a   :  { %v1765_v48 = vadd.f32 %v1762_v46, %v1743_v21  ;;  %v1752_v50 = vpop.f32.mrf.mxu0  ;;  %4246 = vmatpush3.msra.mxu0 %v3763_v44  ;;  %v3762_v46 = vld [vmem:[%s6052_s9 + $0x30] sm:$0xff] }
 0xf1b   :  { %v1760_v49 = vmul.f32 %v1757_v47, %v1748_v24  ;;  %v1753_v51 = vadd.f32 %v3751_v37, %v1752_v50  ;;  %4247 = vmatprep.subr.mxu0 %v4684_v1  ;;  %v3761_v47 = vld [vmem:[%s6052_s9 + $0x28] sm:$0xff] }
 0xf1c   :  { %v1768_v52 = vmul.f32 0.7978846, %v1765_v48  ;;  %v4203_v54 = vpop.f32.mrf.mxu0  ;;  %4248 = vmatpush3.msra.mxu0 %v3762_v46  ;;  %v3760_v48 = vld [vmem:[%s6052_s9 + $0x20] sm:$0xff]  ;;  %s6113_s9 = smov 8  }
 0xf1d   :  { %v1763_v53 = vmul.f32 0.044715, %v1760_v49  ;;  %v1758_v45 = vmul.f32 %v1753_v51, %v1753_v51  ;;  %4249 = vmatprep.subr.mxu0 %v4684_v1 }
 0xf1e   :  { %4553 = vtanh.f32 %v1768_v52  ;;  %4250 = vmatpush3.msra.mxu0 %v3761_v47 }
 0xf1f   :  { %v1766_v55 = vadd.f32 %v1763_v53, %v1748_v24  ;;  %v1761_v56 = vmul.f32 %v1758_v45, %v1753_v51  ;;  %4251 = vmatprep.subr.mxu0 %v4684_v1 }
 0xf20   :  { %4252 = vmatpush3.msra.mxu0 %v3760_v48 }
 0xf21   :  { %v1769_v57 = vmul.f32 0.7978846, %v1766_v55  ;;  %v1764_v58 = vmul.f32 0.044715, %v1761_v56  ;;  %4262 = vmatprep.subr.mxu0 %v4684_v1 }
 0xf23   :  { %4555 = vtanh.f32 %v1769_v57  ;;  %v1767_v59 = vadd.f32 %v1764_v58, %v1753_v51  ;;  %v3758_v58 = vld [vmem:[%s6105_s29 + $0x1] ss:$0 sm:$0xff]  ;;  %s6114_s29 = smov 16  }
 0xf25   :  { %v1770_v60 = vmul.f32 0.7978846, %v1767_v59 }
 0xf27   :  { %4557 = vtanh.f32 %v1770_v60  ;;  %v3759_v60 = vld [vmem:[%s6051_s8 + $0x1] ss:$0 sm:$0xff] }
 0xf2b   :  { %v4554_v62 = vpop.eup %4553 }
 0xf2c   :  { %v1774_v28 = vadd.f32 1.0, %v4554_v62 }
 0xf2e   :  { %v1777_v33 = vmul.f32 0.5, %v1774_v28 }
 0xf30   :  { %v4556_v39 = vpop.eup %4555  ;;  %v1780_v63 = vmul.f32 %v1777_v33, %v1743_v21 }
 0xf31   :  { %v1775_v0 = vadd.f32 1.0, %v4556_v39 }
 0xf32   :  { %4237 = vmatmul.mubr.f32.vlgmr.msra.gmra.mxu1 %v1780_v63 }
 0xf33   :  { %v1778_v2 = vmul.f32 0.5, %v1775_v0  ;;  %4239 = vmatprep.mubr.msk.f32.mxu1 %vm4685_vm4, %v4684_v1 }
 0xf34   :  { %v4558_v3 = vpop.eup %4557 }
 0xf35   :  { %v1781_v42 = vmul.f32 %v1778_v2, %v1748_v24  ;;  %v1776_v4 = vadd.f32 1.0, %v4558_v3 }
 0xf37   :  { %4240 = vmatmul.mubr.f32.gmra.mxu1 %v1781_v42  ;;  %v1779_v5 = vmul.f32 0.5, %v1776_v4 }
 0xf38   :  { %4242 = vmatprep.mubr.msk.f32.mxu1 %vm4685_vm4, %v4684_v1 }
 0xf39   :  { %v1782_v6 = vmul.f32 %v1779_v5, %v1753_v51  ;;  %v3765_v5 = vld [vmem:[%s6053_s10 + $0x1] ss:$0 sm:$0xff]  ;;  %s6107_s10 = smov 72  }
 0xf3b   :  { %4243 = vmatmul.mubr.f32.gmra.mxu1 %v1782_v6 }
 0xf3c   :  { %4283 = vmatprep.mubr.msk.f32.mxu1 %vm4685_vm4, %v4684_v1 }
 0xff2   :  { %v1872_v8 = vpop.f32.mrf.mxu1 }
 0xff3   :  { %v1873_v26 = vadd.f32 %v3755_v7, %v1872_v8 }
 0xff4   :  { %v4238_v61 = vpop.f32.mrf.mxu1 }
 0xff5   :  { %v1886_v9 = vadd.f32 %v1873_v26, %v5313_v19 }
 0xff7   :  { %v1877_v10 = vpop.f32.mrf.mxu1  ;;  %1889 = vst.msk [vmem:[#allocation3] sm:$0xff] %vm185_vm2, %v1886_v9 }
 0xff8   :  { %v1878_v11 = vadd.f32 %v3755_v7, %v1877_v10 }
 0xff9   :  { %v4241_v12 = vpop.f32.mrf.mxu1 }
 0xffa   :  { %v1887_v13 = vadd.f32 %v1878_v11, %v5317_v31 }
 0xffb   :  { %v1882_v14 = vpop.f32.mrf.mxu1 }
 0xffc   :  { %1890 = vst.msk [vmem:[#allocation3 + $0x8] sm:$0xff] %vm185_vm2, %v1887_v13  ;;  %v1883_v15 = vadd.f32 %v3755_v7, %v1882_v14 }
 0xffd   :  { %v4244_v16 = vpop.f32.mrf.mxu1 }
 0xffe   :  { %v1888_v17 = vadd.f32 %v1883_v15, %v5321_v38  ;;  %v1892_v18 = vld [vmem:[#allocation3] sm:$0xff] }
 0xfff   :  { %v1899_v23 = vsel %vm185_vm2, %v1892_v18, 0.0 }
0x1000   :  { %1891 = vst.msk [vmem:[#allocation3 + $0x10] sm:$0xf] %vm196_vm3, %v1888_v17  ;;  %1900 = vadd.xlane.f32.xlu0 %v1899_v23 }
0x1003   :  { %v1893_v19 = vld [vmem:[#allocation3 + $0x8] sm:$0xff] }
0x1004   :  { %v1902_v25 = vsel %vm185_vm2, %v1893_v19, 0.0 }
0x1005   :  { %1903 = vadd.xlane.f32.xlu1 %v1902_v25 }
0x1007   :  { %v1894_v27 = vld [vmem:[#allocation3 + $0x10] sm:$0xf] }
0x1008   :  { %v1905_v31 = vsel %vm196_vm3, %v1894_v27, 0.0 }
0x1009   :  { %1906 = vadd.xlane.f32.xlu0 %v1905_v31 }
0x1089   :  { %v1901_v29 = vpop.xlane.xlu0 %1900 }
0x108a   :  { %v1908_v30 = vmul.f32 0.03125, %v1901_v29 }
0x108c   :  { %v1911_v32 = vsub.f32 %v1892_v18, %v1908_v30 }
0x108e   :  { %v1904_v34 = vpop.xlane.xlu1 %1903  ;;  %v1914_v38 = vmul.f32 %v1911_v32, %v1911_v32 }
0x108f   :  { %v1909_v35 = vmul.f32 0.03125, %v1904_v34 }
0x1090   :  { %v1917_v37 = vsel %vm185_vm2, %v1914_v38, 0.0 }
0x1091   :  { %v1912_v36 = vsub.f32 %v1893_v19, %v1909_v35  ;;  %1918 = vadd.xlane.f32.xlu1 %v1917_v37 }
0x1092   :  { %v1907_v40 = vpop.xlane.xlu0 %1906 }
0x1093   :  { %v1915_v21 = vmul.f32 %v1912_v36, %v1912_v36  ;;  %v1910_v41 = vmul.f32 0.03125, %v1907_v40 }
0x1095   :  { %v1920_v43 = vsel %vm185_vm2, %v1915_v21, 0.0  ;;  %v1913_v20 = vsub.f32 %v1894_v27, %v1910_v41 }
0x1096   :  { %1921 = vadd.xlane.f32.xlu0 %v1920_v43 }
0x1097   :  { %v1916_v22 = vmul.f32 %v1913_v20, %v1913_v20 }
0x1099   :  { %v1923_v24 = vsel %vm196_vm3, %v1916_v22, 0.0 }
0x109a   :  { %1924 = vadd.xlane.f32.xlu1 %v1923_v24 }
0x111a   :  { %v1919_v49 = vpop.xlane.xlu1 %1918 }
0x111b   :  { %v1926_v50 = vmul.f32 0.03125, %v1919_v49 }
0x111d   :  { %v1929_v51 = vadd.f32 1e-05, %v1926_v50 }
0x111f   :  { %v1922_v52 = vpop.xlane.xlu0 %1921  ;;  %4559 = vrsqrt.f32 %v1929_v51  ;;  %v4634_v51 = vld [vmem:[%s6106_s26] sm:$0xff] }
0x1120   :  { %v1927_v53 = vmul.f32 0.03125, %v1922_v52 }
0x1122   :  { %v1930_v54 = vadd.f32 1e-05, %v1927_v53 }
0x1123   :  { %v1925_v45 = vpop.xlane.xlu1 %1924 }
0x1124   :  { %4561 = vrsqrt.f32 %v1930_v54  ;;  %v1928_v55 = vmul.f32 0.03125, %v1925_v45 }
0x1126   :  { %v1931_v56 = vadd.f32 1e-05, %v1928_v55 }
0x1128   :  { %4563 = vrsqrt.f32 %v1931_v56  ;;  %v4635_v56 = vld [vmem:[%s6106_s26 + $0x8] sm:$0xff] }
0x112c   :  { %v4560_v57 = vpop.eup %4559 }
0x112d   :  { %v1935_v59 = vmul.f32 %v4560_v57, %v1911_v32 }
0x112f   :  { %v1944_v62 = vmul.f32 %v3758_v58, %v1935_v59 }
0x1131   :  { %v4562_v28 = vpop.eup %4561  ;;  %v1953_v33 = vadd.f32 %v3759_v60, %v1944_v62 }
0x1132   :  { %v1936_v39 = vmul.f32 %v4562_v28, %v1912_v36  ;;  %v5623_v28 = vld [vmem:[%s6106_s26 + $0x10] sm:$0xf]  ;;  %s6110_s26 = smov 56  }
0x1133   :  { %4254 = vmatmul.mubr.msk.f32.vlgmr.msra.gmra.mxu0 %vm185_vm2, %v1953_v33 }
0x1134   :  { %v1945_v63 = vmul.f32 %v3758_v58, %v1936_v39  ;;  %4256 = vmatprep.mubr.msk.f32.mxu0 %vm4685_vm4, %v4684_v1 }
0x1135   :  { %v4564_v0 = vpop.eup %4563 }
0x1136   :  { %v1954_v2 = vadd.f32 %v3759_v60, %v1945_v63  ;;  %v1937_v3 = vmul.f32 %v4564_v0, %v1913_v20 }
0x1138   :  { %4257 = vmatmul.mubr.msk.f32.gmra.mxu0 %vm185_vm2, %v1954_v2  ;;  %v1946_v42 = vmul.f32 %v3758_v58, %v1937_v3 }
0x1139   :  { %4259 = vmatprep.mubr.msk.f32.mxu0 %vm4685_vm4, %v4684_v1 }
0x113a   :  { %v1955_v4 = vadd.f32 %v3759_v60, %v1946_v42 }
0x113c   :  { %4260 = vmatmul.mubr.msk.f32.gmra.mxu0 %vm185_vm2, %v1955_v4 }
0x113d   :  { %4268 = vmatprep.mubr.msk.f32.mxu0 %vm4685_vm4, %v4684_v1 }
0x11f3   :  { %v2044_v6 = vpop.f32.mrf.mxu0 }
0x11f4   :  { %v2045_v7 = vadd.f32 %v3765_v5, %v2044_v6 }
0x11f5   :  { %v4255_v8 = vpop.f32.mrf.mxu0 }
0x11f6   :  { %2058 = vst.msk [vmem:[#allocation4] sm:$0xff] %vm441_vm5, %v2045_v7 }
0x11f8   :  { %v2049_v26 = vpop.f32.mrf.mxu0 }
0x11f9   :  { %v2050_v61 = vadd.f32 %v3765_v5, %v2049_v26 }
0x11fa   :  { %v4258_v9 = vpop.f32.mrf.mxu0 }
0x11fb   :  { %2059 = vst.msk [vmem:[#allocation4 + $0x8] sm:$0xff] %vm441_vm5, %v2050_v61 }
0x11fc   :  { %v2054_v10 = vpop.f32.mrf.mxu0 }
0x11fd   :  { %v2055_v11 = vadd.f32 %v3765_v5, %v2054_v10  ;;  %v5491_v14 = vld [vmem:[#allocation4] sm:$0xff] }
0x11fe   :  { %v4261_v12 = vpop.f32.mrf.mxu0 }
0x11ff   :  { %2060 = vst.msk [vmem:[#allocation4 + $0x10] sm:$0xf] %vm444_vm6, %v2055_v11 }
0x1202   :  { %v5487_v13 = vld [vmem:[#allocation4 + $0x8] sm:$0xff] }
0x1203   :  { %2069 = vrot.lane.b32.xlu1 %v5487_v13, %s4686_s5 }
0x1206   :  { %v2063_v15 = vld [vmem:[#allocation4 + $0x10] sm:$0xf] }
0x1207   :  { %2067 = vrot.lane.b32.xlu1 %v5491_v14, %s4686_s5  ;;  %2071 = vrot.lane.b32.xlu0 %v2063_v15, %s4686_s5  ;;  %v5496_v16 = vld [vmem:[#allocation4 + $0x10] sm:$0xf]  ;;  %s6108_s5 = smov 104  }
0x1208   :  { %v5506_v17 = vld [vmem:[#allocation4 + $0x10] sm:$0xf] }
0x1209   :  { %v5520_v18 = vld [vmem:[#allocation4 + $0x10] sm:$0xf] }
0x120b   :  { %2322 = vrot.lane.b32.xlu1 %v5496_v16, %s4688_s28  ;;  %2320 = vrot.lane.b32.xlu0 %v5487_v13, %s4688_s28 }
0x120f   :  { %2318 = vrot.lane.b32.xlu1 %v5491_v14, %s4688_s28  ;;  %2312 = vrot.lane.b32.xlu0 %v5491_v14, %s4689_s0  ;;  %s6109_s28 = smov 64  }
0x1213   :  { %2585 = vrot.lane.b32.xlu1 %v5506_v17, %s4691_s30  ;;  %2314 = vrot.lane.b32.xlu0 %v5487_v13, %s4689_s0 }
0x1217   :  { %2583 = vrot.lane.b32.xlu1 %v5487_v13, %s4691_s30  ;;  %2316 = vrot.lane.b32.xlu0 %v5496_v16, %s4689_s0 }
0x121b   :  { %2581 = vrot.lane.b32.xlu1 %v5491_v14, %s4691_s30  ;;  %2575 = vrot.lane.b32.xlu0 %v5491_v14, %s4693_s24  ;;  %s6115_s30 = smov 24  }
0x121f   :  { %2848 = vrot.lane.b32.xlu1 %v5520_v18, %s6107_s10  ;;  %2577 = vrot.lane.b32.xlu0 %v5487_v13, %s4693_s24 }
0x1223   :  { %2846 = vrot.lane.b32.xlu1 %v5487_v13, %s6107_s10  ;;  %2579 = vrot.lane.b32.xlu0 %v5506_v17, %s4693_s24 }
0x1227   :  { %2844 = vrot.lane.b32.xlu1 %v5491_v14, %s6107_s10  ;;  %2838 = vrot.lane.b32.xlu0 %v5491_v14, %s6108_s5 }
0x122b   :  { %2840 = vrot.lane.b32.xlu1 %v5487_v13, %s6108_s5  ;;  %2842 = vrot.lane.b32.xlu0 %v5520_v18, %s6108_s5 }
0x122f   :  { %2206 = vrot.lane.b32.xlu1 %v5487_v13, %s6109_s28  ;;  %2208 = vrot.lane.b32.xlu0 %v2063_v15, %s6109_s28 }
0x1275   :  { %v2070_v23 = vpop.permute.xlu1 %2069 }
0x1279   :  { %v2068_v19 = vpop.permute.xlu1 %2067  ;;  %v2072_v25 = vpop.permute.xlu0 %2071 }
0x127a   :  { %4263 = vmatpush3.xpose.msk.msra.mxu0 %vm458_vm7, %v2072_v25 }
0x127b   :  { %4264 = vmatprep.subr.mxu0 %v4684_v1 }
0x127d   :  { %v2323_v27 = vpop.permute.xlu1 %2322  ;;  %v2321_v31 = vpop.permute.xlu0 %2320 }
0x127e   :  { %4265 = vmatpush3.xpose.msk.msra.mxu0 %vm458_vm7, %v2070_v23 }
0x127f   :  { %4266 = vmatprep.subr.mxu0 %v4684_v1 }
0x1281   :  { %v2319_v29 = vpop.permute.xlu1 %2318  ;;  %v2313_v30 = vpop.permute.xlu0 %2312 }
0x1282   :  { %4267 = vmatpush3.xpose.msk.msra.mxu0 %vm458_vm7, %v2068_v19 }
0x1283   :  { %4292 = vmatprep.subr.mxu0 %v4684_v1 }
0x1285   :  { %v2586_v32 = vpop.permute.xlu1 %2585  ;;  %4269 = vmatmul.mubr.msk.f32.vlgmr.msra.gmra.mxu0 %vm458_vm7, %v5491_v14  ;;  %v2315_v34 = vpop.permute.xlu0 %2314 }
0x1286   :  { %4293 = vmatpush3.xpose.msk.msra.mxu0 %vm458_vm7, %v2323_v27  ;;  %4271 = vmatprep.mubr.msk.f32.mxu0 %vm4685_vm4, %v4684_v1 }
0x1287   :  { %4294 = vmatprep.subr.mxu0 %v4684_v1 }
0x1289   :  { %v2584_v35 = vpop.permute.xlu1 %2583  ;;  %4272 = vmatmul.mubr.msk.f32.gmra.mxu0 %vm458_vm7, %v5487_v13  ;;  %v2317_v38 = vpop.permute.xlu0 %2316 }
0x128a   :  { %4295 = vmatpush3.xpose.msk.msra.mxu0 %vm458_vm7, %v2321_v31  ;;  %4274 = vmatprep.mubr.msk.f32.mxu0 %vm4685_vm4, %v4684_v1 }
0x128b   :  { %4296 = vmatprep.subr.mxu0 %v4684_v1 }
0x128d   :  { %v2582_v36 = vpop.permute.xlu1 %2581  ;;  %4275 = vmatmul.mubr.msk.f32.gmra.mxu0 %vm458_vm7, %v2063_v15  ;;  %v2576_v37 = vpop.permute.xlu0 %2575 }
0x128e   :  { %4297 = vmatpush3.xpose.msk.msra.mxu0 %vm458_vm7, %v2319_v29  ;;  %4298 = vmatprep.mubr.msk.f32.mxu0 %vm4685_vm4, %v4684_v1 }
0x128f   :  { %4322 = vmatprep.subr.mxu0 %v4684_v1 }
0x1291   :  { %v2849_v40 = vpop.permute.xlu1 %2848  ;;  %4299 = vmatmul.mubr.msk.f32.vlgmr.msra.gmra.mxu0 %vm458_vm7, %v2313_v30  ;;  %v2578_v21 = vpop.permute.xlu0 %2577 }
0x1292   :  { %4323 = vmatpush3.xpose.msk.msra.mxu0 %vm458_vm7, %v2586_v32  ;;  %4301 = vmatprep.mubr.msk.f32.mxu0 %vm4685_vm4, %v4684_v1 }
0x1293   :  { %4324 = vmatprep.subr.mxu0 %v4684_v1 }
0x1295   :  { %v2847_v41 = vpop.permute.xlu1 %2846  ;;  %4302 = vmatmul.mubr.msk.f32.gmra.mxu0 %vm458_vm7, %v2315_v34  ;;  %v2580_v43 = vpop.permute.xlu0 %2579 }
0x1296   :  { %4325 = vmatpush3.xpose.msk.msra.mxu0 %vm458_vm7, %v2584_v35  ;;  %4304 = vmatprep.mubr.msk.f32.mxu0 %vm4685_vm4, %v4684_v1 }
0x1297   :  { %4326 = vmatprep.subr.mxu0 %v4684_v1 }
0x1299   :  { %v2845_v20 = vpop.permute.xlu1 %2844  ;;  %4305 = vmatmul.mubr.msk.f32.gmra.mxu0 %vm458_vm7, %v2317_v38  ;;  %v2839_v22 = vpop.permute.xlu0 %2838 }
0x129a   :  { %4327 = vmatpush3.xpose.msk.msra.mxu0 %vm458_vm7, %v2582_v36  ;;  %4328 = vmatprep.mubr.msk.f32.mxu0 %vm4685_vm4, %v4684_v1 }
0x129b   :  { %4352 = vmatprep.subr.mxu0 %v4684_v1 }
0x129d   :  { %v2841_v24 = vpop.permute.xlu1 %2840  ;;  %4329 = vmatmul.mubr.msk.f32.vlgmr.msra.gmra.mxu0 %vm458_vm7, %v2576_v37  ;;  %v2843_v44 = vpop.permute.xlu0 %2842 }
0x129e   :  { %4353 = vmatpush3.xpose.msk.msra.mxu0 %vm458_vm7, %v2849_v40  ;;  %4331 = vmatprep.mubr.msk.f32.mxu0 %vm4685_vm4, %v4684_v1 }
0x129f   :  { %4354 = vmatprep.subr.mxu0 %v4684_v1 }
0x12a1   :  { %4332 = vmatmul.mubr.msk.f32.gmra.mxu0 %vm458_vm7, %v2578_v21  ;;  %v2209_v46 = vpop.permute.xlu0 %2208  ;;  %v2207_v47 = vpop.permute.xlu1 %2206 }
0x12a2   :  { %4278 = vmatpush3.msk.msra.mxu1 %vm609_vm10, %v2209_v46  ;;  %4355 = vmatpush3.xpose.msk.msra.mxu0 %vm458_vm7, %v2847_v41 }
0x12a3   :  { %4279 = vmatprep.subr.mxu1 %v4684_v1  ;;  %4334 = vmatprep.mubr.msk.f32.mxu0 %vm4685_vm4, %v4684_v1 }
0x12a4   :  { %4280 = vmatpush3.msra.mxu1 %v2207_v47  ;;  %4356 = vmatprep.subr.mxu0 %v4684_v1 }
0x12a5   :  { %4335 = vmatmul.mubr.msk.f32.gmra.mxu0 %vm458_vm7, %v2580_v43  ;;  %4281 = vmatprep.subr.mxu1 %v4684_v1 }
0x12a6   :  { %4357 = vmatpush3.xpose.msk.msra.mxu0 %vm458_vm7, %v2845_v20  ;;  %4358 = vmatprep.mubr.msk.f32.mxu0 %vm4685_vm4, %v4684_v1 }
0x12a7   :  { %4382 = vmatprep.subr.mxu0 %v4684_v1 }
0x12a9   :  { %4359 = vmatmul.mubr.msk.f32.vlgmr.msra.gmra.mxu0 %vm458_vm7, %v2839_v22 }
0x12aa   :  { %4361 = vmatprep.mubr.msk.f32.mxu0 %vm4685_vm4, %v4684_v1 }
0x12ad   :  { %4362 = vmatmul.mubr.msk.f32.gmra.mxu0 %vm458_vm7, %v2841_v24 }
0x12ae   :  { %4364 = vmatprep.mubr.msk.f32.mxu0 %vm4685_vm4, %v4684_v1 }
0x12b1   :  { %4365 = vmatmul.mubr.msk.f32.gmra.mxu0 %vm458_vm7, %v2843_v44 }
0x12b2   :  { %4390 = vmatprep.mubr.msk.f32.mxu0 %vm4685_vm4, %v4684_v1 }
0x1345   :  { %v2151_v48 = vpop.f32.mrf.mxu0 }
0x1346   :  { %v2165_v49 = vmul.f32 0.35355338, %v2151_v48 }
0x1347   :  { %v4270_v50 = vpop.f32.mrf.mxu0 }
0x1348   :  { %v5609_v52 = vadd.f32 %v4634_v51, %v2165_v49 }
0x1349   :  { %v2156_v53 = vpop.f32.mrf.mxu0 }
0x134a   :  { %v2166_v54 = vmul.f32 0.35355338, %v2156_v53  ;;  %v2171_v45 = vsel %vm557_vm8, %v5609_v52, -inf }
0x134b   :  { %2172 = vmax.xlane.f32.xlu1 %v2171_v45  ;;  %v4273_v55 = vpop.f32.mrf.mxu0 }
0x134c   :  { %v5616_v57 = vadd.f32 %v4635_v56, %v2166_v54 }
0x134d   :  { %v2161_v58 = vpop.f32.mrf.mxu0 }
0x134e   :  { %v2167_v59 = vmul.f32 0.35355338, %v2161_v58  ;;  %v2174_v60 = vsel %vm557_vm8, %v5616_v57, -inf }
0x134f   :  { %2175 = vmax.xlane.f32.xlu0 %v2174_v60  ;;  %v4276_v62 = vpop.f32.mrf.mxu0 }
0x1350   :  { %v5626_v33 = vadd.f32 %v5623_v28, %v2167_v59 }
0x1351   :  { %v2402_v39 = vpop.f32.mrf.mxu0 }
0x1352   :  { %v2416_v63 = vmul.f32 0.35355338, %v2402_v39  ;;  %v2177_v0 = vsel %vm564_vm9, %v5626_v33, -inf }
0x1353   :  { %2178 = vmax.xlane.f32.xlu0 %v2177_v0  ;;  %v4300_v2 = vpop.f32.mrf.mxu0 }
0x1354   :  { %v5630_v3 = vadd.f32 %v4634_v51, %v2416_v63 }
0x1355   :  { %v2407_v42 = vpop.f32.mrf.mxu0 }
0x1356   :  { %v2422_v4 = vsel %vm557_vm8, %v5630_v3, -inf  ;;  %v2417_v40 = vmul.f32 0.35355338, %v2407_v42 }
0x1357   :  { %2423 = vmax.xlane.f32.xlu0 %v2422_v4  ;;  %v4303_v5 = vpop.f32.mrf.mxu0 }
0x1358   :  { %v2420_v21 = vadd.f32 %v4635_v56, %v2417_v40 }
0x1359   :  { %v2412_v6 = vpop.f32.mrf.mxu0 }
0x135a   :  { %v2418_v7 = vmul.f32 0.35355338, %v2412_v6  ;;  %v2425_v22 = vsel %vm557_vm8, %v2420_v21, -inf }
0x135b   :  { %v4306_v8 = vpop.f32.mrf.mxu0 }
0x135c   :  { %v5635_v26 = vadd.f32 %v5623_v28, %v2418_v7  ;;  %2204 = vrot.lane.b32.xlu1 %v5491_v14, %s6109_s28 }
0x135d   :  { %v2665_v61 = vpop.f32.mrf.mxu0 }
0x135e   :  { %v2428_v9 = vsel %vm564_vm9, %v5635_v26, -inf  ;;  %v2679_v41 = vmul.f32 0.35355338, %v2665_v61 }
0x135f   :  { %2429 = vmax.xlane.f32.xlu0 %v2428_v9  ;;  %v4330_v10 = vpop.f32.mrf.mxu0 }
0x1360   :  { %v5651_v43 = vadd.f32 %v4634_v51, %v2679_v41 }
0x1361   :  { %v2670_v11 = vpop.f32.mrf.mxu0 }
0x1362   :  { %v2680_v12 = vmul.f32 0.35355338, %v2670_v11  ;;  %v2685_v46 = vsel %vm557_vm8, %v5651_v43, -inf }
0x1363   :  { %v4333_v15 = vpop.f32.mrf.mxu0 }
0x1364   :  { %v5641_v23 = vadd.f32 %v4635_v56, %v2680_v12 }
0x1365   :  { %v2675_v19 = vpop.f32.mrf.mxu0 }
0x1366   :  { %v2688_v25 = vsel %vm557_vm8, %v5641_v23, -inf  ;;  %v2681_v20 = vmul.f32 0.35355338, %v2675_v19 }
0x1367   :  { %2689 = vmax.xlane.f32.xlu0 %v2688_v25  ;;  %v4336_v27 = vpop.f32.mrf.mxu0 }
0x1368   :  { %v5655_v24 = vadd.f32 %v5623_v28, %v2681_v20 }
0x1369   :  { %v2928_v31 = vpop.f32.mrf.mxu0 }
0x136a   :  { %v2942_v29 = vmul.f32 0.35355338, %v2928_v31  ;;  %v2691_v48 = vsel %vm564_vm9, %v5655_v24, -inf }
0x136b   :  { %v4360_v30 = vpop.f32.mrf.mxu0 }
0x136c   :  { %v5645_v32 = vadd.f32 %v4634_v51, %v2942_v29 }
0x136d   :  { %v2933_v34 = vpop.f32.mrf.mxu0 }
0x136e   :  { %v2948_v35 = vsel %vm557_vm8, %v5645_v32, -inf  ;;  %v2943_v44 = vmul.f32 0.35355338, %v2933_v34 }
0x136f   :  { %2949 = vmax.xlane.f32.xlu0 %v2948_v35  ;;  %v4363_v38 = vpop.f32.mrf.mxu0 }
0x1370   :  { %v5661_v47 = vadd.f32 %v4635_v56, %v2943_v44 }
0x1371   :  { %v5649_v36 = vpop.f32.mrf.mxu0 }
0x1372   :  { %v2951_v49 = vsel %vm557_vm8, %v5661_v47, -inf }
0x1373   :  { %v4366_v37 = vpop.f32.mrf.mxu0 }
0x1380   :  { %2426 = vmax.xlane.f32.xlu1 %v2425_v22 }
0x1384   :  { %2686 = vmax.xlane.f32.xlu1 %v2685_v46 }
0x1385   :  { %2459 = vrot.lane.b32.xlu0 %v5496_v16, %s6110_s26 }
0x1388   :  { %2692 = vmax.xlane.f32.xlu1 %v2691_v48  ;;  %v2944_v48 = vmul.f32 0.35355338, %v5649_v36 }
0x138c   :  { %2952 = vmax.xlane.f32.xlu1 %v2951_v49  ;;  %v5740_v49 = vadd.f32 %v5623_v28, %v2944_v48  ;;  %v3812_v48 = vld [vmem:[%s6054_s11 + $0x38] sm:$0xff] }
0x138d   :  { %4383 = vmatpush3.msra.mxu0 %v3812_v48 }
0x138e   :  { %4384 = vmatprep.subr.mxu0 %v4684_v1 }
0x139d   :  { %2457 = vrot.lane.b32.xlu1 %v5487_v13, %s6110_s26 }
0x13d4   :  { %v2173_v50 = vpop.xlane.xlu1 %2172 }
0x13d5   :  { %v2180_v51 = vsub.f32 %v5609_v52, %v2173_v50 }
0x13d7   :  { %v2183_v53 = vmul.f32 1.442695, %v2180_v51 }
0x13d8   :  { %v2205_v54 = vpop.permute.xlu1 %2204  ;;  %v2176_v45 = vpop.xlane.xlu0 %2175 }
0x13d9   :  { %4565 = vpow2.f32 %v2183_v53  ;;  %v2181_v16 = vsub.f32 %v5616_v57, %v2176_v45  ;;  %4282 = vmatpush3.msra.mxu1 %v2205_v54 }
0x13da   :  { %4307 = vmatprep.subr.mxu1 %v4684_v1 }
0x13db   :  { %v2185_v55 = vmul.f32 1.442695, %v2181_v16 }
0x13dc   :  { %v2179_v56 = vpop.xlane.xlu0 %2178 }
0x13dd   :  { %4567 = vpow2.f32 %v2185_v55  ;;  %v2182_v58 = vsub.f32 %v5626_v33, %v2179_v56 }
0x13df   :  { %v2187_v59 = vmul.f32 1.442695, %v2182_v58 }
0x13e0   :  { %v2424_v60 = vpop.xlane.xlu0 %2423 }
0x13e1   :  { %4569 = vpow2.f32 %v2187_v59  ;;  %v2431_v62 = vsub.f32 %v5630_v3, %v2424_v60 }
0x13e3   :  { %v2434_v52 = vmul.f32 1.442695, %v2431_v62 }
0x13e5   :  { %4571 = vpow2.f32 %v2434_v52 }
0x13e6   :  { %v5674_v39 = vpop.eup %4565 }
0x13e7   :  { %v2189_v57 = vsel %vm557_vm8, %v5674_v39, 0.0 }
0x13e8   :  { %v2430_v63 = vpop.xlane.xlu0 %2429  ;;  %2190 = vadd.xlane.f32.xlu0 %v2189_v57 }
0x13e9   :  { %v2433_v0 = vsub.f32 %v5635_v26, %v2430_v63 }
0x13ea   :  { %v5679_v2 = vpop.eup %4567 }
0x13eb   :  { %v2438_v42 = vmul.f32 1.442695, %v2433_v0  ;;  %v2192_v33 = vsel %vm557_vm8, %v5679_v2, 0.0 }
0x13ec   :  { %2193 = vadd.xlane.f32.xlu1 %v2192_v33 }
0x13ed   :  { %4573 = vpow2.f32 %v2438_v42 }
0x13ee   :  { %v5683_v3 = vpop.eup %4569 }
0x13ef   :  { %v2195_v4 = vsel %vm564_vm9, %v5683_v3, 0.0 }
0x13f0   :  { %2196 = vadd.xlane.f32.xlu0 %v2195_v4  ;;  %v2690_v26 = vpop.xlane.xlu0 %2689 }
0x13f1   :  { %v2695_v61 = vsub.f32 %v5641_v23, %v2690_v26 }
0x13f2   :  { %v5687_v5 = vpop.eup %4571 }
0x13f3   :  { %v2440_v6 = vsel %vm557_vm8, %v5687_v5, 0.0  ;;  %v2699_v11 = vmul.f32 1.442695, %v2695_v61 }
0x13f4   :  { %2441 = vadd.xlane.f32.xlu1 %v2440_v6 }
0x13f8   :  { %v2950_v15 = vpop.xlane.xlu0 %2949 }
0x13f9   :  { %v2957_v27 = vsub.f32 %v5645_v32, %v2950_v15 }
0x13fa   :  { %v5691_v7 = vpop.eup %4573 }
0x13fb   :  { %v2446_v8 = vsel %vm564_vm9, %v5691_v7, 0.0  ;;  %v2960_v34 = vmul.f32 1.442695, %v2957_v27 }
0x13fc   :  { %2447 = vadd.xlane.f32.xlu1 %v2446_v8  ;;  %v2460_v50 = vpop.permute.xlu0 %2459 }
0x1409   :  { %v2427_v9 = vpop.xlane.xlu1 %2426 }
0x140a   :  { %v2432_v10 = vsub.f32 %v2420_v21, %v2427_v9 }
0x140c   :  { %v2436_v12 = vmul.f32 1.442695, %v2432_v10 }
0x140d   :  { %v2687_v19 = vpop.xlane.xlu1 %2686 }
0x140e   :  { %4575 = vpow2.f32 %v2436_v12  ;;  %v2694_v25 = vsub.f32 %v5651_v43, %v2687_v19 }
0x140f   :  { %4577 = vpow2.f32 %v2699_v11 }
0x1410   :  { %v2697_v31 = vmul.f32 1.442695, %v2694_v25 }
0x1411   :  { %v2693_v29 = vpop.xlane.xlu1 %2692 }
0x1412   :  { %4579 = vpow2.f32 %v2697_v31  ;;  %v2696_v30 = vsub.f32 %v5655_v24, %v2693_v29 }
0x1414   :  { %v2701_v35 = vmul.f32 1.442695, %v2696_v30 }
0x1415   :  { %v2953_v24 = vpop.xlane.xlu1 %2952 }
0x1416   :  { %4581 = vpow2.f32 %v2701_v35  ;;  %v2958_v44 = vsub.f32 %v5661_v47, %v2953_v24 }
0x1417   :  { %4583 = vpow2.f32 %v2960_v34 }
0x1418   :  { %v2962_v46 = vmul.f32 1.442695, %v2958_v44 }
0x1419   :  { %v2458_v51 = vpop.permute.xlu1 %2457 }
0x141a   :  { %4585 = vpow2.f32 %v2962_v46 }
0x141b   :  { %v5699_v23 = vpop.eup %4575 }
0x141c   :  { %v2443_v38 = vsel %vm557_vm8, %v5699_v23, 0.0  ;;  %v5703_v37 = vpop.eup %4577 }
0x141d   :  { %2444 = vadd.xlane.f32.xlu0 %v2443_v38  ;;  %v2706_v32 = vsel %vm557_vm8, %v5703_v37, 0.0 }
0x141f   :  { %v5705_v40 = vpop.eup %4579 }
0x1420   :  { %v2703_v21 = vsel %vm557_vm8, %v5705_v40, 0.0 }
0x1421   :  { %2707 = vadd.xlane.f32.xlu0 %v2706_v32  ;;  %2704 = vadd.xlane.f32.xlu1 %v2703_v21 }
0x1423   :  { %v5711_v41 = vpop.eup %4581 }
0x1424   :  { %v2709_v43 = vsel %vm564_vm9, %v5711_v41, 0.0  ;;  %v5715_v20 = vpop.eup %4583 }
0x1425   :  { %2710 = vadd.xlane.f32.xlu1 %v2709_v43  ;;  %v2966_v22 = vsel %vm557_vm8, %v5715_v20, 0.0 }
0x1429   :  { %2967 = vadd.xlane.f32.xlu1 %v2966_v22 }
0x1437   :  { %2455 = vrot.lane.b32.xlu0 %v5491_v14, %s6110_s26 }
0x143a   :  { %2722 = vrot.lane.b32.xlu1 %v5506_v17, %s6111_s25  ;;  %v5734_v17 = vpop.eup %4585 }
0x143b   :  { %v2969_v47 = vsel %vm557_vm8, %v5734_v17, 0.0 }
0x143e   :  { %2720 = vrot.lane.b32.xlu1 %v5487_v13, %s6111_s25 }
0x1442   :  { %2718 = vrot.lane.b32.xlu1 %v5491_v14, %s6111_s25 }
0x1446   :  { %2985 = vrot.lane.b32.xlu1 %v5520_v18, %s6112_s1 }
0x144a   :  { %2983 = vrot.lane.b32.xlu1 %v5487_v13, %s6112_s1  ;;  %v2954_v13 = vsel %vm564_vm9, %v5740_v49, -inf }
0x144e   :  { %2981 = vrot.lane.b32.xlu1 %v5491_v14, %s6112_s1 }
0x1456   :  { %2970 = vadd.xlane.f32.xlu0 %v2969_v47 }
0x1471   :  { %v2191_v18 = vpop.xlane.xlu0 %2190 }
0x1472   :  { %4587 = vrcp.f32 %v2191_v18  ;;  %2955 = vmax.xlane.f32.xlu1 %v2954_v13  ;;  %v3809_v13 = vld [vmem:[%s6054_s11 + $0x20] sm:$0xff] }
0x1475   :  { %v2194_v14 = vpop.xlane.xlu1 %2193 }
0x1476   :  { %4589 = vrcp.f32 %v2194_v14 }
0x1479   :  { %v2197_v53 = vpop.xlane.xlu0 %2196 }
0x147a   :  { %4591 = vrcp.f32 %v2197_v53 }
0x147d   :  { %v2442_v56 = vpop.xlane.xlu1 %2441 }
0x147e   :  { %4593 = vrcp.f32 %v2442_v56 }
0x147f   :  { %v4588_v54 = vpop.eup %4587 }
0x1480   :  { %v2201_v45 = vmul.f32 %v4588_v54, %v5674_v39 }
0x1482   :  { %4284 = vmatmul.mubr.msk.f32.vlgmr.msra.gmra.mxu1 %vm557_vm8, %v2201_v45 }
0x1483   :  { %v4590_v36 = vpop.eup %4589  ;;  %4308 = vmatpush3.msk.msra.mxu1 %vm609_vm10, %v2460_v50  ;;  %4286 = vmatprep.mubr.msk.f32.mxu1 %vm4685_vm4, %v4684_v1 }
0x1484   :  { %4309 = vmatprep.subr.mxu1 %v4684_v1  ;;  %v2202_v28 = vmul.f32 %v4590_v36, %v5679_v2 }
0x1485   :  { %4310 = vmatpush3.msra.mxu1 %v2458_v51  ;;  %v2448_v58 = vpop.xlane.xlu1 %2447  ;;  %v3810_v51 = vld [vmem:[%s6054_s11 + $0x28] sm:$0xff] }
0x1486   :  { %4287 = vmatmul.mubr.msk.f32.gmra.mxu1 %vm557_vm8, %v2202_v28  ;;  %4311 = vmatprep.subr.mxu1 %v4684_v1 }
0x1487   :  { %v4592_v16 = vpop.eup %4591  ;;  %4289 = vmatprep.mubr.msk.f32.mxu1 %vm4685_vm4, %v4684_v1 }
0x1488   :  { %v2203_v55 = vmul.f32 %v4592_v16, %v5683_v3 }
0x148a   :  { %4290 = vmatmul.mubr.msk.f32.gmra.mxu1 %vm557_vm8, %v2203_v55 }
0x148b   :  { %4313 = vmatprep.mubr.msk.f32.mxu1 %vm4685_vm4, %v4684_v1  ;;  %v4594_v52 = vpop.eup %4593 }
0x148c   :  { %v2452_v39 = vmul.f32 %v4594_v52, %v5687_v5 }
0x14a6   :  { %v2445_v59 = vpop.xlane.xlu0 %2444 }
0x14a7   :  { %4595 = vrcp.f32 %v2445_v59 }
0x14a8   :  { %4597 = vrcp.f32 %v2448_v58 }
0x14aa   :  { %v2708_v60 = vpop.xlane.xlu0 %2707  ;;  %v2705_v62 = vpop.xlane.xlu1 %2704 }
0x14ab   :  { %4599 = vrcp.f32 %v2705_v62 }
0x14ac   :  { %4601 = vrcp.f32 %v2708_v60 }
0x14ae   :  { %v2456_v57 = vpop.permute.xlu0 %2455  ;;  %v2711_v63 = vpop.xlane.xlu1 %2710 }
0x14af   :  { %4312 = vmatpush3.msra.mxu1 %v2456_v57  ;;  %4603 = vrcp.f32 %v2711_v63 }
0x14b0   :  { %4314 = vmatmul.mubr.msk.f32.vlgmr.msra.gmra.mxu1 %vm557_vm8, %v2452_v39  ;;  %4337 = vmatprep.subr.mxu1 %v4684_v1 }
0x14b1   :  { %4316 = vmatprep.mubr.msk.f32.mxu1 %vm4685_vm4, %v4684_v1 }
0x14b2   :  { %v2968_v0 = vpop.xlane.xlu1 %2967 }
0x14b3   :  { %4605 = vrcp.f32 %v2968_v0 }
0x14b4   :  { %v4596_v2 = vpop.eup %4595 }
0x14b5   :  { %v2453_v42 = vmul.f32 %v4596_v2, %v5699_v23  ;;  %v4598_v33 = vpop.eup %4597 }
0x14b6   :  { %v2723_v3 = vpop.permute.xlu1 %2722  ;;  %v2454_v4 = vmul.f32 %v4598_v33, %v5691_v7 }
0x14b7   :  { %4317 = vmatmul.mubr.msk.f32.gmra.mxu1 %vm557_vm8, %v2453_v42 }
0x14b8   :  { %4338 = vmatpush3.msk.msra.mxu1 %vm609_vm10, %v2723_v3  ;;  %4319 = vmatprep.mubr.msk.f32.mxu1 %vm4685_vm4, %v4684_v1  ;;  %v4600_v6 = vpop.eup %4599 }
0x14b9   :  { %4339 = vmatprep.subr.mxu1 %v4684_v1  ;;  %v2715_v8 = vmul.f32 %v4600_v6, %v5705_v40  ;;  %v4602_v61 = vpop.eup %4601 }
0x14ba   :  { %v2721_v5 = vpop.permute.xlu1 %2720  ;;  %v2716_v9 = vmul.f32 %v4602_v61, %v5703_v37 }
0x14bb   :  { %4320 = vmatmul.mubr.msk.f32.gmra.mxu1 %vm557_vm8, %v2454_v4  ;;  %v3814_v4 = vld [vmem:[%s6055_s12 + $0x1] ss:$0 sm:$0xff] }
0x14bc   :  { %4340 = vmatpush3.msra.mxu1 %v2721_v5  ;;  %4343 = vmatprep.mubr.msk.f32.mxu1 %vm4685_vm4, %v4684_v1  ;;  %v4604_v10 = vpop.eup %4603 }
0x14bd   :  { %4341 = vmatprep.subr.mxu1 %v4684_v1  ;;  %v2717_v12 = vmul.f32 %v4604_v10, %v5711_v41 }
0x14be   :  { %v2719_v26 = vpop.permute.xlu1 %2718 }
0x14bf   :  { %4342 = vmatpush3.msra.mxu1 %v2719_v26  ;;  %v4637_v26 = vld [vmem:[#allocation3] sm:$0xff] }
0x14c0   :  { %4344 = vmatmul.mubr.msk.f32.vlgmr.msra.gmra.mxu1 %vm557_vm8, %v2715_v8  ;;  %4367 = vmatprep.subr.mxu1 %v4684_v1  ;;  %v4606_v15 = vpop.eup %4605 }
0x14c1   :  { %4346 = vmatprep.mubr.msk.f32.mxu1 %vm4685_vm4, %v4684_v1  ;;  %v2978_v19 = vmul.f32 %v4606_v15, %v5715_v20 }
0x14c2   :  { %v2986_v7 = vpop.permute.xlu1 %2985 }
0x14c3   :  { %4368 = vmatpush3.msk.msra.mxu1 %vm609_vm10, %v2986_v7 }
0x14c4   :  { %4347 = vmatmul.mubr.msk.f32.gmra.mxu1 %vm557_vm8, %v2716_v9  ;;  %4369 = vmatprep.subr.mxu1 %v4684_v1 }
0x14c5   :  { %4349 = vmatprep.mubr.msk.f32.mxu1 %vm4685_vm4, %v4684_v1 }
0x14c6   :  { %v2984_v11 = vpop.permute.xlu1 %2983 }
0x14c7   :  { %4370 = vmatpush3.msra.mxu1 %v2984_v11 }
0x14c8   :  { %4350 = vmatmul.mubr.msk.f32.gmra.mxu1 %vm557_vm8, %v2717_v12  ;;  %4371 = vmatprep.subr.mxu1 %v4684_v1 }
0x14c9   :  { %4373 = vmatprep.mubr.msk.f32.mxu1 %vm4685_vm4, %v4684_v1 }
0x14ca   :  { %v2982_v25 = vpop.permute.xlu1 %2981 }
0x14cb   :  { %4372 = vmatpush3.msra.mxu1 %v2982_v25 }
0x14cc   :  { %4374 = vmatmul.mubr.msk.f32.vlgmr.msra.gmra.mxu1 %vm557_vm8, %v2978_v19  ;;  %4399 = vmatprep.subr.mxu1 %v4684_v1  ;;  %v4638_v19 = vld [vmem:[#allocation3 + $0x8] sm:$0xff] }
0x14cd   :  { %4376 = vmatprep.mubr.msk.f32.mxu1 %vm4685_vm4, %v4684_v1 }
0x14df   :  { %v2971_v27 = vpop.xlane.xlu0 %2970 }
0x14e0   :  { %4607 = vrcp.f32 %v2971_v27 }
0x14ed   :  { %v4608_v31 = vpop.eup %4607 }
0x14ee   :  { %v2979_v29 = vmul.f32 %v4608_v31, %v5734_v17 }
0x14f0   :  { %4377 = vmatmul.mubr.msk.f32.gmra.mxu1 %vm557_vm8, %v2979_v29 }
0x14f1   :  { %4379 = vmatprep.mubr.msk.f32.mxu1 %vm4685_vm4, %v4684_v1 }
0x14fb   :  { %v2956_v30 = vpop.xlane.xlu1 %2955 }
0x14fc   :  { %v2959_v34 = vsub.f32 %v5740_v49, %v2956_v30  ;;  %v3811_v49 = vld [vmem:[%s6054_s11 + $0x30] sm:$0xff] }
0x14fd   :  { %4385 = vmatpush3.msra.mxu0 %v3811_v49 }
0x14fe   :  { %v2964_v35 = vmul.f32 1.442695, %v2959_v34  ;;  %4386 = vmatprep.subr.mxu0 %v4684_v1 }
0x14ff   :  { %4387 = vmatpush3.msra.mxu0 %v3810_v51 }
0x1500   :  { %4609 = vpow2.f32 %v2964_v35  ;;  %4388 = vmatprep.subr.mxu0 %v4684_v1 }
0x1501   :  { %4389 = vmatpush3.msra.mxu0 %v3809_v13 }
0x1502   :  { %4416 = vmatprep.subr.mxu0 %v4684_v1 }
0x150d   :  { %v4610_v23 = vpop.eup %4609 }
0x150e   :  { %v2972_v38 = vsel %vm564_vm9, %v4610_v23, 0.0 }
0x150f   :  { %2973 = vadd.xlane.f32.xlu0 %v2972_v38 }
0x1542   :  { %v2289_v37 = vpop.f32.mrf.mxu1 }
0x1543   :  { %2303 = vst.msk [vmem:[#allocation5] sm:$0xff] %vm458_vm7, %v2289_v37 }
0x1544   :  { %v4285_v40 = vpop.f32.mrf.mxu1 }
0x1545   :  { %v3824_v40 = vld [vmem:[%s6058_s15 + $0x30] sm:$0xff] }
0x1546   :  { %v2294_v32 = vpop.f32.mrf.mxu1 }
0x1547   :  { %2304 = vst.msk [vmem:[#allocation5 + $0x8] sm:$0xff] %vm458_vm7, %v2294_v32  ;;  %v3823_v32 = vld [vmem:[%s6058_s15 + $0x28] sm:$0xff] }
0x1548   :  { %v4288_v21 = vpop.f32.mrf.mxu1 }
0x154a   :  { %v2299_v41 = vpop.f32.mrf.mxu1 }
0x154b   :  { %2305 = vst.msk [vmem:[#allocation5 + $0x10] sm:$0xf] %vm694_vm11, %v2299_v41  ;;  %v3822_v41 = vld [vmem:[%s6058_s15 + $0x20] sm:$0xff] }
0x154c   :  { %v4291_v43 = vpop.f32.mrf.mxu1 }
0x1570   :  { %v2540_v20 = vpop.f32.mrf.mxu1 }
0x1571   :  { %2557 = vrot.lane.b32.xlu0 %v2540_v20, %s6113_s9 }
0x1572   :  { %v4315_v22 = vpop.f32.mrf.mxu1 }
0x1577   :  { %v2545_v24 = vpop.f32.mrf.mxu1 }
0x1578   :  { %2559 = vrot.lane.b32.xlu1 %v2545_v24, %s6113_s9 }
0x1579   :  { %v4318_v44 = vpop.f32.mrf.mxu1 }
0x157b   :  { %v2550_v46 = vpop.f32.mrf.mxu1 }
0x157d   :  { %v4321_v17 = vpop.f32.mrf.mxu1 }
0x1580   :  { %v2803_v47 = vpop.f32.mrf.mxu1 }
0x1581   :  { %2820 = vrot.lane.b32.xlu0 %v2803_v47, %s6114_s29 }
0x1582   :  { %v4345_v50 = vpop.f32.mrf.mxu1 }
0x1584   :  { %v2808_v18 = vpop.f32.mrf.mxu1 }
0x1585   :  { %2822 = vrot.lane.b32.xlu0 %v2808_v18, %s6114_s29  ;;  %v5889_v18 = vld [vmem:[%s6056_s13 + $0x1] ss:$0 sm:$0xff] }
0x1586   :  { %v4348_v14 = vpop.f32.mrf.mxu1 }
0x1587   :  { %v5894_v14 = vld [vmem:[%s6057_s14 + $0x1] ss:$0 sm:$0xff] }
0x1588   :  { %v2813_v53 = vpop.f32.mrf.mxu1 }
0x158a   :  { %v4351_v54 = vpop.f32.mrf.mxu1 }
0x158c   :  { %v3066_v45 = vpop.f32.mrf.mxu1 }
0x158d   :  { %3083 = vrot.lane.b32.xlu0 %v3066_v45, %s6115_s30 }
0x158e   :  { %v4375_v36 = vpop.f32.mrf.mxu1 }
0x1598   :  { %v2974_v28 = vpop.xlane.xlu0 %2973 }
0x1599   :  { %4611 = vrcp.f32 %v2974_v28 }
0x15a6   :  { %v4612_v16 = vpop.eup %4611 }
0x15a7   :  { %v2980_v55 = vmul.f32 %v4612_v16, %v4610_v23  ;;  %v3825_v23 = vld [vmem:[%s6058_s15 + $0x38] sm:$0xff] }
0x15a8   :  { %4400 = vmatpush3.msra.mxu1 %v3825_v23 }
0x15a9   :  { %4380 = vmatmul.mubr.msk.f32.gmra.mxu1 %vm557_vm8, %v2980_v55  ;;  %4401 = vmatprep.subr.mxu1 %v4684_v1 }
0x15aa   :  { %4407 = vmatprep.mubr.msk.f32.mxu1 %vm4685_vm4, %v4684_v1  ;;  %4402 = vmatpush3.msra.mxu1 %v3824_v40 }
0x15ab   :  { %4403 = vmatprep.subr.mxu1 %v4684_v1 }
0x15ac   :  { %4404 = vmatpush3.msra.mxu1 %v3823_v32 }
0x15ad   :  { %4405 = vmatprep.subr.mxu1 %v4684_v1 }
0x15ae   :  { %4406 = vmatpush3.msra.mxu1 %v3822_v41 }
0x15af   :  { %4457 = vmatprep.subr.mxu1 %v4684_v1 }
0x15b0   :  { %v3071_v56 = vpop.f32.mrf.mxu1 }
0x15b1   :  { %3085 = vrot.lane.b32.xlu0 %v3071_v56, %s6115_s30 }
0x15b2   :  { %v4378_v58 = vpop.f32.mrf.mxu1 }
0x15b5   :  { %2561 = vrot.lane.b32.xlu0 %v2550_v46, %s6113_s9  ;;  %v4639_v46 = vld [vmem:[#allocation3 + $0x10] sm:$0xf] }
0x15b9   :  { %2824 = vrot.lane.b32.xlu0 %v2813_v53, %s6114_s29 }
0x15e3   :  { %v2558_v59 = vpop.permute.xlu0 %2557 }
0x15e4   :  { %2566 = vst.msk [vmem:[#allocation5] sm:$0xff] %vm956_vm12, %v2558_v59 }
0x15ea   :  { %v2560_v60 = vpop.permute.xlu1 %2559 }
0x15eb   :  { %2567 = vst.msk [vmem:[#allocation5 + $0x8] sm:$0xff] %vm956_vm12, %v2560_v60 }
0x15f3   :  { %v2821_v62 = vpop.permute.xlu0 %2820 }
0x15f4   :  { %2829 = vst.msk [vmem:[#allocation5] sm:$0xff] %vm1221_vm13, %v2821_v62 }
0x15f7   :  { %v2823_v52 = vpop.permute.xlu0 %2822 }
0x15f8   :  { %2830 = vst.msk [vmem:[#allocation5 + $0x8] sm:$0xff] %vm1221_vm13, %v2823_v52 }
0x15ff   :  { %v3084_v39 = vpop.permute.xlu0 %3083 }
0x1600   :  { %3092 = vst.msk [vmem:[#allocation5] sm:$0xff] %vm1486_vm14, %v3084_v39 }
0x1607   :  { %v3095_v57 = vld [vmem:[#allocation5] sm:$0xff] }
0x1608   :  { %4391 = vmatmul.mubr.msk.f32.vlgmr.msra.gmra.mxu0 %vm185_vm2, %v3095_v57  ;;  %v3846_v57 = vld [vmem:[%s6060_s17 + $0xf8] sm:$0xff] }
0x1609   :  { %4393 = vmatprep.mubr.msk.f32.mxu0 %vm4685_vm4, %v4684_v1  ;;  %4417 = vmatpush3.msra.mxu0 %v3846_v57 }
0x160a   :  { %4418 = vmatprep.subr.mxu0 %v4684_v1 }
0x1623   :  { %v3086_v63 = vpop.permute.xlu0 %3085 }
0x1624   :  { %3093 = vst.msk [vmem:[#allocation5 + $0x8] sm:$0xff] %vm1486_vm14, %v3086_v63  ;;  %v3845_v63 = vld [vmem:[%s6060_s17 + $0xf0] sm:$0xff] }
0x1625   :  { %4419 = vmatpush3.msra.mxu0 %v3845_v63 }
0x1626   :  { %4420 = vmatprep.subr.mxu0 %v4684_v1 }
0x1627   :  { %v2562_v0 = vpop.permute.xlu0 %2561 }
0x1628   :  { %2568 = vst.msk [vmem:[#allocation5 + $0x10] sm:$0xf] %vm959_vm15, %v2562_v0  ;;  %v3844_v0 = vld [vmem:[%s6060_s17 + $0xe8] sm:$0xff] }
0x1629   :  { %4421 = vmatpush3.msra.mxu0 %v3844_v0 }
0x162a   :  { %4422 = vmatprep.subr.mxu0 %v4684_v1 }
0x162b   :  { %v2825_v2 = vpop.permute.xlu0 %2824  ;;  %v3096_v42 = vld [vmem:[#allocation5 + $0x8] sm:$0xff] }
0x162c   :  { %2831 = vst.msk [vmem:[#allocation5 + $0x10] sm:$0xf] %vm1224_vm0, %v2825_v2  ;;  %4394 = vmatmul.mubr.msk.f32.gmra.mxu0 %vm185_vm2, %v3096_v42  ;;  %v3843_v2 = vld [vmem:[%s6060_s17 + $0xe0] sm:$0xff]  ;;  %v3842_v42 = vld [vmem:[%s6060_s17 + $0xd8] sm:$0xff] }
0x162d   :  { %4396 = vmatprep.mubr.msk.f32.mxu0 %vm4685_vm4, %v4684_v1  ;;  %4423 = vmatpush3.msra.mxu0 %v3843_v2 }
0x162e   :  { %4424 = vmatprep.subr.mxu0 %v4684_v1 }
0x162f   :  { %4425 = vmatpush3.msra.mxu0 %v3842_v42 }
0x1630   :  { %4426 = vmatprep.subr.mxu0 %v4684_v1 }
0x1669   :  { %v3076_v33 = vpop.f32.mrf.mxu1 }
0x166a   :  { %3087 = vrot.lane.b32.xlu1 %v3076_v33, %s6115_s30  ;;  %v3841_v33 = vld [vmem:[%s6060_s17 + $0xd0] sm:$0xff] }
0x166b   :  { %v4381_v3 = vpop.f32.mrf.mxu1  ;;  %4427 = vmatpush3.msra.mxu0 %v3841_v33 }
0x166c   :  { %4428 = vmatprep.subr.mxu0 %v4684_v1  ;;  %v3840_v3 = vld [vmem:[%s6060_s17 + $0xc8] sm:$0xff] }
0x166d   :  { %4429 = vmatpush3.msra.mxu0 %v3840_v3 }
0x166e   :  { %4430 = vmatprep.subr.mxu0 %v4684_v1 }
0x16c8   :  { %v3186_v5 = vpop.f32.mrf.mxu0 }
0x16c9   :  { %v3187_v6 = vadd.f32 %v3814_v4, %v3186_v5  ;;  %v3838_v5 = vld [vmem:[%s6060_s17 + $0xb8] sm:$0xff] }
0x16ca   :  { %v4392_v8 = vpop.f32.mrf.mxu0 }
0x16cb   :  { %v5850_v61 = vadd.f32 %v4637_v26, %v3187_v6  ;;  %v3837_v6 = vld [vmem:[%s6060_s17 + $0xb0] sm:$0xff]  ;;  %v3836_v8 = vld [vmem:[%s6060_s17 + $0xa8] sm:$0xff]  ;;  %v3835_v26 = vld [vmem:[%s6060_s17 + $0xa0] sm:$0xff] }
0x16cd   :  { %v3207_v7 = vsel %vm185_vm2, %v5850_v61, 0.0 }
0x16ce   :  { %3208 = vadd.xlane.f32.xlu0 %v3207_v7  ;;  %v3834_v7 = vld [vmem:[%s6060_s17 + $0x98] sm:$0xff] }
0x16dc   :  { %v3088_v9 = vpop.permute.xlu1 %3087 }
0x16dd   :  { %3094 = vst.msk [vmem:[#allocation5 + $0x10] sm:$0xf] %vm1489_vm1, %v3088_v9  ;;  %v3833_v9 = vld [vmem:[%s6060_s17 + $0x90] sm:$0xff]  ;;  %vm6116_vm1 = vcmask 253952  }
0x16de   :  { %vm6118_vm5 = vmmov %vm6116_vm1 }
0x16df   :  { %vm6119_vm6 = vmmov %vm6116_vm1 }
0x16e4   :  { %v3097_v10 = vld [vmem:[#allocation5 + $0x10] sm:$0xf] }
0x16e5   :  { %4397 = vmatmul.mubr.msk.f32.gmra.mxu0 %vm185_vm2, %v3097_v10  ;;  %v3832_v10 = vld [vmem:[%s6060_s17 + $0x88] sm:$0xff] }
0x16e6   :  { %4448 = vmatprep.mubr.msk.f32.mxu0 %vm4685_vm4, %v4684_v1 }
0x16ec   :  { %v3191_v11 = vpop.f32.mrf.mxu0 }
0x16ed   :  { %v3192_v12 = vadd.f32 %v3814_v4, %v3191_v11  ;;  %v3831_v11 = vld [vmem:[%s6060_s17 + $0x80] sm:$0xff] }
0x16ee   :  { %v4395_v15 = vpop.f32.mrf.mxu0 }
0x16ef   :  { %v5858_v25 = vadd.f32 %v4638_v19, %v3192_v12  ;;  %v3827_v12 = vld [vmem:[%s6059_s16 + $0x1] ss:$0 sm:$0xff] }
0x16f1   :  { %v3210_v27 = vsel %vm185_vm2, %v5858_v25, 0.0 }
0x16f2   :  { %3211 = vadd.xlane.f32.xlu1 %v3210_v27 }
0x1757   :  { %v3209_v31 = vpop.xlane.xlu0 %3208 }
0x1758   :  { %v3216_v29 = vmul.f32 0.03125, %v3209_v31 }
0x175a   :  { %v3219_v30 = vsub.f32 %v5850_v61, %v3216_v29 }
0x175c   :  { %v3222_v34 = vmul.f32 %v3219_v30, %v3219_v30 }
0x175e   :  { %v3225_v35 = vsel %vm185_vm2, %v3222_v34, 0.0 }
0x175f   :  { %3226 = vadd.xlane.f32.xlu0 %v3225_v35 }
0x177b   :  { %v3212_v38 = vpop.xlane.xlu1 %3211 }
0x177c   :  { %v3217_v37 = vmul.f32 0.03125, %v3212_v38 }
0x177e   :  { %v3220_v21 = vsub.f32 %v5858_v25, %v3217_v37 }
0x1780   :  { %v3223_v43 = vmul.f32 %v3220_v21, %v3220_v21 }
0x1782   :  { %v3228_v20 = vsel %vm185_vm2, %v3223_v43, 0.0 }
0x1783   :  { %3229 = vadd.xlane.f32.xlu0 %v3228_v20 }
0x17a5   :  { %v3196_v22 = vpop.f32.mrf.mxu0 }
0x17a6   :  { %v3197_v24 = vadd.f32 %v3814_v4, %v3196_v22  ;;  %v3839_v4 = vld [vmem:[%s6060_s17 + $0xc0] sm:$0xff] }
0x17a7   :  { %v4398_v44 = vpop.f32.mrf.mxu0  ;;  %4431 = vmatpush3.msra.mxu0 %v3839_v4 }
0x17a8   :  { %v5882_v17 = vadd.f32 %v4639_v46, %v3197_v24  ;;  %4432 = vmatprep.subr.mxu0 %v4684_v1 }
0x17a9   :  { %4433 = vmatpush3.msra.mxu0 %v3838_v5 }
0x17aa   :  { %v3213_v47 = vsel %vm196_vm3, %v5882_v17, 0.0  ;;  %4434 = vmatprep.subr.mxu0 %v4684_v1 }
0x17ab   :  { %3214 = vadd.xlane.f32.xlu0 %v3213_v47  ;;  %4435 = vmatpush3.msra.mxu0 %v3837_v6 }
0x17ac   :  { %4436 = vmatprep.subr.mxu0 %v4684_v1 }
0x17ad   :  { %4437 = vmatpush3.msra.mxu0 %v3836_v8 }
0x17ae   :  { %4438 = vmatprep.subr.mxu0 %v4684_v1 }
0x17af   :  { %4439 = vmatpush3.msra.mxu0 %v3835_v26 }
0x17b0   :  { %4440 = vmatprep.subr.mxu0 %v4684_v1 }
0x17b1   :  { %4441 = vmatpush3.msra.mxu0 %v3834_v7 }
0x17b2   :  { %4442 = vmatprep.subr.mxu0 %v4684_v1 }
0x17b3   :  { %4443 = vmatpush3.msra.mxu0 %v3833_v9 }
0x17b4   :  { %4444 = vmatprep.subr.mxu0 %v4684_v1 }
0x17b5   :  { %4445 = vmatpush3.msra.mxu0 %v3832_v10 }
0x17b6   :  { %4446 = vmatprep.subr.mxu0 %v4684_v1 }
0x17b7   :  { %4447 = vmatpush3.msra.mxu0 %v3831_v11 }
0x17e8   :  { %v3227_v48 = vpop.xlane.xlu0 %3226 }
0x17e9   :  { %v3234_v49 = vmul.f32 0.03125, %v3227_v48 }
0x17eb   :  { %v3237_v50 = vadd.f32 1e-05, %v3234_v49 }
0x17ed   :  { %4613 = vrsqrt.f32 %v3237_v50 }
0x17fa   :  { %v4614_v51 = vpop.eup %4613 }
0x17fb   :  { %v3243_v13 = vmul.f32 %v4614_v51, %v3219_v30 }
0x17fd   :  { %v3252_v53 = vmul.f32 %v5889_v18, %v3243_v13 }
0x17ff   :  { %v3261_v54 = vadd.f32 %v5894_v14, %v3252_v53 }
0x1801   :  { %4408 = vmatmul.mubr.msk.f32.vlgmr.msra.gmra.mxu1 %vm185_vm2, %v3261_v54 }
0x1802   :  { %4410 = vmatprep.mubr.msk.f32.mxu1 %vm4685_vm4, %v4684_v1 }
0x180c   :  { %v3230_v45 = vpop.xlane.xlu0 %3229 }
0x180d   :  { %v3235_v36 = vmul.f32 0.03125, %v3230_v45 }
0x180f   :  { %v3238_v28 = vadd.f32 1e-05, %v3235_v36 }
0x1811   :  { %4615 = vrsqrt.f32 %v3238_v28 }
0x181e   :  { %v4616_v16 = vpop.eup %4615 }
0x181f   :  { %v3244_v55 = vmul.f32 %v4616_v16, %v3220_v21  ;;  %v3848_v16 = vld [vmem:[%s6061_s18 + $0x1] ss:$0 sm:$0xff] }
0x1821   :  { %v3253_v56 = vmul.f32 %v5889_v18, %v3244_v55 }
0x1823   :  { %v3262_v58 = vadd.f32 %v5894_v14, %v3253_v56 }
0x1825   :  { %4411 = vmatmul.mubr.msk.f32.gmra.mxu1 %vm185_vm2, %v3262_v58 }
0x1826   :  { %4413 = vmatprep.mubr.msk.f32.mxu1 %vm4685_vm4, %v4684_v1 }
0x1834   :  { %v3215_v59 = vpop.xlane.xlu0 %3214 }
0x1835   :  { %v3218_v60 = vmul.f32 0.03125, %v3215_v59 }
0x1837   :  { %v5907_v62 = vsub.f32 %v5882_v17, %v3218_v60 }
0x1839   :  { %v3224_v52 = vmul.f32 %v5907_v62, %v5907_v62 }
0x183b   :  { %v3231_v39 = vsel %vm196_vm3, %v3224_v52, 0.0 }
0x183c   :  { %3232 = vadd.xlane.f32.xlu1 %v3231_v39 }
0x18c1   :  { %v3352_v15 = vpop.f32.mrf.mxu1 }
0x18c2   :  { %v3353_v19 = vadd.f32 %v3827_v12, %v3352_v15 }
0x18c3   :  { %v4409_v27 = vpop.f32.mrf.mxu1 }
0x18c4   :  { %v3366_v31 = vmul.f32 %v3353_v19, %v3353_v19 }
0x18c5   :  { %v3233_v29 = vpop.xlane.xlu1 %3232 }
0x18c6   :  { %v3369_v30 = vmul.f32 %v3366_v31, %v3353_v19  ;;  %v3236_v34 = vmul.f32 0.03125, %v3233_v29 }
0x18c8   :  { %v3372_v35 = vmul.f32 0.044715, %v3369_v30  ;;  %v3239_v23 = vadd.f32 1e-05, %v3236_v34 }
0x18ca   :  { %v3375_v38 = vadd.f32 %v3372_v35, %v3353_v19  ;;  %4617 = vrsqrt.f32 %v3239_v23  ;;  %v3589_v23 = vld [vmem:[%s6064_s21 + $0x18] sm:$0xff] }
0x18cb   :  { %4458 = vmatpush3.msra.mxu1 %v3589_v23 }
0x18cc   :  { %v3378_v37 = vmul.f32 0.7978846, %v3375_v38  ;;  %v3588_v38 = vld [vmem:[%s6064_s21 + $0x10] sm:$0xff]  ;;  %4459 = vmatprep.subr.mxu1 %v4684_v1 }
0x18cd   :  { %4460 = vmatpush3.msra.mxu1 %v3588_v38 }
0x18ce   :  { %4619 = vtanh.f32 %v3378_v37  ;;  %v3587_v37 = vld [vmem:[%s6064_s21 + $0x8] sm:$0xff]  ;;  %4461 = vmatprep.subr.mxu1 %v4684_v1 }
0x18cf   :  { %4462 = vmatpush3.msra.mxu1 %v3587_v37 }
0x18d0   :  { %4463 = vmatprep.subr.mxu1 %v4684_v1 }
0x18d7   :  { %v4618_v40 = vpop.eup %4617 }
0x18d8   :  { %v3245_v32 = vmul.f32 %v4618_v40, %v5907_v62 }
0x18da   :  { %v3254_v21 = vmul.f32 %v5889_v18, %v3245_v32 }
0x18db   :  { %v4620_v41 = vpop.eup %4619 }
0x18dc   :  { %v3384_v43 = vadd.f32 1.0, %v4620_v41  ;;  %v3263_v20 = vadd.f32 %v5894_v14, %v3254_v21 }
0x18de   :  { %v3387_v22 = vmul.f32 0.5, %v3384_v43  ;;  %4414 = vmatmul.mubr.msk.f32.gmra.mxu1 %vm185_vm2, %v3263_v20 }
0x18df   :  { %4465 = vmatprep.mubr.msk.f32.mxu1 %vm4685_vm4, %v4684_v1 }
0x18e0   :  { %v3390_v24 = vmul.f32 %v3387_v22, %v3353_v19  ;;  %v3849_v22 = vld [vmem:[%s6062_s19] ss:$0 sm:$0xff]  ;;  %s4700_s19 = smov [#allocation9]  }
0x18e2   :  { %4449 = vmatmul.mubr.f32.vlgmr.msra.gmra.mxu0 %v3390_v24 }
0x18e3   :  { %4451 = vmatprep.mubr.msk.f32.mxu0 %vm4685_vm4, %v4684_v1 }
0x18e5   :  { %v3357_v44 = vpop.f32.mrf.mxu1 }
0x18e6   :  { %v3358_v46 = vadd.f32 %v3827_v12, %v3357_v44  ;;  %v3850_v44 = vld [vmem:[%s6063_s20] ss:$0 sm:$0xff]  ;;  %s3680_s20 = sshll.u32 %s4700_s19, 4  ;;  %s3681_s20 = int_to_ptr.vmem [resolvable:$true] %s3680_s20 }
0x18e7   :  { %v4412_v47 = vpop.f32.mrf.mxu1  ;;  %p4645_p1 = scmp.lt.s32.totalorder %s3681_s20, %s3681_s20 }
0x18e8   :  { %v3367_v48 = vmul.f32 %v3358_v46, %v3358_v46 }
0x18ea   :  { %v3370_v49 = vmul.f32 %v3367_v48, %v3358_v46 }
0x18ec   :  { %v3373_v50 = vmul.f32 0.044715, %v3370_v49 }
0x18ee   :  { %v3376_v51 = vadd.f32 %v3373_v50, %v3358_v46 }
0x18f0   :  { %v3379_v18 = vmul.f32 0.7978846, %v3376_v51 }
0x18f2   :  { %4621 = vtanh.f32 %v3379_v18 }
0x18ff   :  { %v4622_v13 = vpop.eup %4621 }
0x1900   :  { %v3385_v14 = vadd.f32 1.0, %v4622_v13 }
0x1902   :  { %v3388_v53 = vmul.f32 0.5, %v3385_v14 }
0x1904   :  { %v3391_v54 = vmul.f32 %v3388_v53, %v3358_v46 }
0x1906   :  { %4452 = vmatmul.mubr.f32.gmra.mxu0 %v3391_v54 }
0x1907   :  { %4454 = vmatprep.mubr.msk.f32.mxu0 %vm4685_vm4, %v4684_v1  ;;  %vm6117_vm4 = vmmov %vm6116_vm1 }
0x199e   :  { %v3362_v45 = vpop.f32.mrf.mxu1 }
0x199f   :  { %v3363_v36 = vadd.f32 %v3827_v12, %v3362_v45 }
0x19a0   :  { %v4415_v28 = vpop.f32.mrf.mxu1 }
0x19a1   :  { %v3368_v55 = vmul.f32 %v3363_v36, %v3363_v36 }
0x19a2   :  { %v3484_v56 = vpop.f32.mrf.mxu0 }
0x19a3   :  { %v3371_v58 = vmul.f32 %v3368_v55, %v3363_v36  ;;  %v3485_v59 = vadd.f32 %v3848_v16, %v3484_v56 }
0x19a4   :  { %v4450_v60 = vpop.f32.mrf.mxu0 }
0x19a5   :  { %v3374_v62 = vmul.f32 0.044715, %v3371_v58  ;;  %v3498_v52 = vadd.f32 %v3485_v59, %v5850_v61 }
0x19a7   :  { %v3377_v39 = vadd.f32 %v3374_v62, %v3363_v36  ;;  %3501 = vst.msk [vmem:[#allocation3] sm:$0xff] %vm185_vm2, %v3498_v52 }
0x19a9   :  { %v3380_v57 = vmul.f32 0.7978846, %v3377_v39 }
0x19ab   :  { %4623 = vtanh.f32 %v3380_v57 }
0x19ae   :  { %v3504_v63 = vld [vmem:[#allocation3] sm:$0xff] }
0x19af   :  { %v3509_v0 = vsel %vm185_vm2, %v3504_v63, 0.0 }
0x19b0   :  { %3510 = vadd.xlane.f32.xlu0 %v3509_v0 }
0x19b8   :  { %v4624_v2 = vpop.eup %4623 }
0x19b9   :  { %v3386_v42 = vadd.f32 1.0, %v4624_v2 }
0x19bb   :  { %v3389_v33 = vmul.f32 0.5, %v3386_v42 }
0x19bd   :  { %v3392_v3 = vmul.f32 %v3389_v33, %v3363_v36 }
0x19bf   :  { %4455 = vmatmul.mubr.f32.gmra.mxu0 %v3392_v3 }
0x19c6   :  { %v3489_v4 = vpop.f32.mrf.mxu0 }
0x19c7   :  { %v3490_v5 = vadd.f32 %v3848_v16, %v3489_v4 }
0x19c8   :  { %v4453_v6 = vpop.f32.mrf.mxu0 }
0x19c9   :  { %v3499_v8 = vadd.f32 %v3490_v5, %v5858_v25 }
0x19cb   :  { %3502 = vst.msk [vmem:[#allocation3 + $0x8] sm:$0xff] %vm185_vm2, %v3499_v8 }
0x19d2   :  { %v3505_v61 = vld [vmem:[#allocation3 + $0x8] sm:$0xff] }
0x19d3   :  { %v3512_v26 = vsel %vm185_vm2, %v3505_v61, 0.0 }
0x19d4   :  { %3513 = vadd.xlane.f32.xlu1 %v3512_v26 }
0x1a39   :  { %v3511_v7 = vpop.xlane.xlu0 %3510 }
0x1a3a   :  { %v3518_v9 = vmul.f32 0.03125, %v3511_v7 }
0x1a3c   :  { %v3521_v10 = vsub.f32 %v3504_v63, %v3518_v9 }
0x1a3e   :  { %v3524_v11 = vmul.f32 %v3521_v10, %v3521_v10 }
0x1a40   :  { %v3527_v12 = vsel %vm185_vm2, %v3524_v11, 0.0 }
0x1a41   :  { %3528 = vadd.xlane.f32.xlu0 %v3527_v12 }
0x1a5d   :  { %v3514_v15 = vpop.xlane.xlu1 %3513 }
0x1a5e   :  { %v3519_v19 = vmul.f32 0.03125, %v3514_v15 }
0x1a60   :  { %v3522_v27 = vsub.f32 %v3505_v61, %v3519_v19 }
0x1a62   :  { %v3525_v31 = vmul.f32 %v3522_v27, %v3522_v27 }
0x1a64   :  { %v3530_v29 = vsel %vm185_vm2, %v3525_v31, 0.0 }
0x1a65   :  { %3531 = vadd.xlane.f32.xlu1 %v3530_v29 }
0x1a7f   :  { %v3494_v25 = vpop.f32.mrf.mxu0 }
0x1a80   :  { %v3495_v30 = vadd.f32 %v3848_v16, %v3494_v25 }
0x1a81   :  { %v4456_v34 = vpop.f32.mrf.mxu0 }
0x1a82   :  { %v3500_v35 = vadd.f32 %v3495_v30, %v5882_v17  ;;  %v3586_v17 = vld [vmem:[%s6064_s21] sm:$0xff]  ;;  %s4640_s21 = scalar_lea.vmem %s3681_s20, 256 }
0x1a83   :  { %4464 = vmatpush3.msra.mxu1 %v3586_v17  ;;  %p4641_p0 = scmp.ne.s32.totalorder %s3681_s20, %s4640_s21  ;;  %p4646_p2 = scmp.lt.s32.totalorder %s4640_s21, %s4640_s21 }
0x1a84   :  { %3503 = vst.msk [vmem:[#allocation3 + $0x10] sm:$0xf] %vm196_vm3, %v3500_v35 }
0x1a85   :  { %p4647_p3 = por %p4646_p2, %p4645_p1 }
0x1a87   :  { %p4648_p4 = pnand %p4647_p3, %p4641_p0 }
0x1a8b   :  { %v3506_v40 = vld [vmem:[#allocation3 + $0x10] sm:$0xf] }
0x1a8c   :  { %v3515_v32 = vsel %vm196_vm3, %v3506_v40, 0.0 }
0x1a8d   :  { %3516 = vadd.xlane.f32.xlu0 %v3515_v32 }
0x1aca   :  { %v3529_v21 = vpop.xlane.xlu0 %3528 }
0x1acb   :  { %v3536_v41 = vmul.f32 0.03125, %v3529_v21 }
0x1acd   :  { %v3539_v43 = vadd.f32 1e-05, %v3536_v41 }
0x1acf   :  { %4625 = vrsqrt.f32 %v3539_v43 }
0x1adc   :  { %v4626_v20 = vpop.eup %4625 }
0x1add   :  { %v3545_v24 = vmul.f32 %v4626_v20, %v3521_v10 }
0x1adf   :  { %v3554_v46 = vmul.f32 %v3849_v22, %v3545_v24 }
0x1ae1   :  { %v3563_v47 = vadd.f32 %v3850_v44, %v3554_v46 }
0x1ae3   :  { %3566 = vst.msk [vmem:[#allocation3] sm:$0xff] %vm185_vm2, %v3563_v47 }
0x1aea   :  { %v3569_v1 = vld [vmem:[#allocation3] sm:$0x1]  ;;  %v3573_v48 = vld [vmem:[#allocation3 + $0x5] sm:$0x1]  ;;  %v3571_v49 = vld [vmem:[#allocation3 + $0x1] sm:$0xf] }
0x1aeb   :  { %3570 = vst.msk [vmem:[#allocation6] sm:$0x1] %vm6116_vm1, %v3569_v1 }
0x1aec   :  { %3574 = vst.msk [vmem:[#allocation6 + $0x1] sm:$0x1] %vm6117_vm4, %v3573_v48 }
0x1aed   :  { %3572 = vst.msk [vmem:[#allocation9] sm:$0xf] %vm196_vm3, %v3571_v49 }
0x1aee   :  { %v3532_v50 = vpop.xlane.xlu1 %3531 }
0x1aef   :  { %v3537_v51 = vmul.f32 0.03125, %v3532_v50 }
0x1af1   :  { %v3540_v18 = vadd.f32 1e-05, %v3537_v51 }
0x1af3   :  { %4627 = vrsqrt.f32 %v3540_v18 }
0x1b00   :  { %v4628_v13 = vpop.eup %4627 }
0x1b01   :  { %v3546_v14 = vmul.f32 %v4628_v13, %v3522_v27 }
0x1b03   :  { %v3555_v53 = vmul.f32 %v3849_v22, %v3546_v14 }
0x1b05   :  { %v3564_v54 = vadd.f32 %v3850_v44, %v3555_v53 }
0x1b07   :  { %3567 = vst.msk [vmem:[#allocation3 + $0x8] sm:$0xff] %vm185_vm2, %v3564_v54 }
0x1b0e   :  { %v3577_v45 = vld [vmem:[#allocation3 + $0xa] sm:$0x1]  ;;  %v3581_v36 = vld [vmem:[#allocation3 + $0xf] sm:$0x1]  ;;  %v3575_v28 = vld [vmem:[#allocation3 + $0x6] sm:$0xf] }
0x1b0f   :  { %3578 = vst.msk [vmem:[#allocation6 + $0x2] sm:$0x1] %vm6118_vm5, %v3577_v45  ;;  %v3579_v16 = vld [vmem:[#allocation3 + $0xb] sm:$0xf] }
0x1b10   :  { %3582 = vst.msk [vmem:[#allocation6 + $0x3] sm:$0x1] %vm6119_vm6, %v3581_v36 }
0x1b11   :  { %3576 = vst.msk [vmem:[#allocation9 + $0x4] sm:$0xf] %vm196_vm3, %v3575_v28  ;;  %3580 = vst.msk [vmem:[#allocation9 + $0x8] sm:$0xf] %vm196_vm3, %v3579_v16 }
0x1b16   :  { %v3517_v55 = vpop.xlane.xlu0 %3516 }
0x1b17   :  { %v3585_v56 = vld [vmem:[#allocation6] sm:$0xf]  ;;  %v3520_v58 = vmul.f32 0.03125, %v3517_v55 }
0x1b18   :  { %4466 = vmatmul.mubr.msk.f32.vlgmr.msra.gmra.mxu1 %vm185_vm2, %v3585_v56 }
0x1b19   :  { %v3523_v59 = vsub.f32 %v3506_v40, %v3520_v58 }
0x1b1b   :  { %v3526_v60 = vmul.f32 %v3523_v59, %v3523_v59 }
0x1b1d   :  { %v3533_v62 = vsel %vm196_vm3, %v3526_v60, 0.0 }
0x1b1e   :  { %3534 = vadd.xlane.f32.xlu1 %v3533_v62 }
0x1ba7   :  { %v3535_v52 = vpop.xlane.xlu1 %3534 }
0x1ba8   :  { %v3538_v39 = vmul.f32 0.03125, %v3535_v52 }
0x1baa   :  { %v3541_v57 = vadd.f32 1e-05, %v3538_v39 }
0x1bac   :  { %4629 = vrsqrt.f32 %v3541_v57 }
0x1bb9   :  { %v4630_v63 = vpop.eup %4629 }
0x1bba   :  { %v3547_v0 = vmul.f32 %v4630_v63, %v3523_v59 }
0x1bbc   :  { %v3556_v2 = vmul.f32 %v3849_v22, %v3547_v0 }
0x1bbe   :  { %v3565_v42 = vadd.f32 %v3850_v44, %v3556_v2 }
0x1bc0   :  { %3568 = vst.msk [vmem:[#allocation3 + $0x10] sm:$0xf] %vm196_vm3, %v3565_v42 }
0x1bc7   :  { %v3583_v33 = vld [vmem:[#allocation3 + $0x10] sm:$0xf] }
0x1bc8   :  { %3584 = vst.msk [vmem:[#allocation9 + $0xc] sm:$0xf] %vm196_vm3, %v3583_v33 }
0x1bc9   :  { %4651 = shalt.err (!%p4648_p4)
}
0x1bca   :  { %s4701_s14 = smov 128   ;;  %s4702_s5 = smov [#allocation7]   ;;  %vm3663_vm2 = vcmask 125952  }
0x1bcb   :  { %3686 = dma.vmem_to_hbm [thread:$0]  %s3681_s20, 256, %s6066_s23, [#allocation10], %s4701_s14, %s4701_s14, %s6113_s9  }
0x1bcc   :  { %s3671_s28 = sshll.u32 %s4702_s5, 4  ;;  %s3672_s28 = int_to_ptr.vmem [resolvable:$true] %s3671_s28 }
0x1bcd   :  { %s4660_s0 = scalar_lea.vmem %s3672_s28, 64  ;;  %p4665_p6 = scmp.lt.s32.totalorder %s3672_s28, %s3672_s28 }
0x1bce   :  { %p4661_p5 = scmp.ne.s32.totalorder %s3672_s28, %s4660_s0  ;;  %p4666_p7 = scmp.lt.s32.totalorder %s4660_s0, %s4660_s0 }
0x1bd0   :  { %p4667_p8 = por %p4666_p7, %p4665_p6 }
0x1bd2   :  { %p4668_p9 = pnand %p4667_p8, %p4661_p5 }
0x1bd8   :  { %v3659_v3 = vpop.f32.mrf.mxu1 }
0x1bd9   :  { %3664 = vst.msk [vmem:[#allocation7] sm:$0xf] %vm3663_vm2, %v3659_v3 }
0x1bda   :  { %v4467_v4 = vpop.f32.mrf.mxu1 }
0x1bdb   :  { %4671 = shalt.err (!%p4668_p9)
}
0x1bdc   :  { %3674 = dma.vmem_to_hbm [thread:$0]  %s3672_s28, 64, %s6065_s22, [#allocation8]  }
0x1bdd   :  { %4680 = dma.done.wait [#allocation8], 64  }
0x1bde   :  { %4681 = vsyncadd [#allocation8], 4294967232 }
0x1bdf   :  { %4682 = dma.done.wait [#allocation10], 256  }
0x1be0   :  { %4683 = vsyncadd [#allocation10], 4294967040 }
0x1be1   :  { %3693 = vsyncpa [#allocation8], 1 }
0x1be2   :  { %3694 = vsyncpa [#allocation10], 1 }

</bundles_post_ra>
